<compile_context>
chip_gen: v7x
topology: tpu7x:2x2x1
jax: 0.10.0
libtpu: 0.0.40
codegen_flags: <defaults>
</compile_context>

<pallas_src>
import jax
import jax.numpy as jnp
from jax.experimental import pallas as pl
from jax.experimental.pallas import tpu as pltpu

_VMEM_LIMIT = 32 * 1024 * 1024   # explicit scoped-VMEM limit (safe on v5e/v6e/v7x)
_TILE_BUDGET = 24 * 1024 * 1024  # per-call VMEM byte budget used to pick tm


# ---------------------------------------------------------------------------
# Pallas kernels
# ---------------------------------------------------------------------------

def _conv_bn_relu_pool_kernel(a0_ref, a1_ref, a2_ref, a3_ref, w_ref, shift_ref,
                              o_ref):
    """o = relu( max_over_4_taps( tap @ w_bnfolded ) + shift )

    The 4 tap inputs are the im2col patches of the 4 positions of each 2x2
    pooling window; BN scale is already folded into w, so max-before-shift is
    exact (shift is per output channel, identical across taps) and
    relu(max(.)) == max(relu(.)) by monotonicity.
    """
    w = w_ref[...]
    d0 = jnp.dot(a0_ref[...], w, preferred_element_type=jnp.float32)
    d1 = jnp.dot(a1_ref[...], w, preferred_element_type=jnp.float32)
    d2 = jnp.dot(a2_ref[...], w, preferred_element_type=jnp.float32)
    d3 = jnp.dot(a3_ref[...], w, preferred_element_type=jnp.float32)
    y = jnp.maximum(jnp.maximum(d0, d1), jnp.maximum(d2, d3))
    y = jnp.maximum(y + shift_ref[...], 0.0)
    o_ref[...] = y.astype(o_ref.dtype)


def _fc_stack_kernel(x_ref, w1_ref, b1_ref, w2_ref, b2_ref, w3_ref, b3_ref,
                     o_ref):
    """Fused fc1 -> relu -> fc2 -> relu -> fc3 (+bias each), all in one call."""
    h = jnp.dot(x_ref[...], w1_ref[...], preferred_element_type=jnp.float32)
    h = jnp.maximum(h + b1_ref[...], 0.0)
    # TODO(synk): dropout(p=0.25) would go here; identity in eval mode.
    h = jnp.dot(h.astype(jnp.bfloat16), w2_ref[...],
                preferred_element_type=jnp.float32)
    h = jnp.maximum(h + b2_ref[...], 0.0)
    o = jnp.dot(h.astype(jnp.bfloat16), w3_ref[...],
                preferred_element_type=jnp.float32)
    o_ref[...] = o + b3_ref[...]


# ---------------------------------------------------------------------------
# Wrappers / JAX glue
# ---------------------------------------------------------------------------

def _choose_tm(M, K, Cout, budget_bytes=_TILE_BUDGET):
    """Largest multiple-of-8 M-tile that divides M and fits the VMEM budget,
    preferring >=2 grid steps (v7x dual-TC sharding of the 'parallel' axis)."""
    def tile_bytes(tm):
        # 2x-buffered: 4 bf16 tap tiles + bf16 out tile; resident bf16 weights.
        return (2 * (4 * tm * K * 2 + tm * Cout * 2)
                + 2 * K * Cout * 2 + 4 * Cout * 4)
    if M % 16 == 0:
        tm = M // 2
        while tm % 16 == 0 and tile_bytes(tm) > budget_bytes:
            tm //= 2
        if tm % 8 == 0 and tile_bytes(tm) <= budget_bytes:
            return tm
    return M  # tiny / awkward M: single full-M block (always legal)


def _im2col_pool_taps(x):
    """x: (N, H, W, Cin) -> 4 arrays (N*H2*W2, 9*Cin), one per 2x2 pool tap.

    Tap (dy, dx) row (n, i, j) holds the 3x3 patch centered at conv output
    position (2i+dy, 2j+dx); K ordering is (kh, kw, cin).
    """
    N, H, W, C = x.shape
    H2, W2 = H // 2, W // 2
    xp = jnp.pad(x, ((0, 0), (1, 1), (1, 1), (0, 0)))
    taps = []
    for dy in range(2):
        for dx in range(2):
            cols = []
            for kh in range(3):
                for kw in range(3):
                    cols.append(xp[:, dy + kh: dy + kh + H: 2,
                                   dx + kw: dx + kw + W: 2, :])
            patch = jnp.stack(cols, axis=-2)          # (N, H2, W2, 9, C)
            taps.append(patch.reshape(N * H2 * W2, 9 * C))
    return taps


def conv_bn_relu_pool(x_nhwc, layer):
    """x: (N, H, W, Cin) bf16 -> (N, H//2, W//2, Cout) bf16 (fused block)."""
    N, H, W, Cin = x_nhwc.shape
    H2, W2 = H // 2, W // 2
    K = 9 * Cin
    Cout = layer["w_mat"].shape[1]
    taps = _im2col_pool_taps(x_nhwc)                  # 4 x (M, K) bf16
    M = N * H2 * W2
    tm = _choose_tm(M, K, Cout)
    tap_spec = pl.BlockSpec((tm, K), lambda i: (i, 0))
    out = pl.pallas_call(
        _conv_bn_relu_pool_kernel,
        out_shape=jax.ShapeDtypeStruct((M, Cout), jnp.bfloat16),
        grid=(M // tm,),
        in_specs=[tap_spec, tap_spec, tap_spec, tap_spec,
                  pl.BlockSpec((K, Cout), lambda i: (0, 0)),   # weights resident
                  pl.BlockSpec((1, Cout), lambda i: (0, 0))],  # per-channel shift
        out_specs=pl.BlockSpec((tm, Cout), lambda i: (i, 0)),
        compiler_params=pltpu.CompilerParams(
            dimension_semantics=("parallel",),
            vmem_limit_bytes=_VMEM_LIMIT),
    )(*taps, layer["w_mat"], layer["shift"])
    return out.reshape(N, H2, W2, Cout)


def _full_spec(shape):
    return pl.BlockSpec(shape, lambda i: (0,) * len(shape))


def fc_stack(feat, fp):
    """feat: (B, 2048) bf16 -> logits (B, 10) f32 in one fused pallas_call."""
    B = feat.shape[0]
    args = (feat, fp["w1"], fp["b1"], fp["w2"], fp["b2"], fp["w3"], fp["b3"])
    return pl.pallas_call(
        _fc_stack_kernel,
        out_shape=jax.ShapeDtypeStruct((B, 10), jnp.float32),
        grid=(1,),
        in_specs=[_full_spec(a.shape) for a in args],
        out_specs=_full_spec((B, 10)),
        compiler_params=pltpu.CompilerParams(
            dimension_semantics=("arbitrary",),
            vmem_limit_bytes=_VMEM_LIMIT),
    )(*args)


# ---------------------------------------------------------------------------
# Parameters (PyTorch layout) and one-time preparation (BN fold, bf16, permute)
# ---------------------------------------------------------------------------

def init_params(key):
    """Deterministic synthetic parameters matching Cifar10Net's shapes."""
    p = {}
    keys = jax.random.split(key, 18)
    ki = 0
    for idx, (cin, cout) in enumerate([(3, 32), (32, 64), (64, 128)], start=1):
        w = jax.random.normal(keys[ki], (cout, cin, 3, 3), jnp.float32) * 0.05
        b = jax.random.normal(keys[ki + 1], (cout,), jnp.float32) * 0.05
        gamma = 1.0 + 0.1 * jax.random.normal(keys[ki + 2], (cout,), jnp.float32)
        beta = 0.1 * jax.random.normal(keys[ki + 3], (cout,), jnp.float32)
        mean = jnp.zeros((cout,), jnp.float32)      # BatchNorm running_mean
        var = jnp.ones((cout,), jnp.float32)        # BatchNorm running_var
        p[f"conv{idx}"] = dict(w=w, b=b, gamma=gamma, beta=beta, mean=mean, var=var)
        ki += 4
    for idx, (fin, fout) in enumerate([(128 * 4 * 4, 256), (256, 128), (128, 10)],
                                      start=1):
        w = jax.random.normal(keys[ki], (fin, fout), jnp.float32) / jnp.sqrt(fin)
        b = 0.05 * jax.random.normal(keys[ki + 1], (fout,), jnp.float32)
        p[f"fc{idx}"] = dict(w=w, b=b)
        ki += 2
    return p


def prepare_params(p, eps=1e-5):
    """Fold BN into conv weights, cast MXU operands to bf16, permute fc1 rows."""
    prepped = {}
    for idx in (1, 2, 3):
        cp = p[f"conv{idx}"]
        cout, cin = cp["w"].shape[0], cp["w"].shape[1]
        # (Cout, Cin, kh, kw) -> im2col matrix (kh*kw*Cin, Cout)
        w_mat = jnp.transpose(cp["w"], (2, 3, 1, 0)).reshape(9 * cin, cout)
        scale = cp["gamma"] / jnp.sqrt(cp["var"] + eps)
        shift = cp["beta"] + scale * (cp["b"] - cp["mean"])
        prepped[f"conv{idx}"] = dict(
            w_mat=(w_mat * scale[None, :]).astype(jnp.bfloat16),
            shift=shift[None, :].astype(jnp.float32))
    # fc1 rows: torch.flatten(NCHW) order (c,h,w) -> our NHWC flatten (h,w,c).
    w1 = (p["fc1"]["w"].reshape(128, 4, 4, 256)
          .transpose(1, 2, 0, 3).reshape(128 * 4 * 4, 256))
    prepped["fc"] = dict(
        w1=w1.astype(jnp.bfloat16),
        b1=p["fc1"]["b"][None, :].astype(jnp.float32),
        w2=p["fc2"]["w"].astype(jnp.bfloat16),
        b2=p["fc2"]["b"][None, :].astype(jnp.float32),
        w3=p["fc3"]["w"].astype(jnp.bfloat16),
        b3=p["fc3"]["b"][None, :].astype(jnp.float32))
    return prepped


# ---------------------------------------------------------------------------
# Full forward
# ---------------------------------------------------------------------------

def cifar10net_forward(x_nchw, prepped):
    N = x_nchw.shape[0]
    x = jnp.transpose(x_nchw, (0, 2, 3, 1)).astype(jnp.bfloat16)  # NCHW -> NHWC
    x = conv_bn_relu_pool(x, prepped["conv1"])   # (N, 16, 16, 32)
    x = conv_bn_relu_pool(x, prepped["conv2"])   # (N,  8,  8, 64)
    x = conv_bn_relu_pool(x, prepped["conv3"])   # (N,  4,  4, 128)
    feat = x.reshape(N, 4 * 4 * 128)             # NHWC flatten (fc1 rows permuted)
    return fc_stack(feat, prepped["fc"])         # (N, 10) f32


if __name__ == "__main__":
    key = jax.random.PRNGKey(0)
    k_x, k_p = jax.random.split(key)
    # CIFAR-10 shaped input (32x32 spatial is required by fc1 = 128*4*4)
    x = jax.random.normal(k_x, (2, 3, 32, 32), jnp.float32)
    params = init_params(k_p)
    prepped = prepare_params(params)

    fwd = jax.jit(cifar10net_forward)
    logits = fwd(x, prepped)
    jax.block_until_ready(logits)
    assert logits.shape == (2, 10) and logits.dtype == jnp.float32
    assert bool(jnp.all(jnp.isfinite(logits)))
    print("KERNEL_OK")
</pallas_src>

<mosaic_0001>
module attributes {stable_mosaic.version = 11 : i64} {
  func.func @_conv_bn_relu_pool_kernel(%arg0: i32, %arg1: memref<256x27xbf16, #tpu.memory_space<vmem>>, %arg2: memref<256x27xbf16, #tpu.memory_space<vmem>>, %arg3: memref<256x27xbf16, #tpu.memory_space<vmem>>, %arg4: memref<256x27xbf16, #tpu.memory_space<vmem>>, %arg5: memref<27x32xbf16, #tpu.memory_space<vmem>>, %arg6: memref<1x32xf32, #tpu.memory_space<vmem>>, %arg7: memref<256x32xbf16, #tpu.memory_space<vmem>>) attributes {dimension_semantics = [#tpu.dimension_semantics<parallel>], iteration_bounds = array<i64: 2>, scalar_prefetch = 0 : i64, scratch_operands = 0 : i64, tpu.core_type = #tpu.core_type<tc>, window_params = [{transform_indices = @transform_0, window_bounds = array<i64: 256, 27>}, {transform_indices = @transform_1, window_bounds = array<i64: 256, 27>}, {transform_indices = @transform_2, window_bounds = array<i64: 256, 27>}, {transform_indices = @transform_3, window_bounds = array<i64: 256, 27>}, {pipeline_mode = #tpu.pipeline_mode<synchronous>, transform_indices = @transform_4, window_bounds = array<i64: 27, 32>}, {pipeline_mode = #tpu.pipeline_mode<synchronous>, transform_indices = @transform_5, window_bounds = array<i64: 1, 32>}, {transform_indices = @transform_6, window_bounds = array<i64: 256, 32>}]} {
    %c0 = arith.constant 0 : index
    %c0_0 = arith.constant 0 : index
    %0 = vector.load %arg5[%c0, %c0_0] : memref<27x32xbf16, #tpu.memory_space<vmem>>, vector<27x32xbf16>
    %c0_1 = arith.constant 0 : index
    %c0_2 = arith.constant 0 : index
    %1 = vector.load %arg1[%c0_1, %c0_2] : memref<256x27xbf16, #tpu.memory_space<vmem>>, vector<256x27xbf16>
    %cst = arith.constant dense<0.000000e+00> : vector<256x32xf32>
    %2 = tpu.matmul %1, %0, %cst {dimension_numbers = #tpu.dot_dimension_numbers<[1], [0], [0], [1], [0, 0, 1, 1], [], []>} : vector<256x27xbf16>, vector<27x32xbf16>, vector<256x32xf32> -> vector<256x32xf32>
    %c0_3 = arith.constant 0 : index
    %c0_4 = arith.constant 0 : index
    %3 = vector.load %arg2[%c0_3, %c0_4] : memref<256x27xbf16, #tpu.memory_space<vmem>>, vector<256x27xbf16>
    %cst_5 = arith.constant dense<0.000000e+00> : vector<256x32xf32>
    %4 = tpu.matmul %3, %0, %cst_5 {dimension_numbers = #tpu.dot_dimension_numbers<[1], [0], [0], [1], [0, 0, 1, 1], [], []>} : vector<256x27xbf16>, vector<27x32xbf16>, vector<256x32xf32> -> vector<256x32xf32>
    %c0_6 = arith.constant 0 : index
    %c0_7 = arith.constant 0 : index
    %5 = vector.load %arg3[%c0_6, %c0_7] : memref<256x27xbf16, #tpu.memory_space<vmem>>, vector<256x27xbf16>
    %cst_8 = arith.constant dense<0.000000e+00> : vector<256x32xf32>
    %6 = tpu.matmul %5, %0, %cst_8 {dimension_numbers = #tpu.dot_dimension_numbers<[1], [0], [0], [1], [0, 0, 1, 1], [], []>} : vector<256x27xbf16>, vector<27x32xbf16>, vector<256x32xf32> -> vector<256x32xf32>
    %c0_9 = arith.constant 0 : index
    %c0_10 = arith.constant 0 : index
    %7 = vector.load %arg4[%c0_9, %c0_10] : memref<256x27xbf16, #tpu.memory_space<vmem>>, vector<256x27xbf16>
    %cst_11 = arith.constant dense<0.000000e+00> : vector<256x32xf32>
    %8 = tpu.matmul %7, %0, %cst_11 {dimension_numbers = #tpu.dot_dimension_numbers<[1], [0], [0], [1], [0, 0, 1, 1], [], []>} : vector<256x27xbf16>, vector<27x32xbf16>, vector<256x32xf32> -> vector<256x32xf32>
    %9 = arith.maximumf %2, %4 : vector<256x32xf32>
    %10 = arith.maximumf %6, %8 : vector<256x32xf32>
    %11 = arith.maximumf %9, %10 : vector<256x32xf32>
    %c0_12 = arith.constant 0 : index
    %c0_13 = arith.constant 0 : index
    %12 = vector.load %arg6[%c0_12, %c0_13] : memref<1x32xf32, #tpu.memory_space<vmem>>, vector<1x32xf32>
    %13 = vector.broadcast %12 : vector<1x32xf32> to vector<256x32xf32>
    %14 = arith.addf %11, %13 : vector<256x32xf32>
    %cst_14 = arith.constant 0.000000e+00 : f32
    %15 = vector.broadcast %cst_14 : f32 to vector<256x32xf32>
    %16 = arith.maximumf %14, %15 : vector<256x32xf32>
    %17 = arith.truncf %16 : vector<256x32xf32> to vector<256x32xbf16>
    %c0_15 = arith.constant 0 : index
    %c0_16 = arith.constant 0 : index
    %18 = vector.load %arg7[%c0_15, %c0_16] : memref<256x32xbf16, #tpu.memory_space<vmem>>, vector<256x32xbf16>
    tpu.vector_store %arg7[%c0_15, %c0_16], %17 {strides = array<i32>} : memref<256x32xbf16, #tpu.memory_space<vmem>>, vector<256x32xbf16>,
    return
  }
  func.func @transform_0(%arg0: i32) -> (i32, i32) {
    %c0_i32 = arith.constant 0 : i32
    %c0_i32_0 = arith.constant 0 : i32
    return %arg0, %c0_i32 : i32, i32
  }
  func.func @transform_1(%arg0: i32) -> (i32, i32) {
    %c0_i32 = arith.constant 0 : i32
    %c0_i32_0 = arith.constant 0 : i32
    return %arg0, %c0_i32 : i32, i32
  }
  func.func @transform_2(%arg0: i32) -> (i32, i32) {
    %c0_i32 = arith.constant 0 : i32
    %c0_i32_0 = arith.constant 0 : i32
    return %arg0, %c0_i32 : i32, i32
  }
  func.func @transform_3(%arg0: i32) -> (i32, i32) {
    %c0_i32 = arith.constant 0 : i32
    %c0_i32_0 = arith.constant 0 : i32
    return %arg0, %c0_i32 : i32, i32
  }
  func.func @transform_4(%arg0: i32) -> (i32, i32) {
    %c0_i32 = arith.constant 0 : i32
    %c0_i32_0 = arith.constant 0 : i32
    %c0_i32_1 = arith.constant 0 : i32
    return %c0_i32, %c0_i32_0 : i32, i32
  }
  func.func @transform_5(%arg0: i32) -> (i32, i32) {
    %c0_i32 = arith.constant 0 : i32
    %c0_i32_0 = arith.constant 0 : i32
    %c0_i32_1 = arith.constant 0 : i32
    return %c0_i32, %c0_i32_0 : i32, i32
  }
  func.func @transform_6(%arg0: i32) -> (i32, i32) {
    %c0_i32 = arith.constant 0 : i32
    %c0_i32_0 = arith.constant 0 : i32
    return %arg0, %c0_i32 : i32, i32
  }
}

module attributes {stable_mosaic.version = 11 : i64} {
  func.func @_conv_bn_relu_pool_kernel(%arg0: i32, %arg1: memref<64x288xbf16, #tpu.memory_space<vmem>>, %arg2: memref<64x288xbf16, #tpu.memory_space<vmem>>, %arg3: memref<64x288xbf16, #tpu.memory_space<vmem>>, %arg4: memref<64x288xbf16, #tpu.memory_space<vmem>>, %arg5: memref<288x64xbf16, #tpu.memory_space<vmem>>, %arg6: memref<1x64xf32, #tpu.memory_space<vmem>>, %arg7: memref<64x64xbf16, #tpu.memory_space<vmem>>) attributes {dimension_semantics = [#tpu.dimension_semantics<parallel>], iteration_bounds = array<i64: 2>, scalar_prefetch = 0 : i64, scratch_operands = 0 : i64, tpu.core_type = #tpu.core_type<tc>, window_params = [{transform_indices = @transform_0, window_bounds = array<i64: 64, 288>}, {transform_indices = @transform_1, window_bounds = array<i64: 64, 288>}, {transform_indices = @transform_2, window_bounds = array<i64: 64, 288>}, {transform_indices = @transform_3, window_bounds = array<i64: 64, 288>}, {pipeline_mode = #tpu.pipeline_mode<synchronous>, transform_indices = @transform_4, window_bounds = array<i64: 288, 64>}, {pipeline_mode = #tpu.pipeline_mode<synchronous>, transform_indices = @transform_5, window_bounds = array<i64: 1, 64>}, {transform_indices = @transform_6, window_bounds = array<i64: 64, 64>}]} {
    %c0 = arith.constant 0 : index
    %c0_0 = arith.constant 0 : index
    %0 = vector.load %arg5[%c0, %c0_0] : memref<288x64xbf16, #tpu.memory_space<vmem>>, vector<288x64xbf16>
    %c0_1 = arith.constant 0 : index
    %c0_2 = arith.constant 0 : index
    %1 = vector.load %arg1[%c0_1, %c0_2] : memref<64x288xbf16, #tpu.memory_space<vmem>>, vector<64x288xbf16>
    %cst = arith.constant dense<0.000000e+00> : vector<64x64xf32>
    %2 = tpu.matmul %1, %0, %cst {dimension_numbers = #tpu.dot_dimension_numbers<[1], [0], [0], [1], [0, 0, 1, 1], [], []>} : vector<64x288xbf16>, vector<288x64xbf16>, vector<64x64xf32> -> vector<64x64xf32>
    %c0_3 = arith.constant 0 : index
    %c0_4 = arith.constant 0 : index
    %3 = vector.load %arg2[%c0_3, %c0_4] : memref<64x288xbf16, #tpu.memory_space<vmem>>, vector<64x288xbf16>
    %cst_5 = arith.constant dense<0.000000e+00> : vector<64x64xf32>
    %4 = tpu.matmul %3, %0, %cst_5 {dimension_numbers = #tpu.dot_dimension_numbers<[1], [0], [0], [1], [0, 0, 1, 1], [], []>} : vector<64x288xbf16>, vector<288x64xbf16>, vector<64x64xf32> -> vector<64x64xf32>
    %c0_6 = arith.constant 0 : index
    %c0_7 = arith.constant 0 : index
    %5 = vector.load %arg3[%c0_6, %c0_7] : memref<64x288xbf16, #tpu.memory_space<vmem>>, vector<64x288xbf16>
    %cst_8 = arith.constant dense<0.000000e+00> : vector<64x64xf32>
    %6 = tpu.matmul %5, %0, %cst_8 {dimension_numbers = #tpu.dot_dimension_numbers<[1], [0], [0], [1], [0, 0, 1, 1], [], []>} : vector<64x288xbf16>, vector<288x64xbf16>, vector<64x64xf32> -> vector<64x64xf32>
    %c0_9 = arith.constant 0 : index
    %c0_10 = arith.constant 0 : index
    %7 = vector.load %arg4[%c0_9, %c0_10] : memref<64x288xbf16, #tpu.memory_space<vmem>>, vector<64x288xbf16>
    %cst_11 = arith.constant dense<0.000000e+00> : vector<64x64xf32>
    %8 = tpu.matmul %7, %0, %cst_11 {dimension_numbers = #tpu.dot_dimension_numbers<[1], [0], [0], [1], [0, 0, 1, 1], [], []>} : vector<64x288xbf16>, vector<288x64xbf16>, vector<64x64xf32> -> vector<64x64xf32>
    %9 = arith.maximumf %2, %4 : vector<64x64xf32>
    %10 = arith.maximumf %6, %8 : vector<64x64xf32>
    %11 = arith.maximumf %9, %10 : vector<64x64xf32>
    %c0_12 = arith.constant 0 : index
    %c0_13 = arith.constant 0 : index
    %12 = vector.load %arg6[%c0_12, %c0_13] : memref<1x64xf32, #tpu.memory_space<vmem>>, vector<1x64xf32>
    %13 = vector.broadcast %12 : vector<1x64xf32> to vector<64x64xf32>
    %14 = arith.addf %11, %13 : vector<64x64xf32>
    %cst_14 = arith.constant 0.000000e+00 : f32
    %15 = vector.broadcast %cst_14 : f32 to vector<64x64xf32>
    %16 = arith.maximumf %14, %15 : vector<64x64xf32>
    %17 = arith.truncf %16 : vector<64x64xf32> to vector<64x64xbf16>
    %c0_15 = arith.constant 0 : index
    %c0_16 = arith.constant 0 : index
    %18 = vector.load %arg7[%c0_15, %c0_16] : memref<64x64xbf16, #tpu.memory_space<vmem>>, vector<64x64xbf16>
    tpu.vector_store %arg7[%c0_15, %c0_16], %17 {strides = array<i32>} : memref<64x64xbf16, #tpu.memory_space<vmem>>, vector<64x64xbf16>,
    return
  }
  func.func @transform_0(%arg0: i32) -> (i32, i32) {
    %c0_i32 = arith.constant 0 : i32
    %c0_i32_0 = arith.constant 0 : i32
    return %arg0, %c0_i32 : i32, i32
  }
  func.func @transform_1(%arg0: i32) -> (i32, i32) {
    %c0_i32 = arith.constant 0 : i32
    %c0_i32_0 = arith.constant 0 : i32
    return %arg0, %c0_i32 : i32, i32
  }
  func.func @transform_2(%arg0: i32) -> (i32, i32) {
    %c0_i32 = arith.constant 0 : i32
    %c0_i32_0 = arith.constant 0 : i32
    return %arg0, %c0_i32 : i32, i32
  }
  func.func @transform_3(%arg0: i32) -> (i32, i32) {
    %c0_i32 = arith.constant 0 : i32
    %c0_i32_0 = arith.constant 0 : i32
    return %arg0, %c0_i32 : i32, i32
  }
  func.func @transform_4(%arg0: i32) -> (i32, i32) {
    %c0_i32 = arith.constant 0 : i32
    %c0_i32_0 = arith.constant 0 : i32
    %c0_i32_1 = arith.constant 0 : i32
    return %c0_i32, %c0_i32_0 : i32, i32
  }
  func.func @transform_5(%arg0: i32) -> (i32, i32) {
    %c0_i32 = arith.constant 0 : i32
    %c0_i32_0 = arith.constant 0 : i32
    %c0_i32_1 = arith.constant 0 : i32
    return %c0_i32, %c0_i32_0 : i32, i32
  }
  func.func @transform_6(%arg0: i32) -> (i32, i32) {
    %c0_i32 = arith.constant 0 : i32
    %c0_i32_0 = arith.constant 0 : i32
    return %arg0, %c0_i32 : i32, i32
  }
}

module attributes {stable_mosaic.version = 11 : i64} {
  func.func @_conv_bn_relu_pool_kernel(%arg0: i32, %arg1: memref<16x576xbf16, #tpu.memory_space<vmem>>, %arg2: memref<16x576xbf16, #tpu.memory_space<vmem>>, %arg3: memref<16x576xbf16, #tpu.memory_space<vmem>>, %arg4: memref<16x576xbf16, #tpu.memory_space<vmem>>, %arg5: memref<576x128xbf16, #tpu.memory_space<vmem>>, %arg6: memref<1x128xf32, #tpu.memory_space<vmem>>, %arg7: memref<16x128xbf16, #tpu.memory_space<vmem>>) attributes {dimension_semantics = [#tpu.dimension_semantics<parallel>], iteration_bounds = array<i64: 2>, scalar_prefetch = 0 : i64, scratch_operands = 0 : i64, tpu.core_type = #tpu.core_type<tc>, window_params = [{transform_indices = @transform_0, window_bounds = array<i64: 16, 576>}, {transform_indices = @transform_1, window_bounds = array<i64: 16, 576>}, {transform_indices = @transform_2, window_bounds = array<i64: 16, 576>}, {transform_indices = @transform_3, window_bounds = array<i64: 16, 576>}, {pipeline_mode = #tpu.pipeline_mode<synchronous>, transform_indices = @transform_4, window_bounds = array<i64: 576, 128>}, {pipeline_mode = #tpu.pipeline_mode<synchronous>, transform_indices = @transform_5, window_bounds = array<i64: 1, 128>}, {transform_indices = @transform_6, window_bounds = array<i64: 16, 128>}]} {
    %c0 = arith.constant 0 : index
    %c0_0 = arith.constant 0 : index
    %0 = vector.load %arg5[%c0, %c0_0] : memref<576x128xbf16, #tpu.memory_space<vmem>>, vector<576x128xbf16>
    %c0_1 = arith.constant 0 : index
    %c0_2 = arith.constant 0 : index
    %1 = vector.load %arg1[%c0_1, %c0_2] : memref<16x576xbf16, #tpu.memory_space<vmem>>, vector<16x576xbf16>
    %cst = arith.constant dense<0.000000e+00> : vector<16x128xf32>
    %2 = tpu.matmul %1, %0, %cst {dimension_numbers = #tpu.dot_dimension_numbers<[1], [0], [0], [1], [0, 0, 1, 1], [], []>} : vector<16x576xbf16>, vector<576x128xbf16>, vector<16x128xf32> -> vector<16x128xf32>
    %c0_3 = arith.constant 0 : index
    %c0_4 = arith.constant 0 : index
    %3 = vector.load %arg2[%c0_3, %c0_4] : memref<16x576xbf16, #tpu.memory_space<vmem>>, vector<16x576xbf16>
    %cst_5 = arith.constant dense<0.000000e+00> : vector<16x128xf32>
    %4 = tpu.matmul %3, %0, %cst_5 {dimension_numbers = #tpu.dot_dimension_numbers<[1], [0], [0], [1], [0, 0, 1, 1], [], []>} : vector<16x576xbf16>, vector<576x128xbf16>, vector<16x128xf32> -> vector<16x128xf32>
    %c0_6 = arith.constant 0 : index
    %c0_7 = arith.constant 0 : index
    %5 = vector.load %arg3[%c0_6, %c0_7] : memref<16x576xbf16, #tpu.memory_space<vmem>>, vector<16x576xbf16>
    %cst_8 = arith.constant dense<0.000000e+00> : vector<16x128xf32>
    %6 = tpu.matmul %5, %0, %cst_8 {dimension_numbers = #tpu.dot_dimension_numbers<[1], [0], [0], [1], [0, 0, 1, 1], [], []>} : vector<16x576xbf16>, vector<576x128xbf16>, vector<16x128xf32> -> vector<16x128xf32>
    %c0_9 = arith.constant 0 : index
    %c0_10 = arith.constant 0 : index
    %7 = vector.load %arg4[%c0_9, %c0_10] : memref<16x576xbf16, #tpu.memory_space<vmem>>, vector<16x576xbf16>
    %cst_11 = arith.constant dense<0.000000e+00> : vector<16x128xf32>
    %8 = tpu.matmul %7, %0, %cst_11 {dimension_numbers = #tpu.dot_dimension_numbers<[1], [0], [0], [1], [0, 0, 1, 1], [], []>} : vector<16x576xbf16>, vector<576x128xbf16>, vector<16x128xf32> -> vector<16x128xf32>
    %9 = arith.maximumf %2, %4 : vector<16x128xf32>
    %10 = arith.maximumf %6, %8 : vector<16x128xf32>
    %11 = arith.maximumf %9, %10 : vector<16x128xf32>
    %c0_12 = arith.constant 0 : index
    %c0_13 = arith.constant 0 : index
    %12 = vector.load %arg6[%c0_12, %c0_13] : memref<1x128xf32, #tpu.memory_space<vmem>>, vector<1x128xf32>
    %13 = vector.broadcast %12 : vector<1x128xf32> to vector<16x128xf32>
    %14 = arith.addf %11, %13 : vector<16x128xf32>
    %cst_14 = arith.constant 0.000000e+00 : f32
    %15 = vector.broadcast %cst_14 : f32 to vector<16x128xf32>
    %16 = arith.maximumf %14, %15 : vector<16x128xf32>
    %17 = arith.truncf %16 : vector<16x128xf32> to vector<16x128xbf16>
    %c0_15 = arith.constant 0 : index
    %c0_16 = arith.constant 0 : index
    %18 = vector.load %arg7[%c0_15, %c0_16] : memref<16x128xbf16, #tpu.memory_space<vmem>>, vector<16x128xbf16>
    tpu.vector_store %arg7[%c0_15, %c0_16], %17 {strides = array<i32>} : memref<16x128xbf16, #tpu.memory_space<vmem>>, vector<16x128xbf16>,
    return
  }
  func.func @transform_0(%arg0: i32) -> (i32, i32) {
    %c0_i32 = arith.constant 0 : i32
    %c0_i32_0 = arith.constant 0 : i32
    return %arg0, %c0_i32 : i32, i32
  }
  func.func @transform_1(%arg0: i32) -> (i32, i32) {
    %c0_i32 = arith.constant 0 : i32
    %c0_i32_0 = arith.constant 0 : i32
    return %arg0, %c0_i32 : i32, i32
  }
  func.func @transform_2(%arg0: i32) -> (i32, i32) {
    %c0_i32 = arith.constant 0 : i32
    %c0_i32_0 = arith.constant 0 : i32
    return %arg0, %c0_i32 : i32, i32
  }
  func.func @transform_3(%arg0: i32) -> (i32, i32) {
    %c0_i32 = arith.constant 0 : i32
    %c0_i32_0 = arith.constant 0 : i32
    return %arg0, %c0_i32 : i32, i32
  }
  func.func @transform_4(%arg0: i32) -> (i32, i32) {
    %c0_i32 = arith.constant 0 : i32
    %c0_i32_0 = arith.constant 0 : i32
    %c0_i32_1 = arith.constant 0 : i32
    return %c0_i32, %c0_i32_0 : i32, i32
  }
  func.func @transform_5(%arg0: i32) -> (i32, i32) {
    %c0_i32 = arith.constant 0 : i32
    %c0_i32_0 = arith.constant 0 : i32
    %c0_i32_1 = arith.constant 0 : i32
    return %c0_i32, %c0_i32_0 : i32, i32
  }
  func.func @transform_6(%arg0: i32) -> (i32, i32) {
    %c0_i32 = arith.constant 0 : i32
    %c0_i32_0 = arith.constant 0 : i32
    return %arg0, %c0_i32 : i32, i32
  }
}

module attributes {stable_mosaic.version = 11 : i64} {
  func.func @_fc_stack_kernel(%arg0: i32, %arg1: memref<2x2048xbf16, #tpu.memory_space<vmem>>, %arg2: memref<2048x256xbf16, #tpu.memory_space<vmem>>, %arg3: memref<1x256xf32, #tpu.memory_space<vmem>>, %arg4: memref<256x128xbf16, #tpu.memory_space<vmem>>, %arg5: memref<1x128xf32, #tpu.memory_space<vmem>>, %arg6: memref<128x10xbf16, #tpu.memory_space<vmem>>, %arg7: memref<1x10xf32, #tpu.memory_space<vmem>>, %arg8: memref<2x10xf32, #tpu.memory_space<vmem>>) attributes {dimension_semantics = [#tpu.dimension_semantics<arbitrary>], iteration_bounds = array<i64: 1>, scalar_prefetch = 0 : i64, scratch_operands = 0 : i64, tpu.core_type = #tpu.core_type<tc>, window_params = [{pipeline_mode = #tpu.pipeline_mode<synchronous>, transform_indices = @transform_0, window_bounds = array<i64: 2, 2048>}, {pipeline_mode = #tpu.pipeline_mode<synchronous>, transform_indices = @transform_1, window_bounds = array<i64: 2048, 256>}, {pipeline_mode = #tpu.pipeline_mode<synchronous>, transform_indices = @transform_2, window_bounds = array<i64: 1, 256>}, {pipeline_mode = #tpu.pipeline_mode<synchronous>, transform_indices = @transform_3, window_bounds = array<i64: 256, 128>}, {pipeline_mode = #tpu.pipeline_mode<synchronous>, transform_indices = @transform_4, window_bounds = array<i64: 1, 128>}, {pipeline_mode = #tpu.pipeline_mode<synchronous>, transform_indices = @transform_5, window_bounds = array<i64: 128, 10>}, {pipeline_mode = #tpu.pipeline_mode<synchronous>, transform_indices = @transform_6, window_bounds = array<i64: 1, 10>}, {pipeline_mode = #tpu.pipeline_mode<synchronous>, transform_indices = @transform_7, window_bounds = array<i64: 2, 10>}]} {
    %c0 = arith.constant 0 : index
    %c0_0 = arith.constant 0 : index
    %0 = vector.load %arg1[%c0, %c0_0] : memref<2x2048xbf16, #tpu.memory_space<vmem>>, vector<2x2048xbf16>
    %c0_1 = arith.constant 0 : index
    %c0_2 = arith.constant 0 : index
    %1 = vector.load %arg2[%c0_1, %c0_2] : memref<2048x256xbf16, #tpu.memory_space<vmem>>, vector<2048x256xbf16>
    %cst = arith.constant dense<0.000000e+00> : vector<2x256xf32>
    %2 = tpu.matmul %0, %1, %cst {dimension_numbers = #tpu.dot_dimension_numbers<[1], [0], [0], [1], [0, 0, 1, 1], [], []>} : vector<2x2048xbf16>, vector<2048x256xbf16>, vector<2x256xf32> -> vector<2x256xf32>
    %c0_3 = arith.constant 0 : index
    %c0_4 = arith.constant 0 : index
    %3 = vector.load %arg3[%c0_3, %c0_4] : memref<1x256xf32, #tpu.memory_space<vmem>>, vector<1x256xf32>
    %4 = vector.broadcast %3 : vector<1x256xf32> to vector<2x256xf32>
    %5 = arith.addf %2, %4 : vector<2x256xf32>
    %cst_5 = arith.constant 0.000000e+00 : f32
    %6 = vector.broadcast %cst_5 : f32 to vector<2x256xf32>
    %7 = arith.maximumf %5, %6 : vector<2x256xf32>
    %8 = arith.truncf %7 : vector<2x256xf32> to vector<2x256xbf16>
    %c0_6 = arith.constant 0 : index
    %c0_7 = arith.constant 0 : index
    %9 = vector.load %arg4[%c0_6, %c0_7] : memref<256x128xbf16, #tpu.memory_space<vmem>>, vector<256x128xbf16>
    %cst_8 = arith.constant dense<0.000000e+00> : vector<2x128xf32>
    %10 = tpu.matmul %8, %9, %cst_8 {dimension_numbers = #tpu.dot_dimension_numbers<[1], [0], [0], [1], [0, 0, 1, 1], [], []>} : vector<2x256xbf16>, vector<256x128xbf16>, vector<2x128xf32> -> vector<2x128xf32>
    %c0_9 = arith.constant 0 : index
    %c0_10 = arith.constant 0 : index
    %11 = vector.load %arg5[%c0_9, %c0_10] : memref<1x128xf32, #tpu.memory_space<vmem>>, vector<1x128xf32>
    %12 = vector.broadcast %11 : vector<1x128xf32> to vector<2x128xf32>
    %13 = arith.addf %10, %12 : vector<2x128xf32>
    %cst_11 = arith.constant 0.000000e+00 : f32
    %14 = vector.broadcast %cst_11 : f32 to vector<2x128xf32>
    %15 = arith.maximumf %13, %14 : vector<2x128xf32>
    %16 = arith.truncf %15 : vector<2x128xf32> to vector<2x128xbf16>
    %c0_12 = arith.constant 0 : index
    %c0_13 = arith.constant 0 : index
    %17 = vector.load %arg6[%c0_12, %c0_13] : memref<128x10xbf16, #tpu.memory_space<vmem>>, vector<128x10xbf16>
    %cst_14 = arith.constant dense<0.000000e+00> : vector<2x10xf32>
    %18 = tpu.matmul %16, %17, %cst_14 {dimension_numbers = #tpu.dot_dimension_numbers<[1], [0], [0], [1], [0, 0, 1, 1], [], []>} : vector<2x128xbf16>, vector<128x10xbf16>, vector<2x10xf32> -> vector<2x10xf32>
    %c0_15 = arith.constant 0 : index
    %c0_16 = arith.constant 0 : index
    %19 = vector.load %arg7[%c0_15, %c0_16] : memref<1x10xf32, #tpu.memory_space<vmem>>, vector<1x10xf32>
    %20 = vector.broadcast %19 : vector<1x10xf32> to vector<2x10xf32>
    %21 = arith.addf %18, %20 : vector<2x10xf32>
    %c0_17 = arith.constant 0 : index
    %c0_18 = arith.constant 0 : index
    %22 = vector.load %arg8[%c0_17, %c0_18] : memref<2x10xf32, #tpu.memory_space<vmem>>, vector<2x10xf32>
    tpu.vector_store %arg8[%c0_17, %c0_18], %21 {strides = array<i32>} : memref<2x10xf32, #tpu.memory_space<vmem>>, vector<2x10xf32>,
    return
  }
  func.func @transform_0(%arg0: i32) -> (i32, i32) {
    %c0_i32 = arith.constant 0 : i32
    %c0_i32_0 = arith.constant 0 : i32
    %c0_i32_1 = arith.constant 0 : i32
    return %c0_i32, %c0_i32_0 : i32, i32
  }
  func.func @transform_1(%arg0: i32) -> (i32, i32) {
    %c0_i32 = arith.constant 0 : i32
    %c0_i32_0 = arith.constant 0 : i32
    %c0_i32_1 = arith.constant 0 : i32
    return %c0_i32, %c0_i32_0 : i32, i32
  }
  func.func @transform_2(%arg0: i32) -> (i32, i32) {
    %c0_i32 = arith.constant 0 : i32
    %c0_i32_0 = arith.constant 0 : i32
    %c0_i32_1 = arith.constant 0 : i32
    return %c0_i32, %c0_i32_0 : i32, i32
  }
  func.func @transform_3(%arg0: i32) -> (i32, i32) {
    %c0_i32 = arith.constant 0 : i32
    %c0_i32_0 = arith.constant 0 : i32
    %c0_i32_1 = arith.constant 0 : i32
    return %c0_i32, %c0_i32_0 : i32, i32
  }
  func.func @transform_4(%arg0: i32) -> (i32, i32) {
    %c0_i32 = arith.constant 0 : i32
    %c0_i32_0 = arith.constant 0 : i32
    %c0_i32_1 = arith.constant 0 : i32
    return %c0_i32, %c0_i32_0 : i32, i32
  }
  func.func @transform_5(%arg0: i32) -> (i32, i32) {
    %c0_i32 = arith.constant 0 : i32
    %c0_i32_0 = arith.constant 0 : i32
    %c0_i32_1 = arith.constant 0 : i32
    return %c0_i32, %c0_i32_0 : i32, i32
  }
  func.func @transform_6(%arg0: i32) -> (i32, i32) {
    %c0_i32 = arith.constant 0 : i32
    %c0_i32_0 = arith.constant 0 : i32
    %c0_i32_1 = arith.constant 0 : i32
    return %c0_i32, %c0_i32_0 : i32, i32
  }
  func.func @transform_7(%arg0: i32) -> (i32, i32) {
    %c0_i32 = arith.constant 0 : i32
    %c0_i32_0 = arith.constant 0 : i32
    %c0_i32_1 = arith.constant 0 : i32
    return %c0_i32, %c0_i32_0 : i32, i32
  }
}

</mosaic_0001>

<bundles_post_ra>
// kernel: cifar10net_forward.4
= control target key start
LH: loop header
LB: loop body
LE: loop exit
PB: predicated region body
PF: predicated region fallthrough
CT: control target
= control target key end

     0   :  { %s2596_s21 = smov 0   ;;  %s3162_s0 = inlined_call_operand.vmem [shape: bf16[512,27], index: 0, kind: input, shape index: {}]   ;;  %s3163_s1 = inlined_call_operand.vmem [shape: bf16[512,27], index: 1, kind: input, shape index: {}]   ;;  %s3164_s2 = inlined_call_operand.vmem [shape: bf16[512,27], index: 2, kind: input, shape index: {}]   ;;  %s3165_s3 = inlined_call_operand.vmem [shape: bf16[512,27], index: 3, kind: input, shape index: {}]   ;;  %s3166_s4 = inlined_call_operand.vmem [shape: bf16[27,32], index: 4, kind: input, shape index: {}]   ;;  %s3167_s5 = inlined_call_operand.vmem [shape: f32[1,32], index: 5, kind: input, shape index: {}]   ;;  %s3168_s6 = inlined_call_operand.vmem [shape: bf16[512,32], index: 6, kind: output, shape index: {}]  }
   0x1 LB: > { %s2049_s22 = sadd.s32 4294967295, %s2558_s21   ;;  %p2053_p0 = scmp.ge.s32.totalorder %s2558_s21, 1  ;;  %s2558_s21 = sphi %s2596_s21, %s16_s21  }
   0x2   : > { %p246_p1 = scmp.lt.s32.totalorder %s2558_s21, 3 }
   0x4   : > { %p247_p2 = pnand %p2053_p0, %p246_p1 }
   0x6   : > { %250 = sbr.rel (%p247_p2) target bundleno = 369 (0x171), region = 44 }
   0xd   : > { %v2486_v0 = vld [vmem:[%s3166_s4] sm:$0xff]   ;;  %vm498_vm0 = vcmask 1044480   ;;  %v2487_v1 = vld [vmem:[%s3166_s4 + $0x8] sm:$0x3f]   ;;  %vm499_vm1 = vcmask 1045504   ;;  %s2054_s27 = sshll.u32 %s2049_s22, 5 }
   0xe   : > { %2333 = vmatprep.subr.bf16.mxu0 %v2486_v0  ;;  %2369 = vmatprep.subr.bf16.mxu1 %v2486_v0  ;;  %v2560_v2 = vmov 65535   ;;  %p292_p3 = scmp.lt.s32.totalorder %s2054_s27, 63  ;;  %vm449_vm2 = vcmask 220160   ;;  %vm1924_vm3 = vcmask 257024  }
   0xf   : > { %2334 = vmatpush3.bf16.msra.mxu0 %v2486_v0  ;;  %2370 = vmatpush3.bf16.msra.mxu1 %v2486_v0  ;;  %v500_v3 = vsel %vm498_vm0, 4294967295, %v2560_v2 }
  0x10   : > { %v501_v4 = vsel %vm499_vm1, %v500_v3, 0  ;;  %s3256_s27 = smov (!%p292_p3, %s2054_s27), 63 }
  0x11   : > { %v503_v5 = vand.u32 %v2487_v1, %v501_v4  ;;  %s2610_s28 = sshll.u32 %s3256_s27, 2 }
  0x12   : > { %s2616_s7 = scalar_lea.vmem %s3162_s0, %s2610_s28  ;;  %s2622_s10 = scalar_lea.vmem %s3163_s1, %s2610_s28 }
  0x13   : > { %2335 = vmatprep.subr.bf16.mxu0 %v503_v5  ;;  %2371 = vmatprep.subr.bf16.mxu1 %v503_v5  ;;  %v2488_v6 = vld [vmem:[%s2616_s7] sm:$0xff]   ;;  %v2490_v8 = vld [vmem:[%s2616_s7 + $0x8] sm:$0xff]   ;;  %v2492_v10 = vld [vmem:[%s2616_s7 + $0x10] sm:$0xff]   ;;  %s2665_s13 = scalar_lea.vmem %s3164_s2, %s2610_s28  ;;  %s2672_s16 = scalar_lea.vmem %s3165_s3, %s2610_s28 }
  0x14   : > { %2336 = vmatpush3.bf16.msra.mxu0 %v503_v5  ;;  %2372 = vmatpush3.bf16.msra.mxu1 %v503_v5  ;;  %v2489_v7 = vld [vmem:[%s2622_s10] sm:$0xff]   ;;  %v2491_v9 = vld [vmem:[%s2622_s10 + $0x8] sm:$0xff]   ;;  %v2493_v11 = vld [vmem:[%s2622_s10 + $0x10] sm:$0xff]   ;;  %s2980_s22 = scalar_lea.vmem %s3168_s6, %s2610_s28 }
  0x15   : > { %2405 = vmatprep.subr.bf16.mxu0 %v2486_v0  ;;  %2441 = vmatprep.subr.bf16.mxu1 %v2486_v0  ;;  %v2494_v12 = vld [vmem:[%s2616_s7 + $0x18] sm:$0xff]   ;;  %v2496_v14 = vld [vmem:[%s2616_s7 + $0x20] sm:$0xff]   ;;  %v2498_v16 = vld [vmem:[%s2616_s7 + $0x28] sm:$0xff]  }
  0x16   : > { %2337 = vmatprep.mubr.msk.bf16.mxu0 %vm449_vm2, %v2488_v6  ;;  %2373 = vmatprep.mubr.msk.bf16.mxu1 %vm449_vm2, %v2489_v7  ;;  %v2495_v13 = vld [vmem:[%s2622_s10 + $0x18] sm:$0xff]   ;;  %v2497_v15 = vld [vmem:[%s2622_s10 + $0x20] sm:$0xff]   ;;  %v2499_v17 = vld [vmem:[%s2622_s10 + $0x28] sm:$0xff]  }
  0x17   : > { %2338 = vmatmul.mubr.msk.bf16.vlgmr.msra.gmra.mrb[0].mxu0 %vm449_vm2, %v2490_v8  ;;  %2374 = vmatmul.mubr.msk.bf16.vlgmr.msra.gmra.mrb[0].mxu1 %vm449_vm2, %v2491_v9  ;;  %v2500_v18 = vld [vmem:[%s2616_s7 + $0x30] sm:$0xff]   ;;  %v2502_v20 = vld [vmem:[%s2616_s7 + $0x38] sm:$0xff]   ;;  %v2504_v22 = vld [vmem:[%s2616_s7 + $0x40] sm:$0xff]  }
  0x18   : > { %2406 = vmatpush3.bf16.msra.mxu0 %v2486_v0  ;;  %2442 = vmatpush3.bf16.msra.mxu1 %v2486_v0  ;;  %v2501_v19 = vld [vmem:[%s2622_s10 + $0x30] sm:$0xff]   ;;  %v2503_v21 = vld [vmem:[%s2622_s10 + $0x38] sm:$0xff]   ;;  %v2505_v23 = vld [vmem:[%s2622_s10 + $0x40] sm:$0xff]  }
  0x19   : > { %2341 = vmatprep.mubr.msk.bf16.mxu0 %vm449_vm2, %v2492_v10  ;;  %2377 = vmatprep.mubr.msk.bf16.mxu1 %vm449_vm2, %v2493_v11  ;;  %v2506_v24 = vld [vmem:[%s2616_s7 + $0x48] sm:$0xff]   ;;  %v2508_v26 = vld [vmem:[%s2616_s7 + $0x50] sm:$0xff]   ;;  %v2510_v28 = vld [vmem:[%s2616_s7 + $0x58] sm:$0xff]  }
  0x1a   : > { %2407 = vmatprep.subr.bf16.mxu0 %v503_v5  ;;  %2443 = vmatprep.subr.bf16.mxu1 %v503_v5  ;;  %v2507_v25 = vld [vmem:[%s2622_s10 + $0x48] sm:$0xff]   ;;  %v2509_v27 = vld [vmem:[%s2622_s10 + $0x50] sm:$0xff]   ;;  %v2511_v29 = vld [vmem:[%s2622_s10 + $0x58] sm:$0xff]  }
  0x1b   : > { %v2512_v30 = vld [vmem:[%s2616_s7 + $0x60] sm:$0xff]   ;;  %v2514_v32 = vld [vmem:[%s2616_s7 + $0x68] sm:$0xff]   ;;  %v2516_v34 = vld [vmem:[%s2616_s7 + $0x70] sm:$0xff]  }
  0x1c   : > { %2408 = vmatpush3.bf16.msra.mxu0 %v503_v5  ;;  %2444 = vmatpush3.bf16.msra.mxu1 %v503_v5  ;;  %v2513_v31 = vld [vmem:[%s2622_s10 + $0x60] sm:$0xff]   ;;  %v2515_v33 = vld [vmem:[%s2622_s10 + $0x68] sm:$0xff]   ;;  %v2517_v35 = vld [vmem:[%s2622_s10 + $0x70] sm:$0xff]  }
  0x1d   : > { %v2518_v36 = vld [vmem:[%s2616_s7 + $0x78] sm:$0xff]   ;;  %v2520_v38 = vld [vmem:[%s2665_s13] sm:$0xff]   ;;  %v2522_v40 = vld [vmem:[%s2665_s13 + $0x8] sm:$0xff]  }
  0x1e   : > { %v2519_v37 = vld [vmem:[%s2622_s10 + $0x78] sm:$0xff]   ;;  %v2521_v39 = vld [vmem:[%s2672_s16] sm:$0xff]   ;;  %v2523_v41 = vld [vmem:[%s2672_s16 + $0x8] sm:$0xff]  }
  0x1f   : > { %2342 = vmatmul.mubr.msk.bf16.gmra.mrb[4].mxu0 %vm449_vm2, %v2494_v12  ;;  %2378 = vmatmul.mubr.msk.bf16.gmra.mrb[4].mxu1 %vm449_vm2, %v2495_v13  ;;  %v2524_v42 = vld [vmem:[%s2665_s13 + $0x10] sm:$0xff]   ;;  %v2526_v44 = vld [vmem:[%s2665_s13 + $0x18] sm:$0xff]   ;;  %v2528_v46 = vld [vmem:[%s2665_s13 + $0x20] sm:$0xff]  }
  0x20   : > { %2345 = vmatprep.mubr.msk.bf16.mxu0 %vm449_vm2, %v2496_v14  ;;  %2381 = vmatprep.mubr.msk.bf16.mxu1 %vm449_vm2, %v2497_v15  ;;  %v2525_v43 = vld [vmem:[%s2672_s16 + $0x10] sm:$0xff]   ;;  %v2527_v45 = vld [vmem:[%s2672_s16 + $0x18] sm:$0xff]   ;;  %v2529_v47 = vld [vmem:[%s2672_s16 + $0x20] sm:$0xff]  }
  0x21   : > { %v2530_v48 = vld [vmem:[%s2665_s13 + $0x28] sm:$0xff]   ;;  %v2532_v50 = vld [vmem:[%s2665_s13 + $0x30] sm:$0xff]   ;;  %v2534_v52 = vld [vmem:[%s2665_s13 + $0x38] sm:$0xff]  }
  0x22   : > { %v2531_v49 = vld [vmem:[%s2672_s16 + $0x28] sm:$0xff]   ;;  %v2533_v51 = vld [vmem:[%s2672_s16 + $0x30] sm:$0xff]   ;;  %v2535_v53 = vld [vmem:[%s2672_s16 + $0x38] sm:$0xff]  }
  0x23   : > { %v2536_v54 = vld [vmem:[%s2665_s13 + $0x40] sm:$0xff]   ;;  %v2538_v56 = vld [vmem:[%s2665_s13 + $0x48] sm:$0xff]   ;;  %v2540_v58 = vld [vmem:[%s2665_s13 + $0x50] sm:$0xff]  }
  0x24   : > { %v2537_v55 = vld [vmem:[%s2672_s16 + $0x40] sm:$0xff]   ;;  %v2539_v57 = vld [vmem:[%s2672_s16 + $0x48] sm:$0xff]   ;;  %v2541_v59 = vld [vmem:[%s2672_s16 + $0x50] sm:$0xff]  }
  0x25   : > { %v2542_v60 = vld [vmem:[%s2665_s13 + $0x58] sm:$0xff]   ;;  %v2544_v62 = vld [vmem:[%s2665_s13 + $0x60] sm:$0xff]   ;;  %v2546_v0 = vld [vmem:[%s2665_s13 + $0x68] sm:$0xff]  }
  0x26   : > { %v2543_v61 = vld [vmem:[%s2672_s16 + $0x58] sm:$0xff]   ;;  %v2545_v63 = vld [vmem:[%s2672_s16 + $0x60] sm:$0xff]   ;;  %v2547_v1 = vld [vmem:[%s2672_s16 + $0x68] sm:$0xff]  }
  0x27   : > { %2346 = vmatmul.mubr.msk.bf16.gmra.mrb[8].mxu0 %vm449_vm2, %v2498_v16  ;;  %2382 = vmatmul.mubr.msk.bf16.gmra.mrb[8].mxu1 %vm449_vm2, %v2499_v17  ;;  %v2548_v2 = vld [vmem:[%s2665_s13 + $0x70] sm:$0xff]   ;;  %v2550_v4 = vld [vmem:[%s2665_s13 + $0x78] sm:$0xff]  }
  0x28   : > { %2349 = vmatprep.mubr.msk.bf16.mxu0 %vm449_vm2, %v2500_v18  ;;  %2385 = vmatprep.mubr.msk.bf16.mxu1 %vm449_vm2, %v2501_v19  ;;  %v2549_v3 = vld [vmem:[%s2672_s16 + $0x70] sm:$0xff]   ;;  %v2551_v5 = vld [vmem:[%s2672_s16 + $0x78] sm:$0xff]  }
  0x2f   : > { %2350 = vmatmul.mubr.msk.bf16.gmra.mrb[12].mxu0 %vm449_vm2, %v2502_v20  ;;  %2386 = vmatmul.mubr.msk.bf16.gmra.mrb[12].mxu1 %vm449_vm2, %v2503_v21 }
  0x30   : > { %2353 = vmatprep.mubr.msk.bf16.mxu0 %vm449_vm2, %v2504_v22  ;;  %2389 = vmatprep.mubr.msk.bf16.mxu1 %vm449_vm2, %v2505_v23 }
  0x37   : > { %2354 = vmatmul.mubr.msk.bf16.gmra.mrb[16].mxu0 %vm449_vm2, %v2506_v24  ;;  %2390 = vmatmul.mubr.msk.bf16.gmra.mrb[16].mxu1 %vm449_vm2, %v2507_v25 }
  0x38   : > { %2357 = vmatprep.mubr.msk.bf16.mxu0 %vm449_vm2, %v2508_v26  ;;  %2393 = vmatprep.mubr.msk.bf16.mxu1 %vm449_vm2, %v2509_v27 }
  0x3f   : > { %2358 = vmatmul.mubr.msk.bf16.gmra.mrb[20].mxu0 %vm449_vm2, %v2510_v28  ;;  %2394 = vmatmul.mubr.msk.bf16.gmra.mrb[20].mxu1 %vm449_vm2, %v2511_v29 }
  0x40   : > { %2361 = vmatprep.mubr.msk.bf16.mxu0 %vm449_vm2, %v2512_v30  ;;  %2397 = vmatprep.mubr.msk.bf16.mxu1 %vm449_vm2, %v2513_v31 }
  0x47   : > { %2362 = vmatmul.mubr.msk.bf16.gmra.mrb[24].mxu0 %vm449_vm2, %v2514_v32  ;;  %2398 = vmatmul.mubr.msk.bf16.gmra.mrb[24].mxu1 %vm449_vm2, %v2515_v33 }
  0x48   : > { %2365 = vmatprep.mubr.msk.bf16.mxu0 %vm449_vm2, %v2516_v34  ;;  %2401 = vmatprep.mubr.msk.bf16.mxu1 %vm449_vm2, %v2517_v35 }
  0x4f   : > { %2366 = vmatmul.mubr.msk.bf16.gmra.mrb[28].mxu0 %vm449_vm2, %v2518_v36  ;;  %2402 = vmatmul.mubr.msk.bf16.gmra.mrb[28].mxu1 %vm449_vm2, %v2519_v37 }
  0x50   : > { %2409 = vmatprep.mubr.msk.bf16.mxu0 %vm449_vm2, %v2520_v38  ;;  %2445 = vmatprep.mubr.msk.bf16.mxu1 %vm449_vm2, %v2521_v39 }
  0x57   : > { %2410 = vmatmul.mubr.msk.bf16.vlgmr.msra.gmra.mrb[32].mxu0 %vm449_vm2, %v2522_v40  ;;  %2446 = vmatmul.mubr.msk.bf16.vlgmr.msra.gmra.mrb[32].mxu1 %vm449_vm2, %v2523_v41 }
  0x58   : > { %2413 = vmatprep.mubr.msk.bf16.mxu0 %vm449_vm2, %v2524_v42  ;;  %2449 = vmatprep.mubr.msk.bf16.mxu1 %vm449_vm2, %v2525_v43 }
  0x5f   : > { %2414 = vmatmul.mubr.msk.bf16.gmra.mrb[36].mxu0 %vm449_vm2, %v2526_v44  ;;  %2450 = vmatmul.mubr.msk.bf16.gmra.mrb[36].mxu1 %vm449_vm2, %v2527_v45  ;;  %v2959_v45 = vld [vmem:[%s3167_s5] ss:$0 sm:$0xff] }
  0x60   : > { %2417 = vmatprep.mubr.msk.bf16.mxu0 %vm449_vm2, %v2528_v46  ;;  %2453 = vmatprep.mubr.msk.bf16.mxu1 %vm449_vm2, %v2529_v47 }
  0x67   : > { %2418 = vmatmul.mubr.msk.bf16.gmra.mrb[40].mxu0 %vm449_vm2, %v2530_v48  ;;  %2454 = vmatmul.mubr.msk.bf16.gmra.mrb[40].mxu1 %vm449_vm2, %v2531_v49 }
  0x68   : > { %2421 = vmatprep.mubr.msk.bf16.mxu0 %vm449_vm2, %v2532_v50  ;;  %2457 = vmatprep.mubr.msk.bf16.mxu1 %vm449_vm2, %v2533_v51 }
  0x6f   : > { %2422 = vmatmul.mubr.msk.bf16.gmra.mrb[44].mxu0 %vm449_vm2, %v2534_v52  ;;  %2458 = vmatmul.mubr.msk.bf16.gmra.mrb[44].mxu1 %vm449_vm2, %v2535_v53 }
  0x70   : > { %2425 = vmatprep.mubr.msk.bf16.mxu0 %vm449_vm2, %v2536_v54  ;;  %2461 = vmatprep.mubr.msk.bf16.mxu1 %vm449_vm2, %v2537_v55 }
  0x77   : > { %2426 = vmatmul.mubr.msk.bf16.gmra.mrb[48].mxu0 %vm449_vm2, %v2538_v56  ;;  %2462 = vmatmul.mubr.msk.bf16.gmra.mrb[48].mxu1 %vm449_vm2, %v2539_v57 }
  0x78   : > { %2429 = vmatprep.mubr.msk.bf16.mxu0 %vm449_vm2, %v2540_v58  ;;  %2465 = vmatprep.mubr.msk.bf16.mxu1 %vm449_vm2, %v2541_v59 }
  0x7f   : > { %2430 = vmatmul.mubr.msk.bf16.gmra.mrb[52].mxu0 %vm449_vm2, %v2542_v60  ;;  %2466 = vmatmul.mubr.msk.bf16.gmra.mrb[52].mxu1 %vm449_vm2, %v2543_v61 }
  0x80   : > { %2433 = vmatprep.mubr.msk.bf16.mxu0 %vm449_vm2, %v2544_v62  ;;  %2469 = vmatprep.mubr.msk.bf16.mxu1 %vm449_vm2, %v2545_v63 }
  0x87   : > { %2434 = vmatmul.mubr.msk.bf16.gmra.mrb[56].mxu0 %vm449_vm2, %v2546_v0  ;;  %2470 = vmatmul.mubr.msk.bf16.gmra.mrb[56].mxu1 %vm449_vm2, %v2547_v1 }
  0x88   : > { %2437 = vmatprep.mubr.msk.bf16.mxu0 %vm449_vm2, %v2548_v2  ;;  %2473 = vmatprep.mubr.msk.bf16.mxu1 %vm449_vm2, %v2549_v3 }
  0x8f   : > { %2438 = vmatmul.mubr.msk.bf16.gmra.mrb[60].mxu0 %vm449_vm2, %v2550_v4  ;;  %2474 = vmatmul.mubr.msk.bf16.gmra.mrb[60].mxu1 %vm449_vm2, %v2551_v5 }
  0xea   : > { %v2764_v6 = vpop.f32.mrb[0].mxu0  ;;  %v2766_v7 = vpop.f32.mrb[0].mxu1 }
  0xeb   : > { %v2768_v8 = vpop.f32.mrb[1].mxu0  ;;  %v2772_v10 = vpop.f32.mrb[1].mxu1 }
  0xec   : > { %v2774_v11 = vpop.f32.mrb[2].mxu0  ;;  %v2778_v13 = vpop.f32.mrb[2].mxu1 }
  0xed   : > { %v2780_v14 = vpop.f32.mrb[3].mxu0  ;;  %v2784_v16 = vpop.f32.mrb[3].mxu1 }
  0xf2   : > { %v2788_v18 = vpop.f32.mrb[4].mxu0  ;;  %v2790_v19 = vpop.f32.mrb[4].mxu1 }
  0xf3   : > { %v2792_v20 = vpop.f32.mrb[5].mxu0  ;;  %v2796_v22 = vpop.f32.mrb[5].mxu1 }
  0xf4   : > { %v2798_v23 = vpop.f32.mrb[6].mxu0  ;;  %v2802_v25 = vpop.f32.mrb[6].mxu1 }
  0xf5   : > { %v2804_v26 = vpop.f32.mrb[7].mxu0  ;;  %v2808_v28 = vpop.f32.mrb[7].mxu1 }
  0xfa   : > { %v2812_v30 = vpop.f32.mrb[8].mxu0  ;;  %v2814_v31 = vpop.f32.mrb[8].mxu1 }
  0xfb   : > { %v2816_v32 = vpop.f32.mrb[9].mxu0  ;;  %v2820_v34 = vpop.f32.mrb[9].mxu1 }
  0xfc   : > { %v2822_v35 = vpop.f32.mrb[10].mxu0  ;;  %v2826_v37 = vpop.f32.mrb[10].mxu1 }
  0xfd   : > { %v2828_v38 = vpop.f32.mrb[11].mxu0  ;;  %v2832_v40 = vpop.f32.mrb[11].mxu1 }
 0x102   : > { %v2836_v42 = vpop.f32.mrb[12].mxu0  ;;  %v2838_v43 = vpop.f32.mrb[12].mxu1 }
 0x103   : > { %v2840_v44 = vpop.f32.mrb[13].mxu0  ;;  %v2844_v46 = vpop.f32.mrb[13].mxu1 }
 0x104   : > { %v2846_v47 = vpop.f32.mrb[14].mxu0  ;;  %v2850_v49 = vpop.f32.mrb[14].mxu1 }
 0x105   : > { %v2852_v50 = vpop.f32.mrb[15].mxu0  ;;  %v2856_v52 = vpop.f32.mrb[15].mxu1 }
 0x10a   : > { %v2860_v54 = vpop.f32.mrb[16].mxu0  ;;  %v2862_v55 = vpop.f32.mrb[16].mxu1 }
 0x10b   : > { %v2864_v56 = vpop.f32.mrb[17].mxu0  ;;  %v2868_v58 = vpop.f32.mrb[17].mxu1 }
 0x10c   : > { %v2870_v59 = vpop.f32.mrb[18].mxu0  ;;  %v2874_v61 = vpop.f32.mrb[18].mxu1 }
 0x10d   : > { %v2876_v62 = vpop.f32.mrb[19].mxu0  ;;  %v2880_v0 = vpop.f32.mrb[19].mxu1 }
 0x112   : > { %v2884_v2 = vpop.f32.mrb[20].mxu0  ;;  %v2886_v3 = vpop.f32.mrb[20].mxu1 }
 0x113   : > { %v2888_v4 = vpop.f32.mrb[21].mxu0  ;;  %v2892_v60 = vpop.f32.mrb[21].mxu1 }
 0x114   : > { %v2894_v57 = vpop.f32.mrb[22].mxu0  ;;  %v2898_v53 = vpop.f32.mrb[22].mxu1 }
 0x115   : > { %v2900_v51 = vpop.f32.mrb[23].mxu0  ;;  %v2904_v48 = vpop.f32.mrb[23].mxu1 }
 0x116   : > { %3187 = vst [vmem:[#allocation2_spill] sm:$0xff] %v2900_v51  ;;  %3188 = vst [vmem:[#allocation3_spill] sm:$0xff] %v2904_v48  ;;  %v3207_v48 = vmax.f32 %v2774_v11, %v2778_v13 }
 0x11a   : > { %v2908_v5 = vpop.f32.mrb[24].mxu0  ;;  %v2910_v41 = vpop.f32.mrb[24].mxu1 }
 0x11b   : > { %3189 = vst [vmem:[#allocation4_spill] sm:$0xff] %v2908_v5  ;;  %3190 = vst [vmem:[#allocation5_spill] sm:$0xff] %v2910_v41  ;;  %v2912_v39 = vpop.f32.mrb[25].mxu0  ;;  %v2916_v36 = vpop.f32.mrb[25].mxu1 }
 0x11c   : > { %3191 = vst [vmem:[#allocation6_spill] sm:$0xff] %v2912_v39  ;;  %3192 = vst [vmem:[#allocation7_spill] sm:$0xff] %v2916_v36  ;;  %v2918_v33 = vpop.f32.mrb[26].mxu0  ;;  %v2922_v29 = vpop.f32.mrb[26].mxu1 }
 0x11d   : > { %3193 = vst [vmem:[#allocation8_spill] sm:$0xff] %v2918_v33  ;;  %3194 = vst [vmem:[#allocation9_spill] sm:$0xff] %v2922_v29  ;;  %v2924_v27 = vpop.f32.mrb[27].mxu0  ;;  %v2928_v24 = vpop.f32.mrb[27].mxu1 }
 0x11e   : > { %3195 = vst [vmem:[#allocation10_spill] sm:$0xff] %v2924_v27  ;;  %3196 = vst [vmem:[#allocation11_spill] sm:$0xff] %v2928_v24 }
 0x122   : > { %v2932_v63 = vpop.f32.mrb[28].mxu0  ;;  %v2934_v17 = vpop.f32.mrb[28].mxu1 }
 0x123   : > { %3197 = vst [vmem:[#allocation12_spill] sm:$0xff] %v2932_v63  ;;  %3198 = vst [vmem:[#allocation13_spill] sm:$0xff] %v2934_v17  ;;  %v2936_v15 = vpop.f32.mrb[29].mxu0  ;;  %v2940_v12 = vpop.f32.mrb[29].mxu1 }
 0x124   : > { %3199 = vst [vmem:[#allocation14_spill] sm:$0xff] %v2936_v15  ;;  %3200 = vst [vmem:[#allocation15_spill] sm:$0xff] %v2940_v12  ;;  %v2942_v9 = vpop.f32.mrb[30].mxu0  ;;  %v2946_v29 = vpop.f32.mrb[30].mxu1 }
 0x125   : > { %3201 = vst [vmem:[#allocation16_spill] sm:$0xff] %v2942_v9  ;;  %3202 = vst [vmem:[#allocation17_spill] sm:$0xff] %v2946_v29  ;;  %v2948_v33 = vpop.f32.mrb[31].mxu0  ;;  %v2952_v24 = vpop.f32.mrb[31].mxu1  ;;  %v3205_v29 = vmax.f32 %v2764_v6, %v2766_v7 }
 0x126   : > { %3203 = vst [vmem:[#allocation18_spill] sm:$0xff] %v2948_v33  ;;  %3204 = vst [vmem:[#allocation19_spill] sm:$0xff] %v2952_v24 }
 0x12a   : > { %v2411_v1 = vpop.f32.mrb[32].mxu0  ;;  %v2447_v17 = vpop.f32.mrb[32].mxu1 }
 0x12b   : > { %v1181_v63 = vpop.f32.mrb[33].mxu0  ;;  %v1663_v36 = vmax.f32 %v2411_v1, %v2447_v17  ;;  %v1502_v39 = vpop.f32.mrb[33].mxu1  ;;  %v3206_v17 = vmax.f32 %v2768_v8, %v2772_v10 }
 0x12c   : > { %v2412_v41 = vpop.f32.mrb[34].mxu0  ;;  %v1661_v12 = vmax.f32 %v1181_v63, %v1502_v39  ;;  %v2448_v15 = vpop.f32.mrb[34].mxu1  ;;  %v3208_v63 = vmax.f32 %v2780_v14, %v2784_v16 }
 0x12d   : > { %v1184_v21 = vpop.f32.mrb[35].mxu0  ;;  %v1695_v9 = vmax.f32 %v3205_v29, %v1663_v36  ;;  %v1664_v27 = vmax.f32 %v2412_v41, %v2448_v15  ;;  %v1505_v24 = vpop.f32.mrb[35].mxu1 }
 0x12e   : > { %v1693_v1 = vmax.f32 %v3206_v17, %v1661_v12  ;;  %v1662_v33 = vmax.f32 %v1184_v21, %v1505_v24 }
 0x12f   : > { %v1734_v5 = vadd.f32 %v2959_v45, %v1695_v9  ;;  %v1696_v51 = vmax.f32 %v3207_v48, %v1664_v27 }
 0x130   : > { %v1732_v39 = vadd.f32 %v2959_v45, %v1693_v1  ;;  %v1694_v6 = vmax.f32 %v3208_v63, %v1662_v33  ;;  %v3210_v63 = vmax.f32 %v2792_v20, %v2796_v22 }
 0x131   : > { %v1766_v7 = vmax.f32 %v1734_v5, 0.0  ;;  %v1735_v15 = vadd.f32 %v2959_v45, %v1696_v51  ;;  %v3209_v51 = vmax.f32 %v2788_v18, %v2790_v19  ;;  %v3212_v19 = vmax.f32 %v2804_v26, %v2808_v28 }
 0x132   : > { %v2415_v29 = vpop.f32.mrb[36].mxu0  ;;  %v1764_v8 = vmax.f32 %v1732_v39, 0.0  ;;  %v1733_v9 = vadd.f32 %v2959_v45, %v1694_v6  ;;  %v2451_v10 = vpop.f32.mrb[36].mxu1 }
 0x133   : > { %v1197_v11 = vpop.f32.mrb[37].mxu0  ;;  %v2231_v12 = vpack.c.bf16 %v1766_v7, %v1766_v7  ;;  %v1767_v13 = vmax.f32 %v1735_v15, 0.0  ;;  %v1667_v14 = vmax.f32 %v2415_v29, %v2451_v10  ;;  %v1518_v16 = vpop.f32.mrb[37].mxu1  ;;  %v3211_v29 = vmax.f32 %v2798_v23, %v2802_v25 }
 0x134   : > { %v2416_v21 = vpop.f32.mrb[38].mxu0  ;;  %v2229_v24 = vpack.c.bf16 %v1764_v8, %v1764_v8  ;;  %v1765_v27 = vmax.f32 %v1733_v9, 0.0  ;;  %v1665_v33 = vmax.f32 %v1197_v11, %v1518_v16  ;;  %v2452_v36 = vpop.f32.mrb[38].mxu1 }
 0x135   : > { %v1200_v41 = vpop.f32.mrb[39].mxu0  ;;  %1927 = vst.msk [vmem:[%s2980_s22 + $0x8] sm:$0xf] %vm1924_vm3, %v2231_v12  ;;  %v2232_v48 = vpack.c.bf16 %v1767_v13, %v1767_v13  ;;  %v1699_v5 = vmax.f32 %v3209_v51, %v1667_v14  ;;  %v1668_v17 = vmax.f32 %v2416_v21, %v2452_v36  ;;  %v1521_v1 = vpop.f32.mrb[39].mxu1 }
 0x136   : > { %1925 = vst.msk [vmem:[%s2980_s22] sm:$0xf] %vm1924_vm3, %v2229_v24  ;;  %v2230_v39 = vpack.c.bf16 %v1765_v27, %v1765_v27  ;;  %v1697_v6 = vmax.f32 %v3210_v63, %v1665_v33  ;;  %v1666_v7 = vmax.f32 %v1200_v41, %v1521_v1 }
 0x137   : > { %1928 = vst.msk [vmem:[%s2980_s22 + $0xc] sm:$0xf] %vm1924_vm3, %v2232_v48  ;;  %v1738_v15 = vadd.f32 %v2959_v45, %v1699_v5  ;;  %v1700_v8 = vmax.f32 %v3211_v29, %v1668_v17  ;;  %v3213_v48 = vmax.f32 %v2812_v30, %v2814_v31  ;;  %v3216_v31 = vmax.f32 %v2828_v38, %v2832_v40 }
 0x138   : > { %1926 = vst.msk [vmem:[%s2980_s22 + $0x4] sm:$0xf] %vm1924_vm3, %v2230_v39  ;;  %v1736_v18 = vadd.f32 %v2959_v45, %v1697_v6  ;;  %v1698_v9 = vmax.f32 %v3212_v19, %v1666_v7  ;;  %v3214_v39 = vmax.f32 %v2816_v32, %v2820_v34 }
 0x139   : > { %v1770_v10 = vmax.f32 %v1738_v15, 0.0  ;;  %v1739_v20 = vadd.f32 %v2959_v45, %v1700_v8  ;;  %v3215_v15 = vmax.f32 %v2822_v35, %v2826_v37 }
 0x13a   : > { %v2419_v22 = vpop.f32.mrb[40].mxu0  ;;  %v1768_v11 = vmax.f32 %v1736_v18, 0.0  ;;  %v1737_v12 = vadd.f32 %v2959_v45, %v1698_v9  ;;  %v2455_v13 = vpop.f32.mrb[40].mxu1 }
 0x13b   : > { %v1213_v14 = vpop.f32.mrb[41].mxu0  ;;  %v2235_v23 = vpack.c.bf16 %v1770_v10, %v1770_v10  ;;  %v1771_v25 = vmax.f32 %v1739_v20, 0.0  ;;  %v1671_v16 = vmax.f32 %v2419_v22, %v2455_v13  ;;  %v1534_v21 = vpop.f32.mrb[41].mxu1 }
 0x13c   : > { %v2420_v24 = vpop.f32.mrb[42].mxu0  ;;  %v2233_v27 = vpack.c.bf16 %v1768_v11, %v1768_v11  ;;  %v1769_v26 = vmax.f32 %v1737_v12, 0.0  ;;  %v1669_v28 = vmax.f32 %v1213_v14, %v1534_v21  ;;  %v2456_v33 = vpop.f32.mrb[42].mxu1 }
 0x13d   : > { %v1216_v36 = vpop.f32.mrb[43].mxu0  ;;  %1931 = vst.msk [vmem:[%s2980_s22 + $0x18] sm:$0xf] %vm1924_vm3, %v2235_v23  ;;  %v2236_v41 = vpack.c.bf16 %v1771_v25, %v1771_v25  ;;  %v1703_v51 = vmax.f32 %v3213_v48, %v1671_v16  ;;  %v1672_v5 = vmax.f32 %v2420_v24, %v2456_v33  ;;  %v1537_v17 = vpop.f32.mrb[43].mxu1  ;;  %v3217_v16 = vmax.f32 %v2836_v42, %v2838_v43 }
 0x13e   : > { %1929 = vst.msk [vmem:[%s2980_s22 + $0x10] sm:$0xf] %vm1924_vm3, %v2233_v27  ;;  %v2234_v1 = vpack.c.bf16 %v1769_v26, %v1769_v26  ;;  %v1701_v63 = vmax.f32 %v3214_v39, %v1669_v28  ;;  %v1670_v6 = vmax.f32 %v1216_v36, %v1537_v17  ;;  %v3218_v28 = vmax.f32 %v2840_v44, %v2844_v46 }
 0x13f   : > { %1932 = vst.msk [vmem:[%s2980_s22 + $0x1c] sm:$0xf] %vm1924_vm3, %v2236_v41  ;;  %v1742_v7 = vadd.f32 %v2959_v45, %v1703_v51  ;;  %v1704_v29 = vmax.f32 %v3215_v15, %v1672_v5  ;;  %v3219_v48 = vmax.f32 %v2846_v47, %v2850_v49  ;;  %v3220_v43 = vmax.f32 %v2852_v50, %v2856_v52 }
 0x140   : > { %1930 = vst.msk [vmem:[%s2980_s22 + $0x14] sm:$0xf] %vm1924_vm3, %v2234_v1  ;;  %v1740_v30 = vadd.f32 %v2959_v45, %v1701_v63  ;;  %v1702_v8 = vmax.f32 %v3216_v31, %v1670_v6 }
 0x141   : > { %v1774_v18 = vmax.f32 %v1742_v7, 0.0  ;;  %v1743_v32 = vadd.f32 %v2959_v45, %v1704_v29 }
 0x142   : > { %v2423_v34 = vpop.f32.mrb[44].mxu0  ;;  %v1772_v19 = vmax.f32 %v1740_v30, 0.0  ;;  %v1741_v9 = vadd.f32 %v2959_v45, %v1702_v8  ;;  %v2459_v10 = vpop.f32.mrb[44].mxu1 }
 0x143   : > { %v1229_v20 = vpop.f32.mrb[45].mxu0  ;;  %v2239_v35 = vpack.c.bf16 %v1774_v18, %v1774_v18  ;;  %v1775_v37 = vmax.f32 %v1743_v32, 0.0  ;;  %v1675_v22 = vmax.f32 %v2423_v34, %v2459_v10  ;;  %v1550_v11 = vpop.f32.mrb[45].mxu1  ;;  %v3221_v32 = vmax.f32 %v2860_v54, %v2862_v55 }
 0x144   : > { %v2424_v12 = vpop.f32.mrb[46].mxu0  ;;  %v2237_v13 = vpack.c.bf16 %v1772_v19, %v1772_v19  ;;  %v1773_v38 = vmax.f32 %v1741_v9, 0.0  ;;  %v1673_v40 = vmax.f32 %v1229_v20, %v1550_v11  ;;  %v2460_v14 = vpop.f32.mrb[46].mxu1  ;;  %v3222_v20 = vmax.f32 %v2864_v56, %v2868_v58 }
 0x145   : > { %v1232_v23 = vpop.f32.mrb[47].mxu0  ;;  %1935 = vst.msk [vmem:[%s2980_s22 + $0x28] sm:$0xf] %vm1924_vm3, %v2239_v35  ;;  %v2240_v25 = vpack.c.bf16 %v1775_v37, %v1775_v37  ;;  %v1707_v21 = vmax.f32 %v3217_v16, %v1675_v22  ;;  %v1676_v24 = vmax.f32 %v2424_v12, %v2460_v14  ;;  %v1553_v27 = vpop.f32.mrb[47].mxu1  ;;  %v3223_v11 = vmax.f32 %v2870_v59, %v2874_v61 }
 0x146   : > { %1933 = vst.msk [vmem:[%s2980_s22 + $0x20] sm:$0xf] %vm1924_vm3, %v2237_v13  ;;  %v2238_v26 = vpack.c.bf16 %v1773_v38, %v1773_v38  ;;  %v1705_v33 = vmax.f32 %v3218_v28, %v1673_v40  ;;  %v1674_v36 = vmax.f32 %v1232_v23, %v1553_v27  ;;  %v3224_v55 = vmax.f32 %v2876_v62, %v2880_v0 }
 0x147   : > { %1936 = vst.msk [vmem:[%s2980_s22 + $0x2c] sm:$0xf] %vm1924_vm3, %v2240_v25  ;;  %v1746_v41 = vadd.f32 %v2959_v45, %v1707_v21  ;;  %v1708_v51 = vmax.f32 %v3219_v48, %v1676_v24 }
 0x148   : > { %1934 = vst.msk [vmem:[%s2980_s22 + $0x24] sm:$0xf] %vm1924_vm3, %v2238_v26  ;;  %v1744_v42 = vadd.f32 %v2959_v45, %v1705_v33  ;;  %v1706_v5 = vmax.f32 %v3220_v43, %v1674_v36  ;;  %v3225_v36 = vmax.f32 %v2884_v2, %v2886_v3  ;;  %v3226_v43 = vmax.f32 %v2888_v4, %v2892_v60  ;;  %v3228_v3 = vld [vmem:[#allocation2_spill] sm:$0xff] }
 0x149   : > { %v1778_v17 = vmax.f32 %v1746_v41, 0.0  ;;  %v1747_v44 = vadd.f32 %v2959_v45, %v1708_v51 }
 0x14a   : > { %v2427_v46 = vpop.f32.mrb[48].mxu0  ;;  %v1776_v1 = vmax.f32 %v1744_v42, 0.0  ;;  %v1745_v39 = vadd.f32 %v2959_v45, %v1706_v5  ;;  %v2463_v63 = vpop.f32.mrb[48].mxu1 }
 0x14b   : > { %v1245_v6 = vpop.f32.mrb[49].mxu0  ;;  %v2243_v47 = vpack.c.bf16 %v1778_v17, %v1778_v17  ;;  %v1779_v49 = vmax.f32 %v1747_v44, 0.0  ;;  %v1679_v7 = vmax.f32 %v2427_v46, %v2463_v63  ;;  %v1566_v15 = vpop.f32.mrb[49].mxu1  ;;  %v3227_v46 = vmax.f32 %v2894_v57, %v2898_v53 }
 0x14c   : > { %v2428_v29 = vpop.f32.mrb[50].mxu0  ;;  %v2241_v30 = vpack.c.bf16 %v1776_v1, %v1776_v1  ;;  %v1777_v50 = vmax.f32 %v1745_v39, 0.0  ;;  %v1677_v52 = vmax.f32 %v1245_v6, %v1566_v15  ;;  %v2464_v31 = vpop.f32.mrb[50].mxu1  ;;  %v3229_v39 = vld [vmem:[#allocation3_spill] sm:$0xff] }
 0x14d   : > { %v1248_v8 = vpop.f32.mrb[51].mxu0  ;;  %1939 = vst.msk [vmem:[%s2980_s22 + $0x38] sm:$0xf] %vm1924_vm3, %v2243_v47  ;;  %v2244_v18 = vpack.c.bf16 %v1779_v49, %v1779_v49  ;;  %v1711_v34 = vmax.f32 %v3221_v32, %v1679_v7  ;;  %v1680_v19 = vmax.f32 %v2428_v29, %v2464_v31  ;;  %v1569_v9 = vpop.f32.mrb[51].mxu1  ;;  %v3230_v63 = vmax.f32 %v3228_v3, %v3229_v39  ;;  %v3244_v3 = vld [vmem:[#allocation13_spill] sm:$0xff] }
 0x14e   : > { %1937 = vst.msk [vmem:[%s2980_s22 + $0x30] sm:$0xf] %vm1924_vm3, %v2241_v30  ;;  %v2242_v10 = vpack.c.bf16 %v1777_v50, %v1777_v50  ;;  %v1709_v35 = vmax.f32 %v3222_v20, %v1677_v52  ;;  %v1678_v37 = vmax.f32 %v1248_v8, %v1569_v9  ;;  %v3231_v9 = vld [vmem:[#allocation4_spill] sm:$0xff] }
 0x14f   : > { %1940 = vst.msk [vmem:[%s2980_s22 + $0x3c] sm:$0xf] %vm1924_vm3, %v2244_v18  ;;  %v1750_v22 = vadd.f32 %v2959_v45, %v1711_v34  ;;  %v1712_v12 = vmax.f32 %v3223_v11, %v1680_v19 }
 0x150   : > { %1938 = vst.msk [vmem:[%s2980_s22 + $0x34] sm:$0xf] %vm1924_vm3, %v2242_v10  ;;  %v1748_v54 = vadd.f32 %v2959_v45, %v1709_v35  ;;  %v1710_v13 = vmax.f32 %v3224_v55, %v1678_v37  ;;  %v3232_v10 = vld [vmem:[#allocation5_spill] sm:$0xff] }
 0x151   : > { %v1782_v38 = vmax.f32 %v1750_v22, 0.0  ;;  %v1751_v56 = vadd.f32 %v2959_v45, %v1712_v12  ;;  %v3233_v20 = vmax.f32 %v3231_v9, %v3232_v10  ;;  %v3234_v12 = vld [vmem:[#allocation6_spill] sm:$0xff] }
 0x152   : > { %v2431_v58 = vpop.f32.mrb[52].mxu0  ;;  %v1780_v40 = vmax.f32 %v1748_v54, 0.0  ;;  %v1749_v14 = vadd.f32 %v2959_v45, %v1710_v13  ;;  %v2467_v23 = vpop.f32.mrb[52].mxu1  ;;  %v3235_v54 = vld [vmem:[#allocation7_spill] sm:$0xff] }
 0x153   : > { %v1261_v25 = vpop.f32.mrb[53].mxu0  ;;  %v2247_v59 = vpack.c.bf16 %v1782_v38, %v1782_v38  ;;  %v1783_v61 = vmax.f32 %v1751_v56, 0.0  ;;  %v1683_v16 = vmax.f32 %v2431_v58, %v2467_v23  ;;  %v1582_v21 = vpop.f32.mrb[53].mxu1  ;;  %v3236_v55 = vmax.f32 %v3234_v12, %v3235_v54  ;;  %v3237_v58 = vld [vmem:[#allocation8_spill] sm:$0xff] }
 0x154   : > { %v2432_v24 = vpop.f32.mrb[54].mxu0  ;;  %v2245_v27 = vpack.c.bf16 %v1780_v40, %v1780_v40  ;;  %v1781_v62 = vmax.f32 %v1749_v14, 0.0  ;;  %v1681_v0 = vmax.f32 %v1261_v25, %v1582_v21  ;;  %v2468_v26 = vpop.f32.mrb[54].mxu1  ;;  %v3238_v40 = vld [vmem:[#allocation9_spill] sm:$0xff] }
 0x155   : > { %v1264_v28 = vpop.f32.mrb[55].mxu0  ;;  %1943 = vst.msk [vmem:[%s2980_s22 + $0x48] sm:$0xf] %vm1924_vm3, %v2247_v59  ;;  %v2248_v33 = vpack.c.bf16 %v1783_v61, %v1783_v61  ;;  %v1715_v41 = vmax.f32 %v3225_v36, %v1683_v16  ;;  %v1684_v48 = vmax.f32 %v2432_v24, %v2468_v26  ;;  %v1585_v51 = vpop.f32.mrb[55].mxu1  ;;  %v3239_v14 = vmax.f32 %v3237_v58, %v3238_v40  ;;  %v3240_v59 = vld [vmem:[#allocation10_spill] sm:$0xff]  ;;  %v3241_v61 = vld [vmem:[#allocation11_spill] sm:$0xff] }
 0x156   : > { %1941 = vst.msk [vmem:[%s2980_s22 + $0x40] sm:$0xf] %vm1924_vm3, %v2245_v27  ;;  %v2246_v42 = vpack.c.bf16 %v1781_v62, %v1781_v62  ;;  %v1713_v5 = vmax.f32 %v3226_v43, %v1681_v0  ;;  %v1682_v17 = vmax.f32 %v1264_v28, %v1585_v51  ;;  %v3242_v16 = vmax.f32 %v3240_v59, %v3241_v61 }
 0x157   : > { %1944 = vst.msk [vmem:[%s2980_s22 + $0x4c] sm:$0xf] %vm1924_vm3, %v2248_v33  ;;  %v1754_v44 = vadd.f32 %v2959_v45, %v1715_v41  ;;  %v1716_v1 = vmax.f32 %v3227_v46, %v1684_v48 }
 0x158   : > { %1942 = vst.msk [vmem:[%s2980_s22 + $0x44] sm:$0xf] %vm1924_vm3, %v2246_v42  ;;  %v1752_v2 = vadd.f32 %v2959_v45, %v1713_v5  ;;  %v1714_v6 = vmax.f32 %v3230_v63, %v1682_v17 }
 0x159   : > { %v1786_v47 = vmax.f32 %v1754_v44, 0.0  ;;  %v1755_v60 = vadd.f32 %v2959_v45, %v1716_v1 }
 0x15a   : > { %v2435_v4 = vpop.f32.mrb[56].mxu0  ;;  %v1784_v49 = vmax.f32 %v1752_v2, 0.0  ;;  %v1753_v7 = vadd.f32 %v2959_v45, %v1714_v6  ;;  %v2471_v15 = vpop.f32.mrb[56].mxu1  ;;  %v3243_v2 = vld [vmem:[#allocation12_spill] sm:$0xff] }
 0x15b   : > { %v1277_v29 = vpop.f32.mrb[57].mxu0  ;;  %v2251_v53 = vpack.c.bf16 %v1786_v47, %v1786_v47  ;;  %v1787_v57 = vmax.f32 %v1755_v60, 0.0  ;;  %v1687_v30 = vmax.f32 %v2435_v4, %v2471_v15  ;;  %v1598_v50 = vpop.f32.mrb[57].mxu1  ;;  %v3245_v39 = vmax.f32 %v3243_v2, %v3244_v3  ;;  %v3246_v4 = vld [vmem:[#allocation14_spill] sm:$0xff] }
 0x15c   : > { %v2436_v52 = vpop.f32.mrb[58].mxu0  ;;  %v2249_v31 = vpack.c.bf16 %v1784_v49, %v1784_v49  ;;  %v1785_v8 = vmax.f32 %v1753_v7, 0.0  ;;  %v1685_v18 = vmax.f32 %v1277_v29, %v1598_v50  ;;  %v2472_v32 = vpop.f32.mrb[58].mxu1  ;;  %v3247_v49 = vld [vmem:[#allocation15_spill] sm:$0xff] }
 0x15d   : > { %v1280_v34 = vpop.f32.mrb[59].mxu0  ;;  %1947 = vst.msk [vmem:[%s2980_s22 + $0x58] sm:$0xf] %vm1924_vm3, %v2251_v53  ;;  %v2252_v19 = vpack.c.bf16 %v1787_v57, %v1787_v57  ;;  %v1719_v35 = vmax.f32 %v3233_v20, %v1687_v30  ;;  %v1688_v37 = vmax.f32 %v2436_v52, %v2472_v32  ;;  %v1601_v22 = vpop.f32.mrb[59].mxu1  ;;  %v3248_v7 = vmax.f32 %v3246_v4, %v3247_v49  ;;  %v3249_v57 = vld [vmem:[#allocation16_spill] sm:$0xff]  ;;  %v3250_v30 = vld [vmem:[#allocation17_spill] sm:$0xff] }
 0x15e   : > { %1945 = vst.msk [vmem:[%s2980_s22 + $0x50] sm:$0xf] %vm1924_vm3, %v2249_v31  ;;  %v2250_v11 = vpack.c.bf16 %v1785_v8, %v1785_v8  ;;  %v1717_v13 = vmax.f32 %v3236_v55, %v1685_v18  ;;  %v1686_v38 = vmax.f32 %v1280_v34, %v1601_v22  ;;  %v3251_v50 = vmax.f32 %v3249_v57, %v3250_v30  ;;  %v3252_v8 = vld [vmem:[#allocation18_spill] sm:$0xff]  ;;  %v3253_v18 = vld [vmem:[#allocation19_spill] sm:$0xff] }
 0x15f   : > { %1948 = vst.msk [vmem:[%s2980_s22 + $0x5c] sm:$0xf] %vm1924_vm3, %v2252_v19  ;;  %v1758_v56 = vadd.f32 %v2959_v45, %v1719_v35  ;;  %v1720_v23 = vmax.f32 %v3239_v14, %v1688_v37  ;;  %v3254_v32 = vmax.f32 %v3252_v8, %v3253_v18 }
 0x160   : > { %1946 = vst.msk [vmem:[%s2980_s22 + $0x54] sm:$0xf] %vm1924_vm3, %v2250_v11  ;;  %v1756_v25 = vadd.f32 %v2959_v45, %v1717_v13  ;;  %v1718_v21 = vmax.f32 %v3242_v16, %v1686_v38 }
 0x161   : > { %v1790_v24 = vmax.f32 %v1758_v56, 0.0  ;;  %v1759_v27 = vadd.f32 %v2959_v45, %v1720_v23 }
 0x162   : > { %v2439_v62 = vpop.f32.mrb[60].mxu0  ;;  %v1788_v0 = vmax.f32 %v1756_v25, 0.0  ;;  %v1757_v26 = vadd.f32 %v2959_v45, %v1718_v21  ;;  %v2475_v28 = vpop.f32.mrb[60].mxu1 }
 0x163   : > { %v1293_v33 = vpop.f32.mrb[61].mxu0  ;;  %v2255_v36 = vpack.c.bf16 %v1790_v24, %v1790_v24  ;;  %v1791_v41 = vmax.f32 %v1759_v27, 0.0  ;;  %v1691_v48 = vmax.f32 %v2439_v62, %v2475_v28  ;;  %v1614_v51 = vpop.f32.mrb[61].mxu1 }
 0x164   : > { %v2440_v42 = vpop.f32.mrb[62].mxu0  ;;  %v2253_v43 = vpack.c.bf16 %v1788_v0, %v1788_v0  ;;  %v1789_v5 = vmax.f32 %v1757_v26, 0.0  ;;  %v1689_v17 = vmax.f32 %v1293_v33, %v1614_v51  ;;  %v2476_v44 = vpop.f32.mrb[62].mxu1 }
 0x165   : > { %v1296_v46 = vpop.f32.mrb[63].mxu0  ;;  %1951 = vst.msk [vmem:[%s2980_s22 + $0x68] sm:$0xf] %vm1924_vm3, %v2255_v36  ;;  %v2256_v1 = vpack.c.bf16 %v1791_v41, %v1791_v41  ;;  %v1723_v63 = vmax.f32 %v3245_v39, %v1691_v48  ;;  %v1692_v6 = vmax.f32 %v2440_v42, %v2476_v44  ;;  %v1617_v47 = vpop.f32.mrb[63].mxu1 }
 0x166   : > { %1949 = vst.msk [vmem:[%s2980_s22 + $0x60] sm:$0xf] %vm1924_vm3, %v2253_v43  ;;  %v2254_v60 = vpack.c.bf16 %v1789_v5, %v1789_v5  ;;  %v1721_v15 = vmax.f32 %v3248_v7, %v1689_v17  ;;  %v1690_v29 = vmax.f32 %v1296_v46, %v1617_v47 }
 0x167   : > { %1952 = vst.msk [vmem:[%s2980_s22 + $0x6c] sm:$0xf] %vm1924_vm3, %v2256_v1  ;;  %v1762_v53 = vadd.f32 %v2959_v45, %v1723_v63  ;;  %v1724_v52 = vmax.f32 %v3251_v50, %v1692_v6 }
 0x168   : > { %1950 = vst.msk [vmem:[%s2980_s22 + $0x64] sm:$0xf] %vm1924_vm3, %v2254_v60  ;;  %v1760_v31 = vadd.f32 %v2959_v45, %v1721_v15  ;;  %v1722_v34 = vmax.f32 %v3254_v32, %v1690_v29 }
 0x169   : > { %v1794_v19 = vmax.f32 %v1762_v53, 0.0  ;;  %v1763_v9 = vadd.f32 %v2959_v45, %v1724_v52 }
 0x16a   : > { %v1792_v10 = vmax.f32 %v1760_v31, 0.0  ;;  %v1761_v20 = vadd.f32 %v2959_v45, %v1722_v34 }
 0x16b   : > { %v2259_v35 = vpack.c.bf16 %v1794_v19, %v1794_v19  ;;  %v1795_v37 = vmax.f32 %v1763_v9, 0.0 }
 0x16c   : > { %v2257_v22 = vpack.c.bf16 %v1792_v10, %v1792_v10  ;;  %v1793_v11 = vmax.f32 %v1761_v20, 0.0 }
 0x16d   : > { %1955 = vst.msk [vmem:[%s2980_s22 + $0x78] sm:$0xf] %vm1924_vm3, %v2259_v35  ;;  %v2260_v12 = vpack.c.bf16 %v1795_v37, %v1795_v37 }
 0x16e   : > { %1953 = vst.msk [vmem:[%s2980_s22 + $0x70] sm:$0xf] %vm1924_vm3, %v2257_v22  ;;  %v2258_v54 = vpack.c.bf16 %v1793_v11, %v1793_v11 }
 0x16f   : > { %1956 = vst.msk [vmem:[%s2980_s22 + $0x7c] sm:$0xf] %vm1924_vm3, %v2260_v12 }
 0x170   : > { %1954 = vst.msk [vmem:[%s2980_s22 + $0x74] sm:$0xf] %vm1924_vm3, %v2258_v54 }
 0x171 PF: > { %s16_s21 = sadd.s32 1, %s2558_s21  }
 0x172   : > { %p13_p4 = scmp.ge.s32.totalorder %s16_s21, 4  }
 0x174   :  { %15 = sbr.rel (!%p13_p4) target bundleno = 1 (0x1), region = 83 }

// kernel: cifar10net_forward.5
= control target key start
LH: loop header
LB: loop body
LE: loop exit
PB: predicated region body
PF: predicated region fallthrough
CT: control target
= control target key end

     0   :  { %s2013_s21 = smov 0   ;;  %s2417_s0 = inlined_call_operand.vmem [shape: bf16[128,288], index: 0, kind: input, shape index: {}]   ;;  %s2418_s1 = inlined_call_operand.vmem [shape: bf16[128,288], index: 1, kind: input, shape index: {}]   ;;  %s2419_s2 = inlined_call_operand.vmem [shape: bf16[128,288], index: 2, kind: input, shape index: {}]   ;;  %s2420_s3 = inlined_call_operand.vmem [shape: bf16[128,288], index: 3, kind: input, shape index: {}]   ;;  %s2421_s4 = inlined_call_operand.vmem [shape: bf16[288,64], index: 4, kind: input, shape index: {}]   ;;  %s2422_s5 = inlined_call_operand.vmem [shape: f32[1,64], index: 5, kind: input, shape index: {}]   ;;  %s2423_s6 = inlined_call_operand.vmem [shape: bf16[128,64], index: 6, kind: output, shape index: {}]  }
   0x1 LB: > { %s1531_s22 = sadd.s32 4294967295, %s1976_s21   ;;  %p1535_p0 = scmp.ge.s32.totalorder %s1976_s21, 1  ;;  %s1976_s21 = sphi %s2013_s21, %s16_s21  }
   0x2   : > { %p250_p1 = scmp.lt.s32.totalorder %s1976_s21, 3 }
   0x4   : > { %p251_p2 = pnand %p1535_p0, %p250_p1 }
   0x5   : > { %v2024_v0 = vld [vmem:[%s2421_s4 + $0x40] sm:$0xff] (!%p251_p2)   ;;  %s1536_s25 = sshll.u32 (!%p251_p2), %s1531_s22, 3  ;;  %v2036_v2 = vld [vmem:[%s2421_s4 + $0x48] sm:$0xff] (!%p251_p2)   ;;  %v2050_v4 = vld [vmem:[%s2421_s4 + $0x50] sm:$0xff] (!%p251_p2)   ;;  %vm554_vm0 = vcmask (!%p251_p2), 261120   ;;  %vm1430_vm1 = vcmask (!%p251_p2), 519168  }
   0x6   : > { %254 = sbr.rel (%p251_p2) target bundleno = 357 (0x165), region = 44  ;;  %v2029_v1 = vld [vmem:[%s2421_s4] sm:$0xff] (!%p251_p2)   ;;  %1647 = vmatprep.subr.bf16.mxu0 (!%p251_p2), %v2024_v0  ;;  %1693 = vmatprep.subr.bf16.mxu1 (!%p251_p2), %v2024_v0  ;;  %p300_p3 = scmp.lt.s32.totalorder (!%p251_p2), %s1536_s25, 15  ;;  %v2043_v3 = vld [vmem:[%s2421_s4 + $0x8] sm:$0xff] (!%p251_p2)   ;;  %v2059_v5 = vld [vmem:[%s2421_s4 + $0x10] sm:$0xff] (!%p251_p2)  }
   0x7   : > { %1648 = vmatpush3.bf16.msra.mxu0 (!%p251_p2), %v2029_v1  ;;  %1694 = vmatpush3.bf16.msra.mxu1 (!%p251_p2), %v2029_v1  ;;  %v2066_v6 = vld [vmem:[%s2421_s4 + $0x58] sm:$0xff] (!%p251_p2)   ;;  %v2083_v8 = vld [vmem:[%s2421_s4 + $0x60] sm:$0xff] (!%p251_p2)   ;;  %v2109_v10 = vld [vmem:[%s2421_s4 + $0x68] sm:$0xff] (!%p251_p2)  }
   0x8   : > { %1649 = vmatprep.subr.bf16.mxu0 (!%p251_p2), %v2036_v2  ;;  %1695 = vmatprep.subr.bf16.mxu1 (!%p251_p2), %v2036_v2  ;;  %v2076_v7 = vld [vmem:[%s2421_s4 + $0x18] sm:$0xff] (!%p251_p2)   ;;  %v2096_v9 = vld [vmem:[%s2421_s4 + $0x20] sm:$0xff] (!%p251_p2)   ;;  %v2118_v13 = vld [vmem:[%s2421_s4 + $0x28] sm:$0xff] (!%p251_p2)  }
   0x9   : > { %v2125_v14 = vld [vmem:[%s2421_s4 + $0x70] sm:$0xff] (!%p251_p2)   ;;  %v2139_v16 = vld [vmem:[%s2421_s4 + $0x78] sm:$0xff] (!%p251_p2)   ;;  %v2153_v18 = vld [vmem:[%s2421_s4 + $0x80] sm:$0xff] (!%p251_p2)  }
   0xa   : > { %v2132_v15 = vld [vmem:[%s2421_s4 + $0x30] sm:$0xff] (!%p251_p2)   ;;  %v2146_v17 = vld [vmem:[%s2421_s4 + $0x38] sm:$0xff] (!%p251_p2)   ;;  %v2172_v23 = vld [vmem:[%s2421_s4 + $0x88] sm:$0xff] (!%p251_p2)  }
   0xb   : > { %1650 = vmatpush3.bf16.msra.mxu0 (!%p251_p2), %v2043_v3  ;;  %1696 = vmatpush3.bf16.msra.mxu1 (!%p251_p2), %v2043_v3 }
   0xc   : > { %1651 = vmatprep.subr.bf16.mxu0 (!%p251_p2), %v2050_v4  ;;  %1697 = vmatprep.subr.bf16.mxu1 (!%p251_p2), %v2050_v4 }
   0xd   : > { %s2425_s25 = smov (!%p300_p3, %s1536_s25), 15 }
   0xe   : > { %s2069_s14 = smul.u32 12, %s2425_s25 }
   0xf   : > { %1652 = vmatpush3.bf16.msra.mxu0 %v2059_v5  ;;  %1698 = vmatpush3.bf16.msra.mxu1 %v2059_v5 }
  0x10   : > { %1653 = vmatprep.subr.bf16.mxu0 %v2066_v6  ;;  %1699 = vmatprep.subr.bf16.mxu1 %v2066_v6  ;;  %s2089_s22 = scalar_lea.vmem %s2417_s0, %s2069_s14  ;;  %s2102_s28 = scalar_lea.vmem %s2418_s1, %s2069_s14 }
  0x11   : > { %v1906_v11 = vld [vmem:[%s2089_s22 + $0x4] ss:$12 sps:$4 sm:$0xff]   ;;  %s2159_s24 = scalar_lea.vmem %s2419_s2, %s2069_s14  ;;  %v1904_v19 = vld [vmem:[%s2089_s22] ss:$12 sps:$4 sm:$0xff]   ;;  %v1911_v21 = vld [vmem:[%s2089_s22 + $0x1c] ss:$12 sps:$4 sm:$0xff]   ;;  %s2190_s7 = scalar_lea.vmem %s2420_s3, %s2069_s14 }
  0x12   : > { %v1909_v12 = vld [vmem:[%s2102_s28 + $0x4] ss:$12 sps:$4 sm:$0xff]   ;;  %599 = vmatprep.mubr.bf16.mxu0 %v1906_v11  ;;  %v1907_v20 = vld [vmem:[%s2102_s28] ss:$12 sps:$4 sm:$0xff]   ;;  %v1913_v22 = vld [vmem:[%s2102_s28 + $0x1c] ss:$12 sps:$4 sm:$0xff]  }
  0x13   : > { %1654 = vmatpush3.bf16.msra.mxu0 %v2076_v7  ;;  %1700 = vmatpush3.bf16.msra.mxu1 %v2076_v7  ;;  %v1915_v24 = vld [vmem:[%s2089_s22 + $0x18] ss:$12 sps:$4 sm:$0xff]   ;;  %v1917_v26 = vld [vmem:[%s2089_s22 + $0x34] ss:$12 sps:$4 sm:$0xff]   ;;  %v1921_v28 = vld [vmem:[%s2089_s22 + $0x30] ss:$12 sps:$4 sm:$0xff]  }
  0x14   : > { %1655 = vmatprep.subr.bf16.mxu0 %v2083_v8  ;;  %1701 = vmatprep.subr.bf16.mxu1 %v2083_v8  ;;  %v1916_v25 = vld [vmem:[%s2102_s28 + $0x18] ss:$12 sps:$4 sm:$0xff]   ;;  %v1919_v27 = vld [vmem:[%s2102_s28 + $0x34] ss:$12 sps:$4 sm:$0xff]   ;;  %v1922_v29 = vld [vmem:[%s2102_s28 + $0x30] ss:$12 sps:$4 sm:$0xff]  }
  0x15   : > { %817 = vmatprep.mubr.bf16.mxu1 %v1909_v12  ;;  %v1924_v30 = vld [vmem:[%s2089_s22 + $0x4c] ss:$12 sps:$4 sm:$0xff]   ;;  %v1928_v32 = vld [vmem:[%s2089_s22 + $0x48] ss:$12 sps:$4 sm:$0xff]   ;;  %v1933_v35 = vld [vmem:[%s2159_s24 + $0x4] ss:$12 sps:$4 sm:$0xff]  }
  0x16   : > { %v1926_v31 = vld [vmem:[%s2102_s28 + $0x4c] ss:$12 sps:$4 sm:$0xff]   ;;  %v1929_v33 = vld [vmem:[%s2102_s28 + $0x48] ss:$12 sps:$4 sm:$0xff]   ;;  %v1938_v40 = vld [vmem:[%s2089_s22 + $0x50] ss:$12 sps:$4 sm:$0xff]  }
  0x17   : > { %1656 = vmatpush3.bf16.msra.mxu0 %v2096_v9  ;;  %1702 = vmatpush3.bf16.msra.mxu1 %v2096_v9  ;;  %v1930_v34 = vld [vmem:[%s2089_s22 + $0x8] ss:$12 sps:$4 sm:$0xff]   ;;  %v1931_v36 = vld [vmem:[%s2159_s24] ss:$12 sps:$4 sm:$0xff]   ;;  %v1935_v38 = vld [vmem:[%s2089_s22 + $0x38] ss:$12 sps:$4 sm:$0xff]  }
  0x18   : > { %1657 = vmatprep.subr.bf16.mxu0 %v2109_v10  ;;  %1703 = vmatprep.subr.bf16.mxu1 %v2109_v10  ;;  %v1934_v37 = vld [vmem:[%s2089_s22 + $0x20] ss:$12 sps:$4 sm:$0xff]   ;;  %v1936_v39 = vld [vmem:[%s2159_s24 + $0x1c] ss:$12 sps:$4 sm:$0xff]   ;;  %v1939_v41 = vld [vmem:[%s2159_s24 + $0x18] ss:$12 sps:$4 sm:$0xff]  }
  0x19   : > { %v1940_v42 = vld [vmem:[%s2102_s28 + $0x8] ss:$12 sps:$4 sm:$0xff]   ;;  %v1943_v44 = vld [vmem:[%s2102_s28 + $0x20] ss:$12 sps:$4 sm:$0xff]   ;;  %v1944_v45 = vld [vmem:[%s2159_s24 + $0x30] ss:$12 sps:$4 sm:$0xff]  }
  0x1a   : > { %v1941_v43 = vld [vmem:[%s2159_s24 + $0x34] ss:$12 sps:$4 sm:$0xff]   ;;  %v1945_v46 = vld [vmem:[%s2102_s28 + $0x38] ss:$12 sps:$4 sm:$0xff]   ;;  %v1948_v48 = vld [vmem:[%s2102_s28 + $0x50] ss:$12 sps:$4 sm:$0xff]  }
  0x1b   : > { %1658 = vmatpush3.bf16.msra.mxu0 %v2118_v13  ;;  %1704 = vmatpush3.bf16.msra.mxu1 %v2118_v13  ;;  %v1946_v47 = vld [vmem:[%s2159_s24 + $0x4c] ss:$12 sps:$4 sm:$0xff]   ;;  %v1949_v49 = vld [vmem:[%s2159_s24 + $0x48] ss:$12 sps:$4 sm:$0xff]   ;;  %v1953_v51 = vld [vmem:[%s2190_s7 + $0x4] ss:$12 sps:$4 sm:$0xff]  }
  0x1c   : > { %1659 = vmatprep.subr.bf16.mxu0 %v2125_v14  ;;  %1705 = vmatprep.subr.bf16.mxu1 %v2125_v14  ;;  %v1950_v50 = vld [vmem:[%s2159_s24 + $0x8] ss:$12 sps:$4 sm:$0xff]   ;;  %v1951_v52 = vld [vmem:[%s2190_s7] ss:$12 sps:$4 sm:$0xff]   ;;  %v1955_v54 = vld [vmem:[%s2159_s24 + $0x38] ss:$12 sps:$4 sm:$0xff]  }
  0x1d   : > { %v1954_v53 = vld [vmem:[%s2159_s24 + $0x20] ss:$12 sps:$4 sm:$0xff]   ;;  %v1956_v55 = vld [vmem:[%s2190_s7 + $0x1c] ss:$12 sps:$4 sm:$0xff]   ;;  %v1959_v57 = vld [vmem:[%s2190_s7 + $0x18] ss:$12 sps:$4 sm:$0xff]  }
  0x1e   : > { %v1958_v56 = vld [vmem:[%s2159_s24 + $0x50] ss:$12 sps:$4 sm:$0xff]   ;;  %v1960_v58 = vld [vmem:[%s2190_s7 + $0x34] ss:$12 sps:$4 sm:$0xff]   ;;  %v1965_v62 = vld [vmem:[%s2190_s7 + $0x4c] ss:$12 sps:$4 sm:$0xff]  }
  0x1f   : > { %1660 = vmatpush3.bf16.msra.mxu0 %v2132_v15  ;;  %1706 = vmatpush3.bf16.msra.mxu1 %v2132_v15  ;;  %v1962_v59 = vld [vmem:[%s2190_s7 + $0x8] ss:$12 sps:$4 sm:$0xff]   ;;  %v1963_v60 = vld [vmem:[%s2190_s7 + $0x30] ss:$12 sps:$4 sm:$0xff]   ;;  %v1964_v61 = vld [vmem:[%s2190_s7 + $0x20] ss:$12 sps:$4 sm:$0xff]  }
  0x20   : > { %1661 = vmatprep.subr.bf16.mxu0 %v2139_v16  ;;  %1707 = vmatprep.subr.bf16.mxu1 %v2139_v16  ;;  %v1967_v63 = vld [vmem:[%s2190_s7 + $0x38] ss:$12 sps:$4 sm:$0xff]   ;;  %s1545_s28 = sshll.u32 %s2425_s25, 2 }
  0x21   : > { %s2380_s25 = scalar_lea.vmem %s2423_s6, %s1545_s28 }
  0x23   : > { %1662 = vmatpush3.bf16.msra.mxu0 %v2146_v17  ;;  %1708 = vmatpush3.bf16.msra.mxu1 %v2146_v17 }
  0x24   : > { %1739 = vmatprep.subr.bf16.mxu1 %v2024_v0  ;;  %1831 = vmatprep.subr.bf16.mxu0 %v2153_v18 }
  0x26   : > { %600 = vmatmul.mubr.bf16.vlgmr.msra.gmra.mrb[0].mxu0 %v1904_v19  ;;  %818 = vmatmul.mubr.bf16.vlgmr.msra.gmra.mrb[0].mxu1 %v1907_v20 }
  0x27   : > { %1740 = vmatpush3.bf16.msra.mxu1 %v2029_v1  ;;  %1832 = vmatpush3.bf16.msra.mxu0 %v2153_v18 }
  0x28   : > { %1741 = vmatprep.subr.bf16.mxu1 %v2036_v2  ;;  %607 = vmatprep.mubr.bf16.mxu0 %v1911_v21 }
  0x29   : > { %825 = vmatprep.mubr.bf16.mxu1 %v1913_v22  ;;  %1833 = vmatprep.subr.bf16.mxu0 %v2172_v23 }
  0x2b   : > { %1742 = vmatpush3.bf16.msra.mxu1 %v2043_v3  ;;  %1834 = vmatpush3.bf16.msra.mxu0 %v2172_v23 }
  0x2c   : > { %1743 = vmatprep.subr.bf16.mxu1 %v2050_v4  ;;  %1843 = vmatprep.subr.bf16.mxu0 %v2153_v18 }
  0x2e   : > { %608 = vmatmul.mubr.bf16.gmra.mrb[4].mxu0 %v1915_v24  ;;  %826 = vmatmul.mubr.bf16.gmra.mrb[4].mxu1 %v1916_v25 }
  0x2f   : > { %1744 = vmatpush3.bf16.msra.mxu1 %v2059_v5  ;;  %615 = vmatprep.mubr.bf16.mxu0 %v1917_v26 }
  0x30   : > { %1745 = vmatprep.subr.bf16.mxu1 %v2066_v6  ;;  %833 = vmatprep.mubr.bf16.mxu1 %v1919_v27 }
  0x33   : > { %1746 = vmatpush3.bf16.msra.mxu1 %v2076_v7 }
  0x34   : > { %1747 = vmatprep.subr.bf16.mxu1 %v2083_v8 }
  0x36   : > { %616 = vmatmul.mubr.bf16.gmra.mrb[8].mxu0 %v1921_v28  ;;  %834 = vmatmul.mubr.bf16.gmra.mrb[8].mxu1 %v1922_v29 }
  0x37   : > { %1748 = vmatpush3.bf16.msra.mxu1 %v2096_v9  ;;  %623 = vmatprep.mubr.bf16.mxu0 %v1924_v30 }
  0x38   : > { %1749 = vmatprep.subr.bf16.mxu1 %v2109_v10  ;;  %841 = vmatprep.mubr.bf16.mxu1 %v1926_v31 }
  0x3b   : > { %1750 = vmatpush3.bf16.msra.mxu1 %v2118_v13 }
  0x3c   : > { %1751 = vmatprep.subr.bf16.mxu1 %v2125_v14 }
  0x3e   : > { %624 = vmatmul.mubr.bf16.gmra.mrb[12].mxu0 %v1928_v32  ;;  %842 = vmatmul.mubr.bf16.gmra.mrb[12].mxu1 %v1929_v33 }
  0x3f   : > { %1752 = vmatpush3.bf16.msra.mxu1 %v2132_v15  ;;  %1835 = vmatprep.mubr.msk.bf16.mxu0 %vm554_vm0, %v1930_v34 }
  0x40   : > { %1753 = vmatprep.subr.bf16.mxu1 %v2139_v16  ;;  %1035 = vmatprep.mubr.bf16.mxu1 %v1933_v35 }
  0x43   : > { %1754 = vmatpush3.bf16.msra.mxu1 %v2146_v17 }
  0x44   : > { %1785 = vmatprep.subr.bf16.mxu1 %v2024_v0  ;;  %v1968_v0 = vld [vmem:[%s2190_s7 + $0x48] ss:$12 sps:$4 sm:$0xff]  }
  0x46   : > { %1836 = vmatmul.mubr.msk.bf16.vlgmr.msra.gmra.mrb[16].mxu0 %vm554_vm0, %v1934_v37  ;;  %1036 = vmatmul.mubr.bf16.vlgmr.msra.gmra.mrb[16].mxu1 %v1931_v36 }
  0x47   : > { %1786 = vmatpush3.bf16.msra.mxu1 %v2029_v1  ;;  %1844 = vmatpush3.bf16.msra.mxu0 %v2153_v18  ;;  %v1969_v1 = vld [vmem:[%s2190_s7 + $0x50] ss:$12 sps:$4 sm:$0xff]  }
  0x48   : > { %1787 = vmatprep.subr.bf16.mxu1 %v2036_v2  ;;  %1839 = vmatprep.mubr.msk.bf16.mxu0 %vm554_vm0, %v1935_v38 }
  0x49   : > { %1043 = vmatprep.mubr.bf16.mxu1 %v1936_v39  ;;  %1845 = vmatprep.subr.bf16.mxu0 %v2172_v23 }
  0x4b   : > { %1788 = vmatpush3.bf16.msra.mxu1 %v2043_v3  ;;  %1846 = vmatpush3.bf16.msra.mxu0 %v2172_v23 }
  0x4c   : > { %1789 = vmatprep.subr.bf16.mxu1 %v2050_v4  ;;  %1855 = vmatprep.subr.bf16.mxu0 %v2153_v18 }
  0x4e   : > { %1840 = vmatmul.mubr.msk.bf16.gmra.mrb[20].mxu0 %vm554_vm0, %v1938_v40  ;;  %1044 = vmatmul.mubr.bf16.gmra.mrb[20].mxu1 %v1939_v41 }
  0x4f   : > { %1790 = vmatpush3.bf16.msra.mxu1 %v2059_v5  ;;  %1847 = vmatprep.mubr.msk.bf16.mxu0 %vm554_vm0, %v1940_v42 }
  0x50   : > { %1791 = vmatprep.subr.bf16.mxu1 %v2066_v6  ;;  %1051 = vmatprep.mubr.bf16.mxu1 %v1941_v43 }
  0x53   : > { %1792 = vmatpush3.bf16.msra.mxu1 %v2076_v7 }
  0x54   : > { %1793 = vmatprep.subr.bf16.mxu1 %v2083_v8 }
  0x56   : > { %1848 = vmatmul.mubr.msk.bf16.vlgmr.msra.gmra.mrb[24].mxu0 %vm554_vm0, %v1943_v44  ;;  %1052 = vmatmul.mubr.bf16.gmra.mrb[24].mxu1 %v1944_v45 }
  0x57   : > { %1794 = vmatpush3.bf16.msra.mxu1 %v2096_v9  ;;  %1856 = vmatpush3.bf16.msra.mxu0 %v2153_v18 }
  0x58   : > { %1795 = vmatprep.subr.bf16.mxu1 %v2109_v10  ;;  %1851 = vmatprep.mubr.msk.bf16.mxu0 %vm554_vm0, %v1945_v46 }
  0x59   : > { %1059 = vmatprep.mubr.bf16.mxu1 %v1946_v47  ;;  %1857 = vmatprep.subr.bf16.mxu0 %v2172_v23 }
  0x5b   : > { %1796 = vmatpush3.bf16.msra.mxu1 %v2118_v13  ;;  %1858 = vmatpush3.bf16.msra.mxu0 %v2172_v23 }
  0x5c   : > { %1797 = vmatprep.subr.bf16.mxu1 %v2125_v14  ;;  %1867 = vmatprep.subr.bf16.mxu0 %v2153_v18 }
  0x5e   : > { %1852 = vmatmul.mubr.msk.bf16.gmra.mrb[28].mxu0 %vm554_vm0, %v1948_v48  ;;  %1060 = vmatmul.mubr.bf16.gmra.mrb[28].mxu1 %v1949_v49 }
  0x5f   : > { %1798 = vmatpush3.bf16.msra.mxu1 %v2132_v15  ;;  %1859 = vmatprep.mubr.msk.bf16.mxu0 %vm554_vm0, %v1950_v50 }
  0x60   : > { %1799 = vmatprep.subr.bf16.mxu1 %v2139_v16  ;;  %1253 = vmatprep.mubr.bf16.mxu1 %v1953_v51 }
  0x63   : > { %1800 = vmatpush3.bf16.msra.mxu1 %v2146_v17 }
  0x66   : > { %1860 = vmatmul.mubr.msk.bf16.vlgmr.msra.gmra.mrb[32].mxu0 %vm554_vm0, %v1954_v53  ;;  %1254 = vmatmul.mubr.bf16.vlgmr.msra.gmra.mrb[32].mxu1 %v1951_v52 }
  0x67   : > { %1868 = vmatpush3.bf16.msra.mxu0 %v2153_v18  ;;  %1863 = vmatprep.mubr.msk.bf16.mxu0 %vm554_vm0, %v1955_v54 }
  0x68   : > { %1261 = vmatprep.mubr.bf16.mxu1 %v1956_v55  ;;  %1869 = vmatprep.subr.bf16.mxu0 %v2172_v23 }
  0x6b   : > { %1870 = vmatpush3.bf16.msra.mxu0 %v2172_v23 }
  0x6e   : > { %1864 = vmatmul.mubr.msk.bf16.gmra.mrb[36].mxu0 %vm554_vm0, %v1958_v56  ;;  %1262 = vmatmul.mubr.bf16.gmra.mrb[36].mxu1 %v1959_v57 }
  0x6f   : > { %1269 = vmatprep.mubr.bf16.mxu1 %v1960_v58  ;;  %1871 = vmatprep.mubr.msk.bf16.mxu0 %vm554_vm0, %v1962_v59 }
  0x76   : > { %1270 = vmatmul.mubr.bf16.gmra.mrb[40].mxu1 %v1963_v60  ;;  %1872 = vmatmul.mubr.msk.bf16.vlgmr.msra.gmra.mrb[40].mxu0 %vm554_vm0, %v1964_v61 }
  0x77   : > { %1277 = vmatprep.mubr.bf16.mxu1 %v1965_v62  ;;  %1875 = vmatprep.mubr.msk.bf16.mxu0 %vm554_vm0, %v1967_v63 }
  0x7e   : > { %1278 = vmatmul.mubr.bf16.gmra.mrb[44].mxu1 %v1968_v0  ;;  %1876 = vmatmul.mubr.msk.bf16.gmra.mrb[44].mxu0 %vm554_vm0, %v1969_v1 }
  0xf9   : > { %v1663_v2 = vpop.f32.mrb[0].mxu0  ;;  %v1709_v3 = vpop.f32.mrb[0].mxu1 }
  0xfa   : > { %v1664_v4 = vpop.f32.mrb[1].mxu0  ;;  %v1710_v5 = vpop.f32.mrb[1].mxu1 }
  0xfb   : > { %v1665_v6 = vadd.f32 %v1664_v4, %v1663_v2  ;;  %v2284_v7 = vadd.f32 %v1710_v5, %v1709_v3  ;;  %v1666_v8 = vpop.f32.mrb[2].mxu0  ;;  %v1712_v9 = vpop.f32.mrb[2].mxu1 }
  0xfc   : > { %v1667_v10 = vpop.f32.mrb[3].mxu0  ;;  %v1713_v11 = vpop.f32.mrb[3].mxu1 }
  0xfd   : > { %v1668_v12 = vadd.f32 %v1667_v10, %v1666_v8  ;;  %v2286_v13 = vadd.f32 %v1713_v11, %v1712_v9 }
 0x101   : > { %v1669_v14 = vpop.f32.mrb[4].mxu0  ;;  %v1715_v15 = vpop.f32.mrb[4].mxu1 }
 0x102   : > { %v1670_v16 = vpop.f32.mrb[5].mxu0  ;;  %v1716_v17 = vpop.f32.mrb[5].mxu1 }
 0x103   : > { %v1671_v18 = vadd.f32 %v1670_v16, %v1669_v14  ;;  %v1717_v19 = vadd.f32 %v1716_v17, %v1715_v15  ;;  %v1672_v20 = vpop.f32.mrb[6].mxu0  ;;  %v1718_v21 = vpop.f32.mrb[6].mxu1 }
 0x104   : > { %v1673_v22 = vpop.f32.mrb[7].mxu0  ;;  %v1719_v23 = vpop.f32.mrb[7].mxu1 }
 0x105   : > { %v1674_v24 = vadd.f32 %v1673_v22, %v1672_v20  ;;  %v2288_v25 = vadd.f32 %v1719_v23, %v1718_v21 }
 0x109   : > { %v1675_v26 = vpop.f32.mrb[8].mxu0  ;;  %v1721_v27 = vpop.f32.mrb[8].mxu1 }
 0x10a   : > { %v1676_v28 = vpop.f32.mrb[9].mxu0  ;;  %v1722_v29 = vpop.f32.mrb[9].mxu1 }
 0x10b   : > { %v1677_v30 = vadd.f32 %v1676_v28, %v1675_v26  ;;  %v2290_v31 = vadd.f32 %v1722_v29, %v1721_v27  ;;  %v1678_v32 = vpop.f32.mrb[10].mxu0  ;;  %v1724_v33 = vpop.f32.mrb[10].mxu1 }
 0x10c   : > { %v1679_v34 = vpop.f32.mrb[11].mxu0  ;;  %v1725_v35 = vpop.f32.mrb[11].mxu1 }
 0x10d   : > { %v1680_v36 = vadd.f32 %v1679_v34, %v1678_v32  ;;  %v2292_v37 = vadd.f32 %v1725_v35, %v1724_v33 }
 0x111   : > { %v1681_v38 = vpop.f32.mrb[12].mxu0  ;;  %v1727_v39 = vpop.f32.mrb[12].mxu1 }
 0x112   : > { %v1682_v40 = vpop.f32.mrb[13].mxu0  ;;  %v1728_v41 = vpop.f32.mrb[13].mxu1 }
 0x113   : > { %v1683_v42 = vadd.f32 %v1682_v40, %v1681_v38  ;;  %v1729_v43 = vadd.f32 %v1728_v41, %v1727_v39  ;;  %v1684_v44 = vpop.f32.mrb[14].mxu0  ;;  %v1730_v45 = vpop.f32.mrb[14].mxu1 }
 0x114   : > { %v1685_v46 = vpop.f32.mrb[15].mxu0  ;;  %v1731_v47 = vpop.f32.mrb[15].mxu1 }
 0x115   : > { %v1686_v48 = vadd.f32 %v1685_v46, %v1684_v44  ;;  %v1732_v49 = vadd.f32 %v1731_v47, %v1730_v45 }
 0x119   : > { %v1837_v50 = vpop.f32.mrb[16].mxu0  ;;  %v1755_v51 = vpop.f32.mrb[16].mxu1 }
 0x11a   : > { %v2294_v52 = vadd.f32 %v1837_v50, %v1671_v18  ;;  %v666_v53 = vpop.f32.mrb[17].mxu0  ;;  %v1756_v54 = vpop.f32.mrb[17].mxu1 }
 0x11b   : > { %v2296_v55 = vadd.f32 %v1665_v6, %v666_v53  ;;  %v2298_v56 = vadd.f32 %v1756_v54, %v1755_v51  ;;  %v1838_v57 = vpop.f32.mrb[18].mxu0  ;;  %v1758_v58 = vpop.f32.mrb[18].mxu1 }
 0x11c   : > { %v2300_v59 = vadd.f32 %v1838_v57, %v1674_v24  ;;  %v669_v60 = vpop.f32.mrb[19].mxu0  ;;  %v1759_v61 = vpop.f32.mrb[19].mxu1 }
 0x11d   : > { %v2302_v62 = vadd.f32 %v1668_v12, %v669_v60  ;;  %v2304_v63 = vadd.f32 %v1759_v61, %v1758_v58 }
 0x121   : > { %v1841_v0 = vpop.f32.mrb[20].mxu0  ;;  %v1761_v1 = vpop.f32.mrb[20].mxu1 }
 0x122   : > { %v2306_v2 = vadd.f32 %v1841_v0, %v1683_v42  ;;  %v682_v3 = vpop.f32.mrb[21].mxu0  ;;  %v1762_v4 = vpop.f32.mrb[21].mxu1 }
 0x123   : > { %v2308_v5 = vadd.f32 %v1677_v30, %v682_v3  ;;  %v1763_v6 = vadd.f32 %v1762_v4, %v1761_v1  ;;  %v1842_v8 = vpop.f32.mrb[22].mxu0  ;;  %v1764_v9 = vpop.f32.mrb[22].mxu1 }
 0x124   : > { %v2310_v10 = vadd.f32 %v1842_v8, %v1686_v48  ;;  %v685_v11 = vpop.f32.mrb[23].mxu0  ;;  %v1765_v14 = vpop.f32.mrb[23].mxu1 }
 0x125   : > { %v2312_v15 = vadd.f32 %v1680_v36, %v685_v11  ;;  %v1766_v12 = vadd.f32 %v1765_v14, %v1764_v9 }
 0x129   : > { %v1849_v16 = vpop.f32.mrb[24].mxu0  ;;  %v1767_v17 = vpop.f32.mrb[24].mxu1 }
 0x12a   : > { %v2314_v18 = vadd.f32 %v1849_v16, %v1717_v19  ;;  %v884_v20 = vpop.f32.mrb[25].mxu0  ;;  %v1768_v21 = vpop.f32.mrb[25].mxu1 }
 0x12b   : > { %v2317_v22 = vadd.f32 %v2284_v7, %v884_v20  ;;  %v1769_v23 = vadd.f32 %v1768_v21, %v1767_v17  ;;  %v1850_v24 = vpop.f32.mrb[26].mxu0  ;;  %v1770_v26 = vpop.f32.mrb[26].mxu1 }
 0x12c   : > { %v1353_v27 = vmax.f32 %v2294_v52, %v2314_v18  ;;  %v2322_v28 = vadd.f32 %v1850_v24, %v2288_v25  ;;  %v887_v29 = vpop.f32.mrb[27].mxu0  ;;  %v1771_v30 = vpop.f32.mrb[27].mxu1 }
 0x12d   : > { %v1351_v19 = vmax.f32 %v2296_v55, %v2317_v22  ;;  %v2327_v32 = vadd.f32 %v2286_v13, %v887_v29  ;;  %v1772_v33 = vadd.f32 %v1771_v30, %v1770_v26 }
 0x12e   : > { %v1354_v7 = vmax.f32 %v2300_v59, %v2322_v28 }
 0x12f   : > { %v1352_v34 = vmax.f32 %v2302_v62, %v2327_v32 }
 0x131   : > { %v1853_v35 = vpop.f32.mrb[28].mxu0  ;;  %v1773_v36 = vpop.f32.mrb[28].mxu1 }
 0x132   : > { %v2333_v38 = vadd.f32 %v1853_v35, %v1729_v43  ;;  %v900_v25 = vpop.f32.mrb[29].mxu0  ;;  %v1774_v39 = vpop.f32.mrb[29].mxu1 }
 0x133   : > { %v2336_v40 = vadd.f32 %v2290_v31, %v900_v25  ;;  %v1775_v41 = vadd.f32 %v1774_v39, %v1773_v36  ;;  %v1854_v42 = vpop.f32.mrb[30].mxu0  ;;  %v1776_v13 = vpop.f32.mrb[30].mxu1 }
 0x134   : > { %v1357_v44 = vmax.f32 %v2306_v2, %v2333_v38  ;;  %v2340_v45 = vadd.f32 %v1854_v42, %v1732_v49  ;;  %v903_v46 = vpop.f32.mrb[31].mxu0  ;;  %v1777_v47 = vpop.f32.mrb[31].mxu1 }
 0x135   : > { %v1355_v48 = vmax.f32 %v2308_v5, %v2336_v40  ;;  %v2345_v43 = vadd.f32 %v2292_v37, %v903_v46  ;;  %v1778_v50 = vadd.f32 %v1777_v47, %v1776_v13 }
 0x136   : > { %v1358_v31 = vmax.f32 %v2310_v10, %v2340_v45 }
 0x137   : > { %v1356_v51 = vmax.f32 %v2312_v15, %v2345_v43 }
 0x139   : > { %v1861_v53 = vpop.f32.mrb[32].mxu0  ;;  %v1801_v54 = vpop.f32.mrb[32].mxu1 }
 0x13a   : > { %v1111_v57 = vadd.f32 %v1861_v53, %v1763_v6  ;;  %v1102_v49 = vpop.f32.mrb[33].mxu0  ;;  %v1802_v58 = vpop.f32.mrb[33].mxu1 }
 0x13b   : > { %v1103_v60 = vadd.f32 %v2298_v56, %v1102_v49  ;;  %v1803_v61 = vadd.f32 %v1802_v58, %v1801_v54  ;;  %v1862_v0 = vpop.f32.mrb[34].mxu0  ;;  %v1804_v1 = vpop.f32.mrb[34].mxu1 }
 0x13c   : > { %v1114_v3 = vadd.f32 %v1862_v0, %v1766_v12  ;;  %v1105_v37 = vpop.f32.mrb[35].mxu0  ;;  %v1805_v4 = vpop.f32.mrb[35].mxu1 }
 0x13d   : > { %v1106_v8 = vadd.f32 %v2304_v63, %v1105_v37  ;;  %v1806_v9 = vadd.f32 %v1805_v4, %v1804_v1 }
 0x141   : > { %v1865_v11 = vpop.f32.mrb[36].mxu0  ;;  %v1807_v14 = vpop.f32.mrb[36].mxu1 }
 0x142   : > { %v2353_v16 = vadd.f32 %v1865_v11, %v1775_v41  ;;  %v1118_v17 = vpop.f32.mrb[37].mxu0  ;;  %v1808_v20 = vpop.f32.mrb[37].mxu1 }
 0x143   : > { %v2355_v6 = vadd.f32 %v1769_v23, %v1118_v17  ;;  %v1809_v21 = vadd.f32 %v1808_v20, %v1807_v14  ;;  %v1866_v24 = vpop.f32.mrb[38].mxu0  ;;  %v1810_v56 = vpop.f32.mrb[38].mxu1 }
 0x144   : > { %v2357_v26 = vadd.f32 %v1866_v24, %v1778_v50  ;;  %v1121_v29 = vpop.f32.mrb[39].mxu0  ;;  %v1811_v12 = vpop.f32.mrb[39].mxu1 }
 0x145   : > { %v2359_v30 = vadd.f32 %v1772_v33, %v1121_v29  ;;  %v1812_v35 = vadd.f32 %v1811_v12, %v1810_v56  ;;  %v1628_v33 = vld [vmem:[%s2422_s5] ss:$0 sm:$0xff] }
 0x149   : > { %v1813_v63 = vpop.f32.mrb[40].mxu1  ;;  %v1873_v36 = vpop.f32.mrb[40].mxu0 }
 0x14a   : > { %v1329_v25 = vadd.f32 %v1873_v36, %v1809_v21  ;;  %v1814_v39 = vpop.f32.mrb[41].mxu1  ;;  %v1320_v41 = vpop.f32.mrb[41].mxu0 }
 0x14b   : > { %v1815_v42 = vadd.f32 %v1814_v39, %v1813_v63  ;;  %v1321_v13 = vadd.f32 %v1803_v61, %v1320_v41  ;;  %v1816_v23 = vpop.f32.mrb[42].mxu1  ;;  %v1874_v46 = vpop.f32.mrb[42].mxu0 }
 0x14c   : > { %v1361_v47 = vmax.f32 %v1111_v57, %v1329_v25  ;;  %v1332_v53 = vadd.f32 %v1874_v46, %v1812_v35  ;;  %v1817_v54 = vpop.f32.mrb[43].mxu1  ;;  %v1323_v50 = vpop.f32.mrb[43].mxu0 }
 0x14d   : > { %v1359_v49 = vmax.f32 %v1103_v60, %v1321_v13  ;;  %v1818_v58 = vadd.f32 %v1817_v54, %v1816_v23  ;;  %v1324_v0 = vadd.f32 %v1806_v9, %v1323_v50 }
 0x14e   : > { %v1369_v1 = vmax.f32 %v1353_v27, %v1361_v47  ;;  %v1362_v37 = vmax.f32 %v1114_v3, %v1332_v53 }
 0x14f   : > { %v1367_v61 = vmax.f32 %v1351_v19, %v1359_v49  ;;  %v1360_v57 = vmax.f32 %v1106_v8, %v1324_v0 }
 0x150   : > { %v1384_v4 = vadd.f32 %v1628_v33, %v1369_v1  ;;  %v1370_v11 = vmax.f32 %v1354_v7, %v1362_v37 }
 0x151   : > { %v1382_v14 = vadd.f32 %v1628_v33, %v1367_v61  ;;  %v1368_v60 = vmax.f32 %v1352_v34, %v1360_v57  ;;  %v1819_v9 = vpop.f32.mrb[44].mxu1  ;;  %v1877_v52 = vpop.f32.mrb[44].mxu0 }
 0x152   : > { %v1392_v18 = vmax.f32 %v1384_v4, 0.0  ;;  %v1385_v27 = vadd.f32 %v1628_v33, %v1370_v11  ;;  %v1820_v3 = vpop.f32.mrb[45].mxu1  ;;  %v1336_v55 = vpop.f32.mrb[45].mxu0 }
 0x153   : > { %v1390_v59 = vmax.f32 %v1382_v14, 0.0  ;;  %v1383_v22 = vadd.f32 %v1628_v33, %v1368_v60  ;;  %v1821_v28 = vadd.f32 %v1820_v3, %v1819_v9  ;;  %v1337_v19 = vadd.f32 %v1815_v42, %v1336_v55  ;;  %v1822_v62 = vpop.f32.mrb[46].mxu1  ;;  %v1878_v32 = vpop.f32.mrb[46].mxu0 }
 0x154   : > { %v1641_v7 = vpack.c.bf16 %v1392_v18, %v1392_v18  ;;  %v1393_v34 = vmax.f32 %v1385_v27, 0.0  ;;  %v1823_v8 = vpop.f32.mrb[47].mxu1  ;;  %v1339_v17 = vpop.f32.mrb[47].mxu0 }
 0x155   : > { %v1639_v20 = vpack.c.bf16 %v1390_v59, %v1390_v59  ;;  %v1391_v21 = vmax.f32 %v1383_v22, 0.0  ;;  %v1345_v24 = vadd.f32 %v1877_v52, %v1821_v28  ;;  %v1363_v56 = vmax.f32 %v2355_v6, %v1337_v19 }
 0x156   : > { %1433 = vst.msk [vmem:[%s2380_s25 + $0x8] sm:$0xf] %vm1430_vm1, %v1641_v7  ;;  %v1642_v29 = vpack.c.bf16 %v1393_v34, %v1393_v34  ;;  %v1824_v12 = vadd.f32 %v1823_v8, %v1822_v62  ;;  %v1340_v35 = vadd.f32 %v1818_v58, %v1339_v17 }
 0x157   : > { %1431 = vst.msk [vmem:[%s2380_s25] sm:$0xf] %vm1430_vm1, %v1639_v20  ;;  %v1640_v63 = vpack.c.bf16 %v1391_v21, %v1391_v21  ;;  %v1365_v36 = vmax.f32 %v2353_v16, %v1345_v24  ;;  %v1371_v25 = vmax.f32 %v1355_v48, %v1363_v56 }
 0x158   : > { %1434 = vst.msk [vmem:[%s2380_s25 + $0xc] sm:$0xf] %vm1430_vm1, %v1642_v29  ;;  %v1348_v39 = vadd.f32 %v1878_v32, %v1824_v12  ;;  %v1364_v6 = vmax.f32 %v2359_v30, %v1340_v35 }
 0x159   : > { %1432 = vst.msk [vmem:[%s2380_s25 + $0x4] sm:$0xf] %vm1430_vm1, %v1640_v63  ;;  %v1373_v41 = vmax.f32 %v1357_v44, %v1365_v36  ;;  %v1386_v42 = vadd.f32 %v1628_v33, %v1371_v25 }
 0x15a   : > { %v1366_v16 = vmax.f32 %v2357_v26, %v1348_v39  ;;  %v1372_v5 = vmax.f32 %v1356_v51, %v1364_v6 }
 0x15b   : > { %v1388_v40 = vadd.f32 %v1628_v33, %v1373_v41  ;;  %v1394_v48 = vmax.f32 %v1386_v42, 0.0 }
 0x15c   : > { %v1374_v30 = vmax.f32 %v1358_v31, %v1366_v16  ;;  %v1387_v13 = vadd.f32 %v1628_v33, %v1372_v5 }
 0x15d   : > { %v1396_v23 = vmax.f32 %v1388_v40, 0.0  ;;  %v1643_v2 = vpack.c.bf16 %v1394_v48, %v1394_v48 }
 0x15e   : > { %v1389_v38 = vadd.f32 %v1628_v33, %v1374_v30  ;;  %v1395_v44 = vmax.f32 %v1387_v13, 0.0 }
 0x15f   : > { %v1645_v46 = vpack.c.bf16 %v1396_v23, %v1396_v23  ;;  %1435 = vst.msk [vmem:[%s2380_s25 + $0x10] sm:$0xf] %vm1430_vm1, %v1643_v2 }
 0x160   : > { %v1397_v26 = vmax.f32 %v1389_v38, 0.0  ;;  %v1644_v47 = vpack.c.bf16 %v1395_v44, %v1395_v44 }
 0x161   : > { %1437 = vst.msk [vmem:[%s2380_s25 + $0x18] sm:$0xf] %vm1430_vm1, %v1645_v46 }
 0x162   : > { %v1646_v15 = vpack.c.bf16 %v1397_v26, %v1397_v26  ;;  %1436 = vst.msk [vmem:[%s2380_s25 + $0x14] sm:$0xf] %vm1430_vm1, %v1644_v47 }
 0x164   : > { %1438 = vst.msk [vmem:[%s2380_s25 + $0x1c] sm:$0xf] %vm1430_vm1, %v1646_v15 }
 0x165 PF: > { %s16_s21 = sadd.s32 1, %s1976_s21  }
 0x166   : > { %p13_p4 = scmp.ge.s32.totalorder %s16_s21, 4  }
 0x168   :  { %15 = sbr.rel (!%p13_p4) target bundleno = 1 (0x1), region = 83 }

// kernel: cifar10net_forward.6
= control target key start
LH: loop header
LB: loop body
LE: loop exit
PB: predicated region body
PF: predicated region fallthrough
CT: control target
= control target key end

     0   :  { %s1821_s21 = smov 0   ;;  %s2248_s0 = inlined_call_operand.vmem [shape: bf16[32,576], index: 0, kind: input, shape index: {}]   ;;  %s2249_s1 = inlined_call_operand.vmem [shape: bf16[32,576], index: 1, kind: input, shape index: {}]   ;;  %s2250_s2 = inlined_call_operand.vmem [shape: bf16[32,576], index: 2, kind: input, shape index: {}]   ;;  %s2251_s3 = inlined_call_operand.vmem [shape: bf16[32,576], index: 3, kind: input, shape index: {}]   ;;  %s2252_s4 = inlined_call_operand.vmem [shape: bf16[576,128], index: 4, kind: input, shape index: {}]   ;;  %s2253_s5 = inlined_call_operand.vmem [shape: f32[1,128], index: 5, kind: input, shape index: {}]   ;;  %s2254_s6 = inlined_call_operand.vmem [shape: bf16[32,128], index: 6, kind: output, shape index: {}]  }
   0x1 LB: > { %s1370_s22 = sadd.s32 4294967295, %s1782_s21   ;;  %p1374_p0 = scmp.ge.s32.totalorder %s1782_s21, 1  ;;  %s1782_s21 = sphi %s1821_s21, %s16_s21  }
   0x2   : > { %p250_p1 = scmp.lt.s32.totalorder %s1782_s21, 3 }
   0x4   : > { %p251_p2 = pnand %p1374_p0, %p250_p1 }
   0x5   : > { %v1832_v0 = vld [vmem:[%s2252_s4 + $0x40] sm:$0xff] (!%p251_p2)   ;;  %v1855_v4 = vld [vmem:[%s2252_s4 + $0x48] sm:$0xff] (!%p251_p2)   ;;  %v1879_v8 = vld [vmem:[%s2252_s4 + $0x50] sm:$0xff] (!%p251_p2)   ;;  %s1375_s7 = sshll.u32 (!%p251_p2), %s1370_s22, 1  ;;  %v1784_v34 = vmov (!%p251_p2), 0.0   ;;  %vm1785_vm0 = vmmov (!%p251_p2), 0  }
   0x6   : > { %254 = sbr.rel (%p251_p2) target bundleno = 399 (0x18f), region = 44  ;;  %v1837_v1 = vld [vmem:[%s2252_s4 + $0xc0] sm:$0xff] (!%p251_p2)   ;;  %1457 = vmatprep.subr.bf16.mxu0 (!%p251_p2), %v1832_v0  ;;  %v1861_v5 = vld [vmem:[%s2252_s4 + $0xc8] sm:$0xff] (!%p251_p2)   ;;  %v1885_v9 = vld [vmem:[%s2252_s4 + $0xd0] sm:$0xff] (!%p251_p2)   ;;  %p300_p3 = scmp.lt.s32.totalorder (!%p251_p2), %s1375_s7, 3  ;;  %vm653_vm1 = vcmask (!%p251_p2), 523264  }
   0x7   : > { %v1843_v2 = vld [vmem:[%s2252_s4] sm:$0xff] (!%p251_p2)   ;;  %1479 = vmatprep.subr.bf16.mxu1 (!%p251_p2), %v1837_v1  ;;  %v1867_v6 = vld [vmem:[%s2252_s4 + $0x8] sm:$0xff] (!%p251_p2)   ;;  %v1891_v10 = vld [vmem:[%s2252_s4 + $0x10] sm:$0xff] (!%p251_p2)  }
   0x8   : > { %v1849_v3 = vld [vmem:[%s2252_s4 + $0x80] sm:$0xff] (!%p251_p2)   ;;  %1458 = vmatpush3.bf16.msra.mxu0 (!%p251_p2), %v1843_v2  ;;  %v1873_v7 = vld [vmem:[%s2252_s4 + $0x88] sm:$0xff] (!%p251_p2)   ;;  %v1897_v11 = vld [vmem:[%s2252_s4 + $0x90] sm:$0xff] (!%p251_p2)  }
   0x9   : > { %1480 = vmatpush3.bf16.msra.mxu1 (!%p251_p2), %v1849_v3  ;;  %1459 = vmatprep.subr.bf16.mxu0 (!%p251_p2), %v1855_v4  ;;  %v1903_v12 = vld [vmem:[%s2252_s4 + $0x58] sm:$0xff] (!%p251_p2)   ;;  %v1929_v16 = vld [vmem:[%s2252_s4 + $0x60] sm:$0xff] (!%p251_p2)   ;;  %v1953_v20 = vld [vmem:[%s2252_s4 + $0x68] sm:$0xff] (!%p251_p2)  }
   0xa   : > { %1481 = vmatprep.subr.bf16.mxu1 (!%p251_p2), %v1861_v5  ;;  %v1909_v13 = vld [vmem:[%s2252_s4 + $0xd8] sm:$0xff] (!%p251_p2)   ;;  %v1935_v17 = vld [vmem:[%s2252_s4 + $0xe0] sm:$0xff] (!%p251_p2)   ;;  %v1959_v21 = vld [vmem:[%s2252_s4 + $0xe8] sm:$0xff] (!%p251_p2)  }
   0xb   : > { %v1915_v14 = vld [vmem:[%s2252_s4 + $0x18] sm:$0xff] (!%p251_p2)   ;;  %v1941_v18 = vld [vmem:[%s2252_s4 + $0x20] sm:$0xff] (!%p251_p2)   ;;  %v1967_v22 = vld [vmem:[%s2252_s4 + $0x28] sm:$0xff] (!%p251_p2)  }
   0xc   : > { %1460 = vmatpush3.bf16.msra.mxu0 (!%p251_p2), %v1867_v6  ;;  %v1923_v15 = vld [vmem:[%s2252_s4 + $0x98] sm:$0xff] (!%p251_p2)   ;;  %v1947_v19 = vld [vmem:[%s2252_s4 + $0xa0] sm:$0xff] (!%p251_p2)   ;;  %v1973_v23 = vld [vmem:[%s2252_s4 + $0xa8] sm:$0xff] (!%p251_p2)  }
   0xd   : > { %1482 = vmatpush3.bf16.msra.mxu1 %v1873_v7  ;;  %1461 = vmatprep.subr.bf16.mxu0 %v1879_v8  ;;  %s2256_s7 = smov (!%p300_p3, %s1375_s7), 3  ;;  %v1979_v24 = vld [vmem:[%s2252_s4 + $0x70] sm:$0xff]   ;;  %v2006_v28 = vld [vmem:[%s2252_s4 + $0x78] sm:$0xff]   ;;  %v2043_v37 = vld [vmem:[%s2252_s4 + $0x100] sm:$0xff]  }
   0xe   : > { %1483 = vmatprep.subr.bf16.mxu1 %v1885_v9  ;;  %v1985_v25 = vld [vmem:[%s2252_s4 + $0xf0] sm:$0xff]   ;;  %s1988_s8 = smul.u32 20, %s2256_s7  ;;  %v2012_v29 = vld [vmem:[%s2252_s4 + $0xf8] sm:$0xff]   ;;  %v2049_v38 = vld [vmem:[%s2252_s4 + $0x108] sm:$0xff]   ;;  %s1384_s20 = sshll.u32 %s2256_s7, 2 }
   0xf   : > { %v1994_v26 = vld [vmem:[%s2252_s4 + $0x30] sm:$0xff]   ;;  %v2024_v30 = vld [vmem:[%s2252_s4 + $0x38] sm:$0xff]   ;;  %s331_s25 = scalar_lea.vmem %s2254_s6, %s1384_s20 }
  0x10   : > { %1462 = vmatpush3.bf16.msra.mxu0 %v1891_v10  ;;  %v2000_v27 = vld [vmem:[%s2252_s4 + $0xb0] sm:$0xff]   ;;  %s2018_s18 = scalar_lea.vmem %s2248_s0, %s1988_s8  ;;  %v2030_v31 = vld [vmem:[%s2252_s4 + $0xb8] sm:$0xff]   ;;  %s2055_s9 = scalar_lea.vmem %s2249_s1, %s1988_s8 }
  0x11   : > { %1484 = vmatpush3.bf16.msra.mxu1 %v1897_v11  ;;  %1463 = vmatprep.subr.bf16.mxu0 %v1903_v12  ;;  %v1744_v32 = vld [vmem:[%s2018_s18] ss:$20 sps:$4 sm:$0xff]   ;;  %v1746_v33 = vld [vmem:[%s2018_s18 + $0x4] ss:$20 sps:$4 sm:$0xff]   ;;  %v1747_v35 = vld [vmem:[%s2018_s18 + $0x8] ss:$20 sps:$4 sm:$0xff]   ;;  %s2075_s22 = scalar_lea.vmem %s2250_s2, %s1988_s8  ;;  %s2090_s19 = scalar_lea.vmem %s2251_s3, %s1988_s8 }
  0x12   : > { %1485 = vmatprep.subr.bf16.mxu1 %v1909_v13  ;;  %v1749_v36 = vld [vmem:[%s2018_s18 + $0xc] ss:$20 sps:$4 sm:$0xff]   ;;  %689 = vmatprep.mubr.bf16.mxu0 %v1746_v33  ;;  %v1757_v39 = vld [vmem:[%s2055_s9 + $0x4] ss:$20 sps:$4 sm:$0xff]   ;;  %v2067_v40 = vld [vmem:[%s2252_s4 + $0x110] sm:$0xff]  }
  0x13   : > { %730 = vmatprep.mubr.bf16.mxu1 %v1749_v36  ;;  %v2082_v41 = vld [vmem:[%s2252_s4 + $0x118] sm:$0xff]   ;;  %v1754_v42 = vld [vmem:[%s2018_s18 + $0x10] ss:$20 sps:$4 sm:$0xff]   ;;  %v1760_v43 = vld [vmem:[%s2055_s9 + $0xc] ss:$20 sps:$4 sm:$0xff]  }
  0x14   : > { %1464 = vmatpush3.bf16.msra.mxu0 %v1915_v14  ;;  %v1755_v44 = vld [vmem:[%s2055_s9] ss:$20 sps:$4 sm:$0xff]   ;;  %v1758_v45 = vld [vmem:[%s2055_s9 + $0x8] ss:$20 sps:$4 sm:$0xff]   ;;  %v1761_v46 = vld [vmem:[%s2055_s9 + $0x10] ss:$20 sps:$4 sm:$0xff]  }
  0x15   : > { %1486 = vmatpush3.bf16.msra.mxu1 %v1923_v15  ;;  %1465 = vmatprep.subr.bf16.mxu0 %v1929_v16  ;;  %v1764_v47 = vld [vmem:[%s2075_s22 + $0x4] ss:$20 sps:$4 sm:$0xff]   ;;  %v1767_v48 = vld [vmem:[%s2075_s22 + $0xc] ss:$20 sps:$4 sm:$0xff]   ;;  %v1765_v50 = vld [vmem:[%s2075_s22 + $0x8] ss:$20 sps:$4 sm:$0xff]  }
  0x16   : > { %1487 = vmatprep.subr.bf16.mxu1 %v1935_v17  ;;  %v1762_v49 = vld [vmem:[%s2075_s22] ss:$20 sps:$4 sm:$0xff]   ;;  %v1771_v51 = vld [vmem:[%s2090_s19 + $0x4] ss:$20 sps:$4 sm:$0xff]   ;;  %v1772_v55 = vld [vmem:[%s2090_s19 + $0x8] ss:$20 sps:$4 sm:$0xff]  }
  0x17   : > { %v1768_v52 = vld [vmem:[%s2075_s22 + $0x10] ss:$20 sps:$4 sm:$0xff]   ;;  %v1774_v53 = vld [vmem:[%s2090_s19 + $0xc] ss:$20 sps:$4 sm:$0xff]  }
  0x18   : > { %1466 = vmatpush3.bf16.msra.mxu0 %v1941_v18  ;;  %v1769_v54 = vld [vmem:[%s2090_s19] ss:$20 sps:$4 sm:$0xff]   ;;  %v1775_v56 = vld [vmem:[%s2090_s19 + $0x10] ss:$20 sps:$4 sm:$0xff]  }
  0x19   : > { %1488 = vmatpush3.bf16.msra.mxu1 %v1947_v19  ;;  %1467 = vmatprep.subr.bf16.mxu0 %v1953_v20 }
  0x1a   : > { %1489 = vmatprep.subr.bf16.mxu1 %v1959_v21 }
  0x1c   : > { %1468 = vmatpush3.bf16.msra.mxu0 %v1967_v22 }
  0x1d   : > { %1490 = vmatpush3.bf16.msra.mxu1 %v1973_v23  ;;  %1469 = vmatprep.subr.bf16.mxu0 %v1979_v24 }
  0x1e   : > { %1491 = vmatprep.subr.bf16.mxu1 %v1985_v25 }
  0x20   : > { %1470 = vmatpush3.bf16.msra.mxu0 %v1994_v26 }
  0x21   : > { %1492 = vmatpush3.bf16.msra.mxu1 %v2000_v27  ;;  %1471 = vmatprep.subr.bf16.mxu0 %v2006_v28 }
  0x22   : > { %1493 = vmatprep.subr.bf16.mxu1 %v2012_v29 }
  0x24   : > { %1472 = vmatpush3.bf16.msra.mxu0 %v2024_v30 }
  0x25   : > { %1494 = vmatpush3.bf16.msra.mxu1 %v2030_v31  ;;  %1653 = vmatprep.subr.bf16.mxu0 %v1784_v34 }
  0x26   : > { %1506 = vmatprep.subr.bf16.mxu1 %v1832_v0 }
  0x27   : > { %690 = vmatmul.mubr.bf16.vlgmr.msra.gmra.mrb[0].mxu0 %v1744_v32 }
  0x28   : > { %731 = vmatmul.mubr.bf16.vlgmr.msra.gmra.mrb[0].mxu1 %v1747_v35  ;;  %1654 = vmatpush3.bf16.msra.mxu0 %v2043_v37 }
  0x29   : > { %1507 = vmatpush3.bf16.msra.mxu1 %v1843_v2  ;;  %1655 = vmatprep.subr.bf16.mxu0 %v1784_v34 }
  0x2a   : > { %1508 = vmatprep.subr.bf16.mxu1 %v1855_v4  ;;  %1661 = vmatprep.mubr.msk.bf16.mxu0 %vm1785_vm0, %v1784_v34 }
  0x2b   : > { %846 = vmatprep.mubr.bf16.mxu1 %v1757_v39 }
  0x2c   : > { %1656 = vmatpush3.bf16.msra.mxu0 %v2049_v38 }
  0x2d   : > { %1509 = vmatpush3.bf16.msra.mxu1 %v1867_v6  ;;  %1657 = vmatprep.subr.bf16.mxu0 %v1784_v34 }
  0x2e   : > { %1510 = vmatprep.subr.bf16.mxu1 %v1879_v8 }
  0x30   : > { %1658 = vmatpush3.bf16.msra.mxu0 %v2067_v40 }
  0x31   : > { %1511 = vmatpush3.bf16.msra.mxu1 %v1891_v10  ;;  %1659 = vmatprep.subr.bf16.mxu0 %v1784_v34 }
  0x32   : > { %1512 = vmatprep.subr.bf16.mxu1 %v1903_v12 }
  0x34   : > { %1660 = vmatpush3.bf16.msra.mxu0 %v2082_v41 }
  0x35   : > { %1513 = vmatpush3.bf16.msra.mxu1 %v1915_v14  ;;  %1528 = vmatprep.subr.bf16.mxu0 %v1837_v1 }
  0x36   : > { %1514 = vmatprep.subr.bf16.mxu1 %v1929_v16 }
  0x37   : > { %1662 = vmatmul.mubr.msk.bf16.vlgmr.msra.gmra.mrb[4].mxu0 %vm653_vm1, %v1754_v42 }
  0x38   : > { %1529 = vmatpush3.bf16.msra.mxu0 %v1849_v3  ;;  %887 = vmatprep.mubr.bf16.mxu0 %v1760_v43 }
  0x39   : > { %1515 = vmatpush3.bf16.msra.mxu1 %v1941_v18  ;;  %1530 = vmatprep.subr.bf16.mxu0 %v1861_v5 }
  0x3a   : > { %1516 = vmatprep.subr.bf16.mxu1 %v1953_v20 }
  0x3c   : > { %1531 = vmatpush3.bf16.msra.mxu0 %v1873_v7 }
  0x3d   : > { %1517 = vmatpush3.bf16.msra.mxu1 %v1967_v22  ;;  %1532 = vmatprep.subr.bf16.mxu0 %v1885_v9 }
  0x3e   : > { %1518 = vmatprep.subr.bf16.mxu1 %v1979_v24 }
  0x40   : > { %1533 = vmatpush3.bf16.msra.mxu0 %v1897_v11 }
  0x41   : > { %1519 = vmatpush3.bf16.msra.mxu1 %v1994_v26  ;;  %1534 = vmatprep.subr.bf16.mxu0 %v1909_v13 }
  0x42   : > { %1520 = vmatprep.subr.bf16.mxu1 %v2006_v28 }
  0x44   : > { %1535 = vmatpush3.bf16.msra.mxu0 %v1923_v15 }
  0x45   : > { %1521 = vmatpush3.bf16.msra.mxu1 %v2024_v30  ;;  %1536 = vmatprep.subr.bf16.mxu0 %v1935_v17 }
  0x46   : > { %1665 = vmatprep.subr.bf16.mxu1 %v1784_v34 }
  0x48   : > { %847 = vmatmul.mubr.bf16.vlgmr.msra.gmra.mrb[4].mxu1 %v1755_v44  ;;  %1537 = vmatpush3.bf16.msra.mxu0 %v1947_v19 }
  0x49   : > { %1666 = vmatpush3.bf16.msra.mxu1 %v2043_v37  ;;  %1538 = vmatprep.subr.bf16.mxu0 %v1959_v21 }
  0x4a   : > { %1667 = vmatprep.subr.bf16.mxu1 %v1784_v34  ;;  %1673 = vmatprep.mubr.msk.bf16.mxu1 %vm1785_vm0, %v1784_v34 }
  0x4c   : > { %1539 = vmatpush3.bf16.msra.mxu0 %v1973_v23 }
  0x4d   : > { %1668 = vmatpush3.bf16.msra.mxu1 %v2049_v38  ;;  %1540 = vmatprep.subr.bf16.mxu0 %v1985_v25 }
  0x4e   : > { %1669 = vmatprep.subr.bf16.mxu1 %v1784_v34 }
  0x50   : > { %1541 = vmatpush3.bf16.msra.mxu0 %v2000_v27 }
  0x51   : > { %1670 = vmatpush3.bf16.msra.mxu1 %v2067_v40  ;;  %1542 = vmatprep.subr.bf16.mxu0 %v2012_v29 }
  0x52   : > { %1671 = vmatprep.subr.bf16.mxu1 %v1784_v34 }
  0x54   : > { %1543 = vmatpush3.bf16.msra.mxu0 %v2030_v31 }
  0x55   : > { %1672 = vmatpush3.bf16.msra.mxu1 %v2082_v41  ;;  %1555 = vmatprep.subr.bf16.mxu0 %v1832_v0 }
  0x56   : > { %1577 = vmatprep.subr.bf16.mxu1 %v1837_v1 }
  0x57   : > { %888 = vmatmul.mubr.bf16.vlgmr.msra.gmra.mrb[8].mxu0 %v1758_v45 }
  0x58   : > { %1674 = vmatmul.mubr.msk.bf16.vlgmr.msra.gmra.mrb[8].mxu1 %vm653_vm1, %v1761_v46  ;;  %1556 = vmatpush3.bf16.msra.mxu0 %v1843_v2 }
  0x59   : > { %1578 = vmatpush3.bf16.msra.mxu1 %v1849_v3  ;;  %1557 = vmatprep.subr.bf16.mxu0 %v1855_v4 }
  0x5a   : > { %1579 = vmatprep.subr.bf16.mxu1 %v1861_v5  ;;  %1003 = vmatprep.mubr.bf16.mxu0 %v1764_v47 }
  0x5b   : > { %1044 = vmatprep.mubr.bf16.mxu1 %v1767_v48 }
  0x5c   : > { %1558 = vmatpush3.bf16.msra.mxu0 %v1867_v6 }
  0x5d   : > { %1580 = vmatpush3.bf16.msra.mxu1 %v1873_v7  ;;  %1559 = vmatprep.subr.bf16.mxu0 %v1879_v8 }
  0x5e   : > { %1581 = vmatprep.subr.bf16.mxu1 %v1885_v9 }
  0x60   : > { %1560 = vmatpush3.bf16.msra.mxu0 %v1891_v10 }
  0x61   : > { %1582 = vmatpush3.bf16.msra.mxu1 %v1897_v11  ;;  %1561 = vmatprep.subr.bf16.mxu0 %v1903_v12 }
  0x62   : > { %1583 = vmatprep.subr.bf16.mxu1 %v1909_v13 }
  0x64   : > { %1562 = vmatpush3.bf16.msra.mxu0 %v1915_v14 }
  0x65   : > { %1584 = vmatpush3.bf16.msra.mxu1 %v1923_v15  ;;  %1563 = vmatprep.subr.bf16.mxu0 %v1929_v16 }
  0x66   : > { %1585 = vmatprep.subr.bf16.mxu1 %v1935_v17 }
  0x68   : > { %1564 = vmatpush3.bf16.msra.mxu0 %v1941_v18 }
  0x69   : > { %1586 = vmatpush3.bf16.msra.mxu1 %v1947_v19  ;;  %1565 = vmatprep.subr.bf16.mxu0 %v1953_v20 }
  0x6a   : > { %1587 = vmatprep.subr.bf16.mxu1 %v1959_v21 }
  0x6c   : > { %1566 = vmatpush3.bf16.msra.mxu0 %v1967_v22 }
  0x6d   : > { %1588 = vmatpush3.bf16.msra.mxu1 %v1973_v23  ;;  %1567 = vmatprep.subr.bf16.mxu0 %v1979_v24 }
  0x6e   : > { %1589 = vmatprep.subr.bf16.mxu1 %v1985_v25 }
  0x70   : > { %1568 = vmatpush3.bf16.msra.mxu0 %v1994_v26 }
  0x71   : > { %1590 = vmatpush3.bf16.msra.mxu1 %v2000_v27  ;;  %1569 = vmatprep.subr.bf16.mxu0 %v2006_v28 }
  0x72   : > { %1591 = vmatprep.subr.bf16.mxu1 %v2012_v29 }
  0x74   : > { %1570 = vmatpush3.bf16.msra.mxu0 %v2024_v30 }
  0x75   : > { %1592 = vmatpush3.bf16.msra.mxu1 %v2030_v31  ;;  %1677 = vmatprep.subr.bf16.mxu0 %v1784_v34 }
  0x76   : > { %1604 = vmatprep.subr.bf16.mxu1 %v1832_v0 }
  0x77   : > { %1004 = vmatmul.mubr.bf16.vlgmr.msra.gmra.mrb[12].mxu0 %v1762_v49 }
  0x78   : > { %1045 = vmatmul.mubr.bf16.vlgmr.msra.gmra.mrb[12].mxu1 %v1765_v50  ;;  %1678 = vmatpush3.bf16.msra.mxu0 %v2043_v37 }
  0x79   : > { %1605 = vmatpush3.bf16.msra.mxu1 %v1843_v2  ;;  %1679 = vmatprep.subr.bf16.mxu0 %v1784_v34 }
  0x7a   : > { %1606 = vmatprep.subr.bf16.mxu1 %v1855_v4  ;;  %1685 = vmatprep.mubr.msk.bf16.mxu0 %vm1785_vm0, %v1784_v34 }
  0x7b   : > { %1160 = vmatprep.mubr.bf16.mxu1 %v1771_v51 }
  0x7c   : > { %1680 = vmatpush3.bf16.msra.mxu0 %v2049_v38 }
  0x7d   : > { %1607 = vmatpush3.bf16.msra.mxu1 %v1867_v6  ;;  %1681 = vmatprep.subr.bf16.mxu0 %v1784_v34 }
  0x7e   : > { %1608 = vmatprep.subr.bf16.mxu1 %v1879_v8 }
  0x80   : > { %1682 = vmatpush3.bf16.msra.mxu0 %v2067_v40 }
  0x81   : > { %1609 = vmatpush3.bf16.msra.mxu1 %v1891_v10  ;;  %1683 = vmatprep.subr.bf16.mxu0 %v1784_v34 }
  0x82   : > { %1610 = vmatprep.subr.bf16.mxu1 %v1903_v12 }
  0x84   : > { %1684 = vmatpush3.bf16.msra.mxu0 %v2082_v41 }
  0x85   : > { %1611 = vmatpush3.bf16.msra.mxu1 %v1915_v14  ;;  %1626 = vmatprep.subr.bf16.mxu0 %v1837_v1 }
  0x86   : > { %1612 = vmatprep.subr.bf16.mxu1 %v1929_v16 }
  0x87   : > { %1686 = vmatmul.mubr.msk.bf16.vlgmr.msra.gmra.mrb[16].mxu0 %vm653_vm1, %v1768_v52 }
  0x88   : > { %1627 = vmatpush3.bf16.msra.mxu0 %v1849_v3  ;;  %1201 = vmatprep.mubr.bf16.mxu0 %v1774_v53 }
  0x89   : > { %1613 = vmatpush3.bf16.msra.mxu1 %v1941_v18  ;;  %1628 = vmatprep.subr.bf16.mxu0 %v1861_v5 }
  0x8a   : > { %1614 = vmatprep.subr.bf16.mxu1 %v1953_v20 }
  0x8c   : > { %1629 = vmatpush3.bf16.msra.mxu0 %v1873_v7 }
  0x8d   : > { %1615 = vmatpush3.bf16.msra.mxu1 %v1967_v22  ;;  %1630 = vmatprep.subr.bf16.mxu0 %v1885_v9 }
  0x8e   : > { %1616 = vmatprep.subr.bf16.mxu1 %v1979_v24 }
  0x90   : > { %1631 = vmatpush3.bf16.msra.mxu0 %v1897_v11 }
  0x91   : > { %1617 = vmatpush3.bf16.msra.mxu1 %v1994_v26  ;;  %1632 = vmatprep.subr.bf16.mxu0 %v1909_v13 }
  0x92   : > { %1618 = vmatprep.subr.bf16.mxu1 %v2006_v28 }
  0x94   : > { %1633 = vmatpush3.bf16.msra.mxu0 %v1923_v15 }
  0x95   : > { %1619 = vmatpush3.bf16.msra.mxu1 %v2024_v30  ;;  %1634 = vmatprep.subr.bf16.mxu0 %v1935_v17 }
  0x96   : > { %1689 = vmatprep.subr.bf16.mxu1 %v1784_v34 }
  0x98   : > { %1635 = vmatpush3.bf16.msra.mxu0 %v1947_v19  ;;  %1161 = vmatmul.mubr.bf16.vlgmr.msra.gmra.mrb[16].mxu1 %v1769_v54 }
  0x99   : > { %1690 = vmatpush3.bf16.msra.mxu1 %v2043_v37  ;;  %1636 = vmatprep.subr.bf16.mxu0 %v1959_v21 }
  0x9a   : > { %1691 = vmatprep.subr.bf16.mxu1 %v1784_v34  ;;  %1697 = vmatprep.mubr.msk.bf16.mxu1 %vm1785_vm0, %v1784_v34 }
  0x9c   : > { %1637 = vmatpush3.bf16.msra.mxu0 %v1973_v23 }
  0x9d   : > { %1692 = vmatpush3.bf16.msra.mxu1 %v2049_v38  ;;  %1638 = vmatprep.subr.bf16.mxu0 %v1985_v25 }
  0x9e   : > { %1693 = vmatprep.subr.bf16.mxu1 %v1784_v34 }
  0xa0   : > { %1639 = vmatpush3.bf16.msra.mxu0 %v2000_v27 }
  0xa1   : > { %1694 = vmatpush3.bf16.msra.mxu1 %v2067_v40  ;;  %1640 = vmatprep.subr.bf16.mxu0 %v2012_v29 }
  0xa2   : > { %1695 = vmatprep.subr.bf16.mxu1 %v1784_v34 }
  0xa4   : > { %1641 = vmatpush3.bf16.msra.mxu0 %v2030_v31 }
  0xa5   : > { %1696 = vmatpush3.bf16.msra.mxu1 %v2082_v41 }
  0xa7   : > { %1202 = vmatmul.mubr.bf16.vlgmr.msra.gmra.mrb[20].mxu0 %v1772_v55 }
  0xa8   : > { %1698 = vmatmul.mubr.msk.bf16.vlgmr.msra.gmra.mrb[20].mxu1 %vm653_vm1, %v1775_v56 }
  0xfa   : > { %v1473_v57 = vpop.f32.mrb[0].mxu0 }
  0xfb   : > { %v1495_v58 = vpop.f32.mrb[0].mxu1  ;;  %v1474_v59 = vpop.f32.mrb[1].mxu0 }
  0xfc   : > { %v1475_v60 = vadd.f32 %v1474_v59, %v1473_v57  ;;  %v1496_v61 = vpop.f32.mrb[1].mxu1  ;;  %v1476_v62 = vpop.f32.mrb[2].mxu0 }
  0xfd   : > { %v1497_v63 = vadd.f32 %v1496_v61, %v1495_v58  ;;  %v1498_v0 = vpop.f32.mrb[2].mxu1  ;;  %v1477_v1 = vpop.f32.mrb[3].mxu0 }
  0xfe   : > { %v1478_v2 = vadd.f32 %v1477_v1, %v1476_v62  ;;  %v1499_v3 = vpop.f32.mrb[3].mxu1 }
  0xff   : > { %v1500_v4 = vadd.f32 %v1499_v3, %v1498_v0  ;;  %v733_v5 = vadd.f32 %v1497_v63, %v1475_v60 }
 0x101   : > { %v736_v6 = vadd.f32 %v1500_v4, %v1478_v2 }
 0x10a   : > { %v773_v7 = vpop.f32.mrb[4].mxu0 }
 0x10b   : > { %v2232_v8 = vadd.f32 %v773_v7, %v733_v5  ;;  %v1663_v9 = vpop.f32.mrb[5].mxu0 }
 0x10c   : > { %v776_v10 = vpop.f32.mrb[6].mxu0 }
 0x10d   : > { %v2234_v11 = vadd.f32 %v776_v10, %v736_v6  ;;  %v1664_v12 = vpop.f32.mrb[7].mxu0 }
 0x10e   : > { %v1445_v12 = vld [vmem:[%s2253_s5] ss:$0 sm:$0xff] }
 0x11b   : > { %v1522_v13 = vpop.f32.mrb[4].mxu1 }
 0x11c   : > { %v1523_v14 = vpop.f32.mrb[5].mxu1 }
 0x11d   : > { %v1524_v15 = vadd.f32 %v1523_v14, %v1522_v13  ;;  %v1525_v16 = vpop.f32.mrb[6].mxu1 }
 0x11e   : > { %v1526_v17 = vpop.f32.mrb[7].mxu1 }
 0x11f   : > { %v1527_v18 = vadd.f32 %v1526_v17, %v1525_v16 }
 0x12a   : > { %v1544_v19 = vpop.f32.mrb[8].mxu0 }
 0x12b   : > { %v1545_v20 = vpop.f32.mrb[9].mxu0  ;;  %v930_v21 = vpop.f32.mrb[8].mxu1 }
 0x12c   : > { %v1546_v22 = vadd.f32 %v1545_v20, %v1544_v19  ;;  %v1547_v23 = vpop.f32.mrb[10].mxu0  ;;  %v1675_v24 = vpop.f32.mrb[9].mxu1 }
 0x12d   : > { %v1548_v25 = vpop.f32.mrb[11].mxu0  ;;  %v933_v26 = vpop.f32.mrb[10].mxu1 }
 0x12e   : > { %v1549_v27 = vadd.f32 %v1548_v25, %v1547_v23  ;;  %v890_v28 = vadd.f32 %v1546_v22, %v1524_v15  ;;  %v1676_v29 = vpop.f32.mrb[11].mxu1 }
 0x130   : > { %v931_v30 = vadd.f32 %v930_v21, %v890_v28  ;;  %v893_v31 = vadd.f32 %v1549_v27, %v1527_v18 }
 0x132   : > { %v1251_v32 = vmax.f32 %v2232_v8, %v931_v30  ;;  %v934_v33 = vadd.f32 %v933_v26, %v893_v31 }
 0x134   : > { %v1252_v34 = vmax.f32 %v2234_v11, %v934_v33 }
 0x14a   : > { %v1571_v35 = vpop.f32.mrb[12].mxu0 }
 0x14b   : > { %v1593_v36 = vpop.f32.mrb[12].mxu1  ;;  %v1572_v37 = vpop.f32.mrb[13].mxu0 }
 0x14c   : > { %v1573_v38 = vadd.f32 %v1572_v37, %v1571_v35  ;;  %v1594_v39 = vpop.f32.mrb[13].mxu1  ;;  %v1574_v40 = vpop.f32.mrb[14].mxu0 }
 0x14d   : > { %v1595_v41 = vadd.f32 %v1594_v39, %v1593_v36  ;;  %v1596_v42 = vpop.f32.mrb[14].mxu1  ;;  %v1575_v43 = vpop.f32.mrb[15].mxu0 }
 0x14e   : > { %v1576_v44 = vadd.f32 %v1575_v43, %v1574_v40  ;;  %v1597_v45 = vpop.f32.mrb[15].mxu1 }
 0x14f   : > { %v1598_v46 = vadd.f32 %v1597_v45, %v1596_v42  ;;  %v1047_v47 = vadd.f32 %v1595_v41, %v1573_v38 }
 0x151   : > { %v1050_v48 = vadd.f32 %v1598_v46, %v1576_v44 }
 0x15a   : > { %v1087_v49 = vpop.f32.mrb[16].mxu0 }
 0x15b   : > { %v1088_v50 = vadd.f32 %v1087_v49, %v1047_v47  ;;  %v1687_v51 = vpop.f32.mrb[17].mxu0 }
 0x15c   : > { %v1090_v52 = vpop.f32.mrb[18].mxu0 }
 0x15d   : > { %v1091_v53 = vadd.f32 %v1090_v52, %v1050_v48  ;;  %v1688_v54 = vpop.f32.mrb[19].mxu0 }
 0x16b   : > { %v1620_v55 = vpop.f32.mrb[16].mxu1 }
 0x16c   : > { %v1621_v56 = vpop.f32.mrb[17].mxu1 }
 0x16d   : > { %v1622_v57 = vadd.f32 %v1621_v56, %v1620_v55  ;;  %v1623_v58 = vpop.f32.mrb[18].mxu1 }
 0x16e   : > { %v1624_v59 = vpop.f32.mrb[19].mxu1 }
 0x16f   : > { %v1625_v60 = vadd.f32 %v1624_v59, %v1623_v58 }
 0x17a   : > { %v1642_v61 = vpop.f32.mrb[20].mxu0 }
 0x17b   : > { %v1643_v62 = vpop.f32.mrb[21].mxu0  ;;  %v1244_v63 = vpop.f32.mrb[20].mxu1 }
 0x17c   : > { %v1644_v0 = vadd.f32 %v1643_v62, %v1642_v61  ;;  %v1645_v1 = vpop.f32.mrb[22].mxu0  ;;  %v1699_v2 = vpop.f32.mrb[21].mxu1 }
 0x17d   : > { %v1646_v3 = vpop.f32.mrb[23].mxu0  ;;  %v1247_v4 = vpop.f32.mrb[22].mxu1 }
 0x17e   : > { %v1204_v5 = vadd.f32 %v1644_v0, %v1622_v57  ;;  %v1647_v6 = vadd.f32 %v1646_v3, %v1645_v1  ;;  %v1700_v7 = vpop.f32.mrb[23].mxu1 }
 0x180   : > { %v1245_v8 = vadd.f32 %v1244_v63, %v1204_v5  ;;  %v1207_v9 = vadd.f32 %v1647_v6, %v1625_v60 }
 0x182   : > { %v1253_v10 = vmax.f32 %v1088_v50, %v1245_v8  ;;  %v1248_v11 = vadd.f32 %v1247_v4, %v1207_v9 }
 0x184   : > { %v1255_v13 = vmax.f32 %v1251_v32, %v1253_v10  ;;  %v1254_v14 = vmax.f32 %v1091_v53, %v1248_v11 }
 0x186   : > { %v1264_v15 = vadd.f32 %v1445_v12, %v1255_v13  ;;  %v1256_v16 = vmax.f32 %v1252_v34, %v1254_v14 }
 0x188   : > { %v1265_v17 = vadd.f32 %v1445_v12, %v1256_v16  ;;  %v1266_v18 = vmax.f32 %v1264_v15, 0.0 }
 0x18a   : > { %v1267_v19 = vmax.f32 %v1265_v17, 0.0 }
 0x18c   : > { %v1455_v20 = vpack.c.bf16 %v1267_v19, %v1266_v18 }
 0x18e   : > { %1456 = vst [vmem:[%s331_s25] sm:$0xff] %v1455_v20  }
 0x18f PF: > { %s16_s21 = sadd.s32 1, %s1782_s21  }
 0x190   : > { %p13_p4 = scmp.ge.s32.totalorder %s16_s21, 4  }
 0x192   :  { %15 = sbr.rel (!%p13_p4) target bundleno = 1 (0x1), region = 83 }

// kernel: cifar10net_forward.7
= control target key start
LH: loop header
LB: loop body
LE: loop exit
PB: predicated region body
PF: predicated region fallthrough
CT: control target
= control target key end

     0   :  { %v288_v38 = vlaneseq  ;;  %v3129_v39 = vmov 1966171168   ;;  %s4109_s0 = inlined_call_operand.vmem [shape: bf16[2,2048], index: 0, kind: input, shape index: {}]   ;;  %s4110_s1 = inlined_call_operand.vmem [shape: bf16[2048,256], index: 1, kind: input, shape index: {}]   ;;  %s4111_s2 = inlined_call_operand.vmem [shape: f32[1,256], index: 2, kind: input, shape index: {}]   ;;  %s4112_s3 = inlined_call_operand.vmem [shape: bf16[256,128], index: 3, kind: input, shape index: {}]   ;;  %s4113_s4 = inlined_call_operand.vmem [shape: f32[1,128], index: 4, kind: input, shape index: {}]   ;;  %s4114_s5 = inlined_call_operand.vmem [shape: bf16[128,10], index: 5, kind: input, shape index: {}]   ;;  %s4115_s6 = inlined_call_operand.vmem [shape: f32[1,10], index: 6, kind: input, shape index: {}]   ;;  %s4116_s7 = inlined_call_operand.hbm [shape: f32[2,10], index: 7, kind: output, shape index: {}]  }
   0x1   :  { %v2695_v0 = vld [vmem:[%s4110_s1 + $0x4] ss:$8 sps:$4 sm:$0xff]   ;;  %v2699_v2 = vld [vmem:[%s4110_s1] ss:$8 sps:$4 sm:$0xff]   ;;  %v2701_v4 = vld [vmem:[%s4110_s1 + $0x14] ss:$8 sps:$4 sm:$0xff]   ;;  %v302_v40 = vunpack.c.l.s4 %v3129_v39 }
   0x2   :  { %v2697_v1 = vld [vmem:[%s4110_s1 + $0x304] ss:$8 sps:$4 sm:$0xff]   ;;  %1694 = vmatprep.subr.bf16.mxu1 %v2695_v0  ;;  %v2700_v3 = vld [vmem:[%s4110_s1 + $0x300] ss:$8 sps:$4 sm:$0xff]   ;;  %v2703_v5 = vld [vmem:[%s4110_s1 + $0x314] ss:$8 sps:$4 sm:$0xff]  }
   0x3   :  { %1817 = vmatprep.subr.bf16.mxu0 %v2697_v1  ;;  %1695 = vmatpush1.bf16.msra.mxu1 %v2699_v2  ;;  %v2705_v6 = vld [vmem:[%s4110_s1 + $0x10] ss:$8 sps:$4 sm:$0xff]   ;;  %v2707_v8 = vld [vmem:[%s4110_s1 + $0x24] ss:$8 sps:$4 sm:$0xff]   ;;  %v2711_v10 = vld [vmem:[%s4110_s1 + $0x20] ss:$8 sps:$4 sm:$0xff]   ;;  %v303_v46 = vunpack.c.0.s8 %v302_v40 }
   0x4   :  { %1818 = vmatpush1.bf16.msra.mxu0 %v2700_v3  ;;  %1696 = vmatprep.subr.bf16.mxu1 %v2701_v4  ;;  %v2706_v7 = vld [vmem:[%s4110_s1 + $0x310] ss:$8 sps:$4 sm:$0xff]   ;;  %v2709_v9 = vld [vmem:[%s4110_s1 + $0x324] ss:$8 sps:$4 sm:$0xff]   ;;  %v2712_v11 = vld [vmem:[%s4110_s1 + $0x320] ss:$8 sps:$4 sm:$0xff]  }
   0x5   :  { %1819 = vmatprep.subr.bf16.mxu0 %v2703_v5  ;;  %v2713_v12 = vld [vmem:[%s4110_s1 + $0x34] ss:$8 sps:$4 sm:$0xff]   ;;  %v2717_v14 = vld [vmem:[%s4110_s1 + $0x30] ss:$8 sps:$4 sm:$0xff]   ;;  %v2719_v16 = vld [vmem:[%s4110_s1 + $0x44] ss:$8 sps:$4 sm:$0xff]  }
   0x6   :  { %v2715_v13 = vld [vmem:[%s4110_s1 + $0x334] ss:$8 sps:$4 sm:$0xff]   ;;  %v2718_v15 = vld [vmem:[%s4110_s1 + $0x330] ss:$8 sps:$4 sm:$0xff]   ;;  %v2721_v17 = vld [vmem:[%s4110_s1 + $0x344] ss:$8 sps:$4 sm:$0xff]  }
   0x7   :  { %1697 = vmatpush1.bf16.msra.mxu1 %v2705_v6  ;;  %v2723_v18 = vld [vmem:[%s4110_s1 + $0x40] ss:$8 sps:$4 sm:$0xff]   ;;  %v2725_v20 = vld [vmem:[%s4110_s1 + $0x54] ss:$8 sps:$4 sm:$0xff]   ;;  %v2729_v22 = vld [vmem:[%s4110_s1 + $0x50] ss:$8 sps:$4 sm:$0xff]  }
   0x8   :  { %1820 = vmatpush1.bf16.msra.mxu0 %v2706_v7  ;;  %1698 = vmatprep.subr.bf16.mxu1 %v2707_v8  ;;  %v2724_v19 = vld [vmem:[%s4110_s1 + $0x340] ss:$8 sps:$4 sm:$0xff]   ;;  %v2727_v21 = vld [vmem:[%s4110_s1 + $0x354] ss:$8 sps:$4 sm:$0xff]   ;;  %v2730_v23 = vld [vmem:[%s4110_s1 + $0x350] ss:$8 sps:$4 sm:$0xff]  }
   0x9   :  { %1821 = vmatprep.subr.bf16.mxu0 %v2709_v9  ;;  %v2731_v24 = vld [vmem:[%s4110_s1 + $0x64] ss:$8 sps:$4 sm:$0xff]   ;;  %v2735_v26 = vld [vmem:[%s4110_s1 + $0x60] ss:$8 sps:$4 sm:$0xff]   ;;  %v2737_v28 = vld [vmem:[%s4110_s1 + $0x74] ss:$8 sps:$4 sm:$0xff]  }
   0xa   :  { %v2733_v25 = vld [vmem:[%s4110_s1 + $0x364] ss:$8 sps:$4 sm:$0xff]   ;;  %v2736_v27 = vld [vmem:[%s4110_s1 + $0x360] ss:$8 sps:$4 sm:$0xff]   ;;  %v2739_v29 = vld [vmem:[%s4110_s1 + $0x374] ss:$8 sps:$4 sm:$0xff]  }
   0xb   :  { %1699 = vmatpush1.bf16.msra.mxu1 %v2711_v10  ;;  %v2741_v30 = vld [vmem:[%s4110_s1 + $0x70] ss:$8 sps:$4 sm:$0xff]   ;;  %v2743_v32 = vld [vmem:[%s4110_s1 + $0x84] ss:$8 sps:$4 sm:$0xff]   ;;  %v2747_v34 = vld [vmem:[%s4110_s1 + $0x80] ss:$8 sps:$4 sm:$0xff]  }
   0xc   :  { %1822 = vmatpush1.bf16.msra.mxu0 %v2712_v11  ;;  %1700 = vmatprep.subr.bf16.mxu1 %v2713_v12  ;;  %v2742_v31 = vld [vmem:[%s4110_s1 + $0x370] ss:$8 sps:$4 sm:$0xff]   ;;  %v2745_v33 = vld [vmem:[%s4110_s1 + $0x384] ss:$8 sps:$4 sm:$0xff]   ;;  %v2748_v35 = vld [vmem:[%s4110_s1 + $0x380] ss:$8 sps:$4 sm:$0xff]  }
   0xd   :  { %1823 = vmatprep.subr.bf16.mxu0 %v2715_v13  ;;  %v2749_v36 = vld [vmem:[%s4110_s1 + $0x94] ss:$8 sps:$4 sm:$0xff]   ;;  %v2753_v41 = vld [vmem:[%s4110_s1 + $0x90] ss:$8 sps:$4 sm:$0xff]   ;;  %v2755_v43 = vld [vmem:[%s4110_s1 + $0xa4] ss:$8 sps:$4 sm:$0xff]  }
   0xe   :  { %v2751_v37 = vld [vmem:[%s4110_s1 + $0x394] ss:$8 sps:$4 sm:$0xff]   ;;  %v2754_v42 = vld [vmem:[%s4110_s1 + $0x390] ss:$8 sps:$4 sm:$0xff]   ;;  %v2757_v44 = vld [vmem:[%s4110_s1 + $0x3a4] ss:$8 sps:$4 sm:$0xff]  }
   0xf   :  { %1701 = vmatpush1.bf16.msra.mxu1 %v2717_v14  ;;  %v3299_v45 = vshrl.u32 %v288_v38, 7  ;;  %v2759_v47 = vld [vmem:[%s4110_s1 + $0xa0] ss:$8 sps:$4 sm:$0xff]   ;;  %v2761_v49 = vld [vmem:[%s4110_s1 + $0xb4] ss:$8 sps:$4 sm:$0xff]  }
  0x10   :  { %1824 = vmatpush1.bf16.msra.mxu0 %v2718_v15  ;;  %1702 = vmatprep.subr.bf16.mxu1 %v2719_v16  ;;  %v2760_v48 = vld [vmem:[%s4110_s1 + $0x3a0] ss:$8 sps:$4 sm:$0xff]   ;;  %v2763_v50 = vld [vmem:[%s4110_s1 + $0x3b4] ss:$8 sps:$4 sm:$0xff]   ;;  %v2765_v53 = vld [vmem:[%s4110_s1 + $0xb0] ss:$8 sps:$4 sm:$0xff]  }
  0x11   :  { %1825 = vmatprep.subr.bf16.mxu0 %v2721_v17  ;;  %v3314_v51 = vsub.s32 %v303_v46, %v3299_v45  ;;  %v28_v52 = vld [vmem:[%s4109_s0] sm:$0xff]  ;;  %v2766_v56 = vld [vmem:[%s4110_s1 + $0x3b0] ss:$8 sps:$4 sm:$0xff]   ;;  %v2773_v1 = vld [vmem:[%s4110_s1 + $0xd4] ss:$8 sps:$4 sm:$0xff]  }
  0x12   :  { %v300_v54 = vcombine.high %v28_v52, %v28_v52  ;;  %v2767_v57 = vld [vmem:[%s4110_s1 + $0xc4] ss:$8 sps:$4 sm:$0xff]   ;;  %v2771_v61 = vld [vmem:[%s4110_s1 + $0xc0] ss:$8 sps:$4 sm:$0xff]   ;;  %v2775_v2 = vld [vmem:[%s4110_s1 + $0x3d4] ss:$8 sps:$4 sm:$0xff]  }
  0x13   :  { %1703 = vmatpush1.bf16.msra.mxu1 %v2723_v18  ;;  %v307_v55 = vrot.slane %v28_v52, %v3314_v51  ;;  %v2769_v58 = vld [vmem:[%s4110_s1 + $0x3c4] ss:$8 sps:$4 sm:$0xff]   ;;  %v2772_v0 = vld [vmem:[%s4110_s1 + $0x3c0] ss:$8 sps:$4 sm:$0xff]   ;;  %v2777_v4 = vld [vmem:[%s4110_s1 + $0xd0] ss:$8 sps:$4 sm:$0xff]  }
  0x14   :  { %1826 = vmatpush1.bf16.msra.mxu0 %v2724_v19  ;;  %1704 = vmatprep.subr.bf16.mxu1 %v2725_v20  ;;  %v314_v60 = vrot.slane %v300_v54, %v3314_v51  ;;  %v2778_v6 = vld [vmem:[%s4110_s1 + $0x3d0] ss:$8 sps:$4 sm:$0xff]   ;;  %v2779_v7 = vld [vmem:[%s4110_s1 + $0xe4] ss:$8 sps:$4 sm:$0xff]   ;;  %v2783_v9 = vld [vmem:[%s4110_s1 + $0xe0] ss:$8 sps:$4 sm:$0xff]  }
  0x15   :  { %1827 = vmatprep.subr.bf16.mxu0 %v2727_v21  ;;  %v315_v59 = vcombine.high %v307_v55, %v307_v55  ;;  %v2781_v8 = vld [vmem:[%s4110_s1 + $0x3e4] ss:$8 sps:$4 sm:$0xff]   ;;  %v2784_v10 = vld [vmem:[%s4110_s1 + $0x3e0] ss:$8 sps:$4 sm:$0xff]   ;;  %v2785_v11 = vld [vmem:[%s4110_s1 + $0xf4] ss:$8 sps:$4 sm:$0xff]   ;;  %v3394_v19 = vrot.slane %v307_v55, %v3314_v51 }
  0x16   :  { %v316_v63 = vcombine.high %v314_v60, %v314_v60  ;;  %v2787_v12 = vld [vmem:[%s4110_s1 + $0x3f4] ss:$8 sps:$4 sm:$0xff]   ;;  %v2789_v13 = vld [vmem:[%s4110_s1 + $0xf0] ss:$8 sps:$4 sm:$0xff]   ;;  %v3379_v14 = vrot.slane %v314_v60, %v3314_v51  ;;  %v2794_v16 = vld [vmem:[%s4110_s1 + $0x104] ss:$8 sps:$4 sm:$0xff]  }
  0x17   :  { %1705 = vmatpush1.bf16.msra.mxu1 %v2729_v22  ;;  %v337_v62 = vrot.slane %v315_v59, %v3314_v51  ;;  %v2790_v15 = vld [vmem:[%s4110_s1 + $0x3f0] ss:$8 sps:$4 sm:$0xff]   ;;  %v2797_v17 = vld [vmem:[%s4110_s1 + $0x404] ss:$8 sps:$4 sm:$0xff]   ;;  %v2792_v18 = vld [vmem:[%s4110_s1 + $0x100] ss:$8 sps:$4 sm:$0xff]  }
  0x18   :  { %1828 = vmatpush1.bf16.msra.mxu0 %v2730_v23  ;;  %1706 = vmatprep.subr.bf16.mxu1 %v2731_v24  ;;  %v3347_v3 = vrot.slane %v316_v63, %v3314_v51  ;;  %v346_v20 = vcombine.high %v3379_v14, %v3379_v14  ;;  %v2795_v21 = vld [vmem:[%s4110_s1 + $0x400] ss:$8 sps:$4 sm:$0xff]   ;;  %v2800_v22 = vld [vmem:[%s4110_s1 + $0x114] ss:$8 sps:$4 sm:$0xff]   ;;  %v2834_v54 = vld [vmem:[%s4110_s1 + $0x170] ss:$8 sps:$4 sm:$0xff]  }
  0x19   :  { %1829 = vmatprep.subr.bf16.mxu0 %v2733_v25  ;;  %1726 = vmatprep.mubr.bf16.mxu1 %v337_v62  ;;  %v2803_v23 = vld [vmem:[%s4110_s1 + $0x414] ss:$8 sps:$4 sm:$0xff]   ;;  %v347_v24 = vcombine.high %v337_v62, %v337_v62  ;;  %v2798_v25 = vld [vmem:[%s4110_s1 + $0x110] ss:$8 sps:$4 sm:$0xff]   ;;  %v2819_v38 = vld [vmem:[%s4110_s1 + $0x440] ss:$8 sps:$4 sm:$0xff]  }
  0x1a   :  { %v348_v5 = vcombine.high %v3347_v3, %v3347_v3  ;;  %v2824_v39 = vld [vmem:[%s4110_s1 + $0x154] ss:$8 sps:$4 sm:$0xff]   ;;  %v3471_v46 = vld [vmem:[%s4109_s0 + $0x8] sm:$0xff]  ;;  %v2837_v55 = vld [vmem:[%s4110_s1 + $0x470] ss:$8 sps:$4 sm:$0xff]  }
  0x1b   :  { %1707 = vmatpush1.bf16.msra.mxu1 %v2735_v26  ;;  %v2801_v26 = vld [vmem:[%s4110_s1 + $0x410] ss:$8 sps:$4 sm:$0xff]   ;;  %v2827_v40 = vld [vmem:[%s4110_s1 + $0x454] ss:$8 sps:$4 sm:$0xff]   ;;  %v2840_v59 = vld [vmem:[%s4110_s1 + $0x180] ss:$8 sps:$4 sm:$0xff]  }
  0x1c   :  { %1830 = vmatpush1.bf16.msra.mxu0 %v2736_v27  ;;  %1708 = vmatprep.subr.bf16.mxu1 %v2737_v28  ;;  %v2806_v27 = vld [vmem:[%s4110_s1 + $0x124] ss:$8 sps:$4 sm:$0xff]   ;;  %v2839_v52 = vld [vmem:[%s4110_s1 + $0x474] ss:$8 sps:$4 sm:$0xff]   ;;  %v2843_v60 = vld [vmem:[%s4110_s1 + $0x480] ss:$8 sps:$4 sm:$0xff]  }
  0x1d   :  { %1831 = vmatprep.subr.bf16.mxu0 %v2739_v29  ;;  %1849 = vmatprep.mubr.bf16.mxu0 %v348_v5  ;;  %v2809_v28 = vld [vmem:[%s4110_s1 + $0x424] ss:$8 sps:$4 sm:$0xff]   ;;  %v2804_v29 = vld [vmem:[%s4110_s1 + $0x120] ss:$8 sps:$4 sm:$0xff]   ;;  %v2851_v62 = vld [vmem:[%s4110_s1 + $0x494] ss:$8 sps:$4 sm:$0xff]  }
  0x1e   :  { %v2846_v63 = vld [vmem:[%s4110_s1 + $0x190] ss:$8 sps:$4 sm:$0xff]   ;;  %v2855_v5 = vld [vmem:[%s4110_s1 + $0x4a0] ss:$8 sps:$4 sm:$0xff]  }
  0x1f   :  { %1709 = vmatpush1.bf16.msra.mxu1 %v2741_v30  ;;  %v2807_v30 = vld [vmem:[%s4110_s1 + $0x420] ss:$8 sps:$4 sm:$0xff]  }
  0x20   :  { %1832 = vmatpush1.bf16.msra.mxu0 %v2742_v31  ;;  %1710 = vmatprep.subr.bf16.mxu1 %v2743_v32  ;;  %v2812_v31 = vld [vmem:[%s4110_s1 + $0x134] ss:$8 sps:$4 sm:$0xff]  }
  0x21   :  { %1833 = vmatprep.subr.bf16.mxu0 %v2745_v33  ;;  %v2815_v32 = vld [vmem:[%s4110_s1 + $0x434] ss:$8 sps:$4 sm:$0xff]   ;;  %v2810_v33 = vld [vmem:[%s4110_s1 + $0x130] ss:$8 sps:$4 sm:$0xff]  }
  0x23   :  { %1711 = vmatpush1.bf16.msra.mxu1 %v2747_v34  ;;  %v2813_v34 = vld [vmem:[%s4110_s1 + $0x430] ss:$8 sps:$4 sm:$0xff]  }
  0x24   :  { %1834 = vmatpush1.bf16.msra.mxu0 %v2748_v35  ;;  %1712 = vmatprep.subr.bf16.mxu1 %v2749_v36  ;;  %v2818_v35 = vld [vmem:[%s4110_s1 + $0x144] ss:$8 sps:$4 sm:$0xff]  }
  0x25   :  { %1835 = vmatprep.subr.bf16.mxu0 %v2751_v37  ;;  %v2821_v36 = vld [vmem:[%s4110_s1 + $0x444] ss:$8 sps:$4 sm:$0xff]   ;;  %v2816_v37 = vld [vmem:[%s4110_s1 + $0x140] ss:$8 sps:$4 sm:$0xff]  }
  0x27   :  { %1713 = vmatpush1.bf16.msra.mxu1 %v2753_v41  ;;  %v2822_v41 = vld [vmem:[%s4110_s1 + $0x150] ss:$8 sps:$4 sm:$0xff]  }
  0x28   :  { %1836 = vmatpush1.bf16.msra.mxu0 %v2754_v42  ;;  %1714 = vmatprep.subr.bf16.mxu1 %v2755_v43  ;;  %v2825_v42 = vld [vmem:[%s4110_s1 + $0x450] ss:$8 sps:$4 sm:$0xff]   ;;  %v2830_v43 = vld [vmem:[%s4110_s1 + $0x164] ss:$8 sps:$4 sm:$0xff]  }
  0x29   :  { %1837 = vmatprep.subr.bf16.mxu0 %v2757_v44  ;;  %v2833_v44 = vld [vmem:[%s4110_s1 + $0x464] ss:$8 sps:$4 sm:$0xff]  }
  0x2b   :  { %1715 = vmatpush1.bf16.msra.mxu1 %v2759_v47  ;;  %v2828_v47 = vld [vmem:[%s4110_s1 + $0x160] ss:$8 sps:$4 sm:$0xff]  }
  0x2c   :  { %1838 = vmatpush1.bf16.msra.mxu0 %v2760_v48  ;;  %1716 = vmatprep.subr.bf16.mxu1 %v2761_v49  ;;  %v2831_v48 = vld [vmem:[%s4110_s1 + $0x460] ss:$8 sps:$4 sm:$0xff]   ;;  %v3481_v49 = vrot.slane %v3471_v46, %v3314_v51 }
  0x2d   :  { %1839 = vmatprep.subr.bf16.mxu0 %v2763_v50  ;;  %v2836_v50 = vld [vmem:[%s4110_s1 + $0x174] ss:$8 sps:$4 sm:$0xff]  }
  0x2f   :  { %1717 = vmatpush1.bf16.msra.mxu1 %v2765_v53  ;;  %v364_v53 = vcombine.high %v3481_v49, %v3481_v49 }
  0x30   :  { %1840 = vmatpush1.bf16.msra.mxu0 %v2766_v56  ;;  %1718 = vmatprep.subr.bf16.mxu1 %v2767_v57  ;;  %v2842_v57 = vld [vmem:[%s4110_s1 + $0x184] ss:$8 sps:$4 sm:$0xff]  }
  0x31   :  { %1841 = vmatprep.subr.bf16.mxu0 %v2769_v58  ;;  %v3498_v56 = vrot.slane %v364_v53, %v3314_v51  ;;  %v2845_v58 = vld [vmem:[%s4110_s1 + $0x484] ss:$8 sps:$4 sm:$0xff]   ;;  %v2923_v53 = vld [vmem:[%s4110_s1 + $0x554] ss:$8 sps:$4 sm:$0xff]  }
  0x33   :  { %1719 = vmatpush1.bf16.msra.mxu1 %v2771_v61  ;;  %v2848_v61 = vld [vmem:[%s4110_s1 + $0x194] ss:$8 sps:$4 sm:$0xff]  }
  0x34   :  { %1842 = vmatpush1.bf16.msra.mxu0 %v2772_v0  ;;  %1720 = vmatprep.subr.bf16.mxu1 %v2773_v1  ;;  %v2849_v0 = vld [vmem:[%s4110_s1 + $0x490] ss:$8 sps:$4 sm:$0xff]   ;;  %v2854_v1 = vld [vmem:[%s4110_s1 + $0x1a4] ss:$8 sps:$4 sm:$0xff]  }
  0x35   :  { %1843 = vmatprep.subr.bf16.mxu0 %v2775_v2  ;;  %v2857_v2 = vld [vmem:[%s4110_s1 + $0x4a4] ss:$8 sps:$4 sm:$0xff]  }
  0x37   :  { %1721 = vmatpush1.bf16.msra.mxu1 %v2777_v4  ;;  %v2852_v4 = vld [vmem:[%s4110_s1 + $0x1a0] ss:$8 sps:$4 sm:$0xff]  }
  0x38   :  { %1844 = vmatpush1.bf16.msra.mxu0 %v2778_v6  ;;  %1722 = vmatprep.subr.bf16.mxu1 %v2779_v7  ;;  %v2860_v6 = vld [vmem:[%s4110_s1 + $0x1b4] ss:$8 sps:$4 sm:$0xff]  }
  0x39   :  { %1845 = vmatprep.subr.bf16.mxu0 %v2781_v8  ;;  %v2863_v7 = vld [vmem:[%s4110_s1 + $0x4b4] ss:$8 sps:$4 sm:$0xff]   ;;  %v2858_v8 = vld [vmem:[%s4110_s1 + $0x1b0] ss:$8 sps:$4 sm:$0xff]  }
  0x3b   :  { %1723 = vmatpush1.bf16.msra.mxu1 %v2783_v9  ;;  %v2861_v9 = vld [vmem:[%s4110_s1 + $0x4b0] ss:$8 sps:$4 sm:$0xff]  }
  0x3c   :  { %1846 = vmatpush1.bf16.msra.mxu0 %v2784_v10  ;;  %1724 = vmatprep.subr.bf16.mxu1 %v2785_v11  ;;  %v2866_v10 = vld [vmem:[%s4110_s1 + $0x1c4] ss:$8 sps:$4 sm:$0xff]  }
  0x3d   :  { %1847 = vmatprep.subr.bf16.mxu0 %v2787_v12  ;;  %v2869_v11 = vld [vmem:[%s4110_s1 + $0x4c4] ss:$8 sps:$4 sm:$0xff]   ;;  %v2864_v12 = vld [vmem:[%s4110_s1 + $0x1c0] ss:$8 sps:$4 sm:$0xff]  }
  0x3f   :  { %1725 = vmatpush1.bf16.msra.mxu1 %v2789_v13  ;;  %v2867_v13 = vld [vmem:[%s4110_s1 + $0x4c0] ss:$8 sps:$4 sm:$0xff]  }
  0x40   :  { %1848 = vmatpush1.bf16.msra.mxu0 %v2790_v15  ;;  %1735 = vmatprep.subr.bf16.mxu1 %v2794_v16  ;;  %v2872_v15 = vld [vmem:[%s4110_s1 + $0x1d4] ss:$8 sps:$4 sm:$0xff]  }
  0x41   :  { %1858 = vmatprep.subr.bf16.mxu0 %v2797_v17  ;;  %v2875_v16 = vld [vmem:[%s4110_s1 + $0x4d4] ss:$8 sps:$4 sm:$0xff]   ;;  %v2870_v17 = vld [vmem:[%s4110_s1 + $0x1d0] ss:$8 sps:$4 sm:$0xff]  }
  0x42   :  { %1727 = vmatmul.mubr.bf16.vlgmr.msra.gmra.mrb[0].mxu1 %v3394_v19 }
  0x43   :  { %1850 = vmatmul.mubr.bf16.vlgmr.msra.gmra.mrb[0].mxu0 %v346_v20  ;;  %1736 = vmatpush1.bf16.msra.mxu1 %v2792_v18  ;;  %v2873_v18 = vld [vmem:[%s4110_s1 + $0x4d0] ss:$8 sps:$4 sm:$0xff]   ;;  %v2878_v20 = vld [vmem:[%s4110_s1 + $0x1e4] ss:$8 sps:$4 sm:$0xff]  }
  0x44   :  { %1859 = vmatpush1.bf16.msra.mxu0 %v2795_v21  ;;  %1737 = vmatprep.subr.bf16.mxu1 %v2800_v22  ;;  %v2881_v21 = vld [vmem:[%s4110_s1 + $0x4e4] ss:$8 sps:$4 sm:$0xff]   ;;  %v2876_v22 = vld [vmem:[%s4110_s1 + $0x1e0] ss:$8 sps:$4 sm:$0xff]  }
  0x45   :  { %1860 = vmatprep.subr.bf16.mxu0 %v2803_v23  ;;  %1767 = vmatprep.mubr.bf16.mxu1 %v347_v24  ;;  %v2879_v23 = vld [vmem:[%s4110_s1 + $0x4e0] ss:$8 sps:$4 sm:$0xff]   ;;  %v2884_v24 = vld [vmem:[%s4110_s1 + $0x1f4] ss:$8 sps:$4 sm:$0xff]  }
  0x46   :  { %1890 = vmatprep.mubr.bf16.mxu0 %v3498_v56 }
  0x47   :  { %1738 = vmatpush1.bf16.msra.mxu1 %v2798_v25  ;;  %v2887_v25 = vld [vmem:[%s4110_s1 + $0x4f4] ss:$8 sps:$4 sm:$0xff]  }
  0x48   :  { %1861 = vmatpush1.bf16.msra.mxu0 %v2801_v26  ;;  %1739 = vmatprep.subr.bf16.mxu1 %v2806_v27  ;;  %v2882_v26 = vld [vmem:[%s4110_s1 + $0x1f0] ss:$8 sps:$4 sm:$0xff]  }
  0x49   :  { %1862 = vmatprep.subr.bf16.mxu0 %v2809_v28  ;;  %v2885_v27 = vld [vmem:[%s4110_s1 + $0x4f0] ss:$8 sps:$4 sm:$0xff]   ;;  %v2890_v28 = vld [vmem:[%s4110_s1 + $0x204] ss:$8 sps:$4 sm:$0xff]  }
  0x4b   :  { %1740 = vmatpush1.bf16.msra.mxu1 %v2804_v29  ;;  %v2893_v29 = vld [vmem:[%s4110_s1 + $0x504] ss:$8 sps:$4 sm:$0xff]  }
  0x4c   :  { %1863 = vmatpush1.bf16.msra.mxu0 %v2807_v30  ;;  %1741 = vmatprep.subr.bf16.mxu1 %v2812_v31  ;;  %v345_v30 = vcombine.high %v3394_v19, %v3394_v19  ;;  %v3607_v31 = vrot.slane %v3481_v49, %v3314_v51  ;;  %v2896_v19 = vld [vmem:[%s4110_s1 + $0x214] ss:$8 sps:$4 sm:$0xff]   ;;  %v2912_v49 = vld [vmem:[%s4110_s1 + $0x240] ss:$8 sps:$4 sm:$0xff]  }
  0x4d   :  { %1864 = vmatprep.subr.bf16.mxu0 %v2815_v32  ;;  %v2888_v32 = vld [vmem:[%s4110_s1 + $0x200] ss:$8 sps:$4 sm:$0xff]  }
  0x4f   :  { %1742 = vmatpush1.bf16.msra.mxu1 %v2810_v33  ;;  %v2891_v33 = vld [vmem:[%s4110_s1 + $0x500] ss:$8 sps:$4 sm:$0xff]  }
  0x50   :  { %1865 = vmatpush1.bf16.msra.mxu0 %v2813_v34  ;;  %1743 = vmatprep.subr.bf16.mxu1 %v2818_v35  ;;  %v2899_v34 = vld [vmem:[%s4110_s1 + $0x514] ss:$8 sps:$4 sm:$0xff]   ;;  %v396_v35 = vcombine.high %v3498_v56, %v3498_v56  ;;  %v2926_v56 = vld [vmem:[%s4110_s1 + $0x264] ss:$8 sps:$4 sm:$0xff]  }
  0x51   :  { %1866 = vmatprep.subr.bf16.mxu0 %v2821_v36  ;;  %v2894_v36 = vld [vmem:[%s4110_s1 + $0x210] ss:$8 sps:$4 sm:$0xff]  }
  0x53   :  { %1744 = vmatpush1.bf16.msra.mxu1 %v2816_v37  ;;  %v2897_v37 = vld [vmem:[%s4110_s1 + $0x510] ss:$8 sps:$4 sm:$0xff]  }
  0x54   :  { %1867 = vmatpush1.bf16.msra.mxu0 %v2819_v38  ;;  %1745 = vmatprep.subr.bf16.mxu1 %v2824_v39  ;;  %v2902_v38 = vld [vmem:[%s4110_s1 + $0x224] ss:$8 sps:$4 sm:$0xff]  }
  0x55   :  { %1868 = vmatprep.subr.bf16.mxu0 %v2827_v40  ;;  %v2905_v39 = vld [vmem:[%s4110_s1 + $0x524] ss:$8 sps:$4 sm:$0xff]   ;;  %v2900_v40 = vld [vmem:[%s4110_s1 + $0x220] ss:$8 sps:$4 sm:$0xff]  }
  0x57   :  { %1746 = vmatpush1.bf16.msra.mxu1 %v2822_v41  ;;  %v2903_v41 = vld [vmem:[%s4110_s1 + $0x520] ss:$8 sps:$4 sm:$0xff]  }
  0x58   :  { %1869 = vmatpush1.bf16.msra.mxu0 %v2825_v42  ;;  %1747 = vmatprep.subr.bf16.mxu1 %v2830_v43  ;;  %v2908_v42 = vld [vmem:[%s4110_s1 + $0x234] ss:$8 sps:$4 sm:$0xff]   ;;  %v2906_v43 = vld [vmem:[%s4110_s1 + $0x230] ss:$8 sps:$4 sm:$0xff]  }
  0x59   :  { %1870 = vmatprep.subr.bf16.mxu0 %v2833_v44  ;;  %v2909_v44 = vld [vmem:[%s4110_s1 + $0x530] ss:$8 sps:$4 sm:$0xff]  }
  0x5b   :  { %1748 = vmatpush1.bf16.msra.mxu1 %v2828_v47  ;;  %v2914_v47 = vld [vmem:[%s4110_s1 + $0x244] ss:$8 sps:$4 sm:$0xff]  }
  0x5c   :  { %1871 = vmatpush1.bf16.msra.mxu0 %v2831_v48  ;;  %1749 = vmatprep.subr.bf16.mxu1 %v2836_v50  ;;  %v2917_v48 = vld [vmem:[%s4110_s1 + $0x544] ss:$8 sps:$4 sm:$0xff]   ;;  %v2915_v50 = vld [vmem:[%s4110_s1 + $0x540] ss:$8 sps:$4 sm:$0xff]  }
  0x5d   :  { %1872 = vmatprep.subr.bf16.mxu0 %v2839_v52  ;;  %v2920_v52 = vld [vmem:[%s4110_s1 + $0x254] ss:$8 sps:$4 sm:$0xff]  }
  0x5f   :  { %1750 = vmatpush1.bf16.msra.mxu1 %v2834_v54  ;;  %v2918_v54 = vld [vmem:[%s4110_s1 + $0x250] ss:$8 sps:$4 sm:$0xff]  }
  0x60   :  { %1873 = vmatpush1.bf16.msra.mxu0 %v2837_v55  ;;  %1751 = vmatprep.subr.bf16.mxu1 %v2842_v57  ;;  %v2921_v55 = vld [vmem:[%s4110_s1 + $0x550] ss:$8 sps:$4 sm:$0xff]   ;;  %v2929_v57 = vld [vmem:[%s4110_s1 + $0x564] ss:$8 sps:$4 sm:$0xff]  }
  0x61   :  { %1874 = vmatprep.subr.bf16.mxu0 %v2845_v58  ;;  %v2924_v58 = vld [vmem:[%s4110_s1 + $0x260] ss:$8 sps:$4 sm:$0xff]  }
  0x63   :  { %1752 = vmatpush1.bf16.msra.mxu1 %v2840_v59  ;;  %v2927_v59 = vld [vmem:[%s4110_s1 + $0x560] ss:$8 sps:$4 sm:$0xff]  }
  0x64   :  { %1875 = vmatpush1.bf16.msra.mxu0 %v2843_v60  ;;  %1753 = vmatprep.subr.bf16.mxu1 %v2848_v61  ;;  %v2932_v60 = vld [vmem:[%s4110_s1 + $0x274] ss:$8 sps:$4 sm:$0xff]  }
  0x65   :  { %1876 = vmatprep.subr.bf16.mxu0 %v2851_v62  ;;  %v2935_v61 = vld [vmem:[%s4110_s1 + $0x574] ss:$8 sps:$4 sm:$0xff]   ;;  %v2930_v62 = vld [vmem:[%s4110_s1 + $0x270] ss:$8 sps:$4 sm:$0xff]  }
  0x67   :  { %1754 = vmatpush1.bf16.msra.mxu1 %v2846_v63  ;;  %v2933_v63 = vld [vmem:[%s4110_s1 + $0x570] ss:$8 sps:$4 sm:$0xff]  }
  0x68   :  { %1877 = vmatpush1.bf16.msra.mxu0 %v2849_v0  ;;  %1755 = vmatprep.subr.bf16.mxu1 %v2854_v1  ;;  %v2938_v0 = vld [vmem:[%s4110_s1 + $0x284] ss:$8 sps:$4 sm:$0xff]  }
  0x69   :  { %1878 = vmatprep.subr.bf16.mxu0 %v2857_v2  ;;  %v2941_v1 = vld [vmem:[%s4110_s1 + $0x584] ss:$8 sps:$4 sm:$0xff]   ;;  %v2936_v2 = vld [vmem:[%s4110_s1 + $0x280] ss:$8 sps:$4 sm:$0xff]  }
  0x6b   :  { %1756 = vmatpush1.bf16.msra.mxu1 %v2852_v4  ;;  %v2939_v4 = vld [vmem:[%s4110_s1 + $0x580] ss:$8 sps:$4 sm:$0xff]  }
  0x6c   :  { %1879 = vmatpush1.bf16.msra.mxu0 %v2855_v5  ;;  %1757 = vmatprep.subr.bf16.mxu1 %v2860_v6  ;;  %v2944_v5 = vld [vmem:[%s4110_s1 + $0x294] ss:$8 sps:$4 sm:$0xff]  }
  0x6d   :  { %1880 = vmatprep.subr.bf16.mxu0 %v2863_v7  ;;  %v2947_v6 = vld [vmem:[%s4110_s1 + $0x594] ss:$8 sps:$4 sm:$0xff]   ;;  %v2942_v7 = vld [vmem:[%s4110_s1 + $0x290] ss:$8 sps:$4 sm:$0xff]  }
  0x6f   :  { %1758 = vmatpush1.bf16.msra.mxu1 %v2858_v8  ;;  %v2945_v8 = vld [vmem:[%s4110_s1 + $0x590] ss:$8 sps:$4 sm:$0xff]  }
  0x70   :  { %1881 = vmatpush1.bf16.msra.mxu0 %v2861_v9  ;;  %1759 = vmatprep.subr.bf16.mxu1 %v2866_v10  ;;  %v2950_v9 = vld [vmem:[%s4110_s1 + $0x2a4] ss:$8 sps:$4 sm:$0xff]  }
  0x71   :  { %1882 = vmatprep.subr.bf16.mxu0 %v2869_v11  ;;  %v2953_v10 = vld [vmem:[%s4110_s1 + $0x5a4] ss:$8 sps:$4 sm:$0xff]   ;;  %v2948_v11 = vld [vmem:[%s4110_s1 + $0x2a0] ss:$8 sps:$4 sm:$0xff]  }
  0x73   :  { %1760 = vmatpush1.bf16.msra.mxu1 %v2864_v12  ;;  %v2951_v12 = vld [vmem:[%s4110_s1 + $0x5a0] ss:$8 sps:$4 sm:$0xff]  }
  0x74   :  { %1883 = vmatpush1.bf16.msra.mxu0 %v2867_v13  ;;  %1761 = vmatprep.subr.bf16.mxu1 %v2872_v15  ;;  %v2956_v13 = vld [vmem:[%s4110_s1 + $0x2b4] ss:$8 sps:$4 sm:$0xff]  }
  0x75   :  { %1884 = vmatprep.subr.bf16.mxu0 %v2875_v16  ;;  %v2959_v15 = vld [vmem:[%s4110_s1 + $0x5b4] ss:$8 sps:$4 sm:$0xff]   ;;  %v2954_v16 = vld [vmem:[%s4110_s1 + $0x2b0] ss:$8 sps:$4 sm:$0xff]  }
  0x77   :  { %1762 = vmatpush1.bf16.msra.mxu1 %v2870_v17  ;;  %v2957_v17 = vld [vmem:[%s4110_s1 + $0x5b0] ss:$8 sps:$4 sm:$0xff]  }
  0x78   :  { %1885 = vmatpush1.bf16.msra.mxu0 %v2873_v18  ;;  %1763 = vmatprep.subr.bf16.mxu1 %v2878_v20  ;;  %v2962_v18 = vld [vmem:[%s4110_s1 + $0x2c4] ss:$8 sps:$4 sm:$0xff]  }
  0x79   :  { %1886 = vmatprep.subr.bf16.mxu0 %v2881_v21  ;;  %v2965_v20 = vld [vmem:[%s4110_s1 + $0x5c4] ss:$8 sps:$4 sm:$0xff]   ;;  %v2960_v21 = vld [vmem:[%s4110_s1 + $0x2c0] ss:$8 sps:$4 sm:$0xff]  }
  0x7b   :  { %1764 = vmatpush1.bf16.msra.mxu1 %v2876_v22  ;;  %v2963_v22 = vld [vmem:[%s4110_s1 + $0x5c0] ss:$8 sps:$4 sm:$0xff]  }
  0x7c   :  { %1887 = vmatpush1.bf16.msra.mxu0 %v2879_v23  ;;  %1765 = vmatprep.subr.bf16.mxu1 %v2884_v24  ;;  %v2968_v23 = vld [vmem:[%s4110_s1 + $0x2d4] ss:$8 sps:$4 sm:$0xff]  }
  0x7d   :  { %1888 = vmatprep.subr.bf16.mxu0 %v2887_v25  ;;  %v2971_v24 = vld [vmem:[%s4110_s1 + $0x5d4] ss:$8 sps:$4 sm:$0xff]   ;;  %v2966_v25 = vld [vmem:[%s4110_s1 + $0x2d0] ss:$8 sps:$4 sm:$0xff]  }
  0x7f   :  { %1766 = vmatpush1.bf16.msra.mxu1 %v2882_v26  ;;  %v2969_v26 = vld [vmem:[%s4110_s1 + $0x5d0] ss:$8 sps:$4 sm:$0xff]  }
  0x80   :  { %1889 = vmatpush1.bf16.msra.mxu0 %v2885_v27  ;;  %1776 = vmatprep.subr.bf16.mxu1 %v2890_v28  ;;  %v2974_v27 = vld [vmem:[%s4110_s1 + $0x2e4] ss:$8 sps:$4 sm:$0xff]  }
  0x81   :  { %1899 = vmatprep.subr.bf16.mxu0 %v2893_v29  ;;  %v2977_v28 = vld [vmem:[%s4110_s1 + $0x5e4] ss:$8 sps:$4 sm:$0xff]   ;;  %v349_v29 = vcombine.high %v3471_v46, %v3471_v46  ;;  %v2983_v46 = vld [vmem:[%s4110_s1 + $0x5f4] ss:$8 sps:$4 sm:$0xff]  }
  0x82   :  { %1768 = vmatmul.mubr.bf16.vlgmr.msra.gmra.mrb[0].mxu1 %v345_v30  ;;  %v2972_v30 = vld [vmem:[%s4110_s1 + $0x2e0] ss:$8 sps:$4 sm:$0xff]  }
  0x83   :  { %1891 = vmatmul.mubr.bf16.vlgmr.msra.gmra.mrb[0].mxu0 %v3607_v31  ;;  %1777 = vmatpush1.bf16.msra.mxu1 %v2888_v32  ;;  %v2975_v32 = vld [vmem:[%s4110_s1 + $0x5e0] ss:$8 sps:$4 sm:$0xff]  }
  0x84   :  { %1900 = vmatpush1.bf16.msra.mxu0 %v2891_v33  ;;  %1778 = vmatprep.subr.bf16.mxu1 %v2896_v19  ;;  %v2980_v33 = vld [vmem:[%s4110_s1 + $0x2f4] ss:$8 sps:$4 sm:$0xff]   ;;  %v3796_v19 = vrot.slane %v349_v29, %v3314_v51 }
  0x85   :  { %1901 = vmatprep.subr.bf16.mxu0 %v2899_v34  ;;  %1808 = vmatprep.mubr.bf16.mxu1 %v3347_v3  ;;  %v2911_v3 = vld [vmem:[%s4110_s1 + $0x534] ss:$8 sps:$4 sm:$0xff]  }
  0x86   :  { %1931 = vmatprep.mubr.bf16.mxu0 %v396_v35 }
  0x87   :  { %1779 = vmatpush1.bf16.msra.mxu1 %v2894_v36 }
  0x88   :  { %1902 = vmatpush1.bf16.msra.mxu0 %v2897_v37  ;;  %1780 = vmatprep.subr.bf16.mxu1 %v2902_v38 }
  0x89   :  { %1903 = vmatprep.subr.bf16.mxu0 %v2905_v39 }
  0x8b   :  { %1781 = vmatpush1.bf16.msra.mxu1 %v2900_v40 }
  0x8c   :  { %1904 = vmatpush1.bf16.msra.mxu0 %v2903_v41  ;;  %1782 = vmatprep.subr.bf16.mxu1 %v2908_v42 }
  0x8d   :  { %1905 = vmatprep.subr.bf16.mxu0 %v2911_v3 }
  0x8f   :  { %1783 = vmatpush1.bf16.msra.mxu1 %v2906_v43 }
  0x90   :  { %1906 = vmatpush1.bf16.msra.mxu0 %v2909_v44  ;;  %1784 = vmatprep.subr.bf16.mxu1 %v2914_v47 }
  0x91   :  { %1907 = vmatprep.subr.bf16.mxu0 %v2917_v48 }
  0x93   :  { %1785 = vmatpush1.bf16.msra.mxu1 %v2912_v49 }
  0x94   :  { %1908 = vmatpush1.bf16.msra.mxu0 %v2915_v50  ;;  %1786 = vmatprep.subr.bf16.mxu1 %v2920_v52 }
  0x95   :  { %1909 = vmatprep.subr.bf16.mxu0 %v2923_v53 }
  0x97   :  { %1787 = vmatpush1.bf16.msra.mxu1 %v2918_v54 }
  0x98   :  { %1910 = vmatpush1.bf16.msra.mxu0 %v2921_v55  ;;  %1788 = vmatprep.subr.bf16.mxu1 %v2926_v56 }
  0x99   :  { %1911 = vmatprep.subr.bf16.mxu0 %v2929_v57 }
  0x9b   :  { %1789 = vmatpush1.bf16.msra.mxu1 %v2924_v58 }
  0x9c   :  { %1912 = vmatpush1.bf16.msra.mxu0 %v2927_v59  ;;  %1790 = vmatprep.subr.bf16.mxu1 %v2932_v60 }
  0x9d   :  { %1913 = vmatprep.subr.bf16.mxu0 %v2935_v61 }
  0x9f   :  { %1791 = vmatpush1.bf16.msra.mxu1 %v2930_v62 }
  0xa0   :  { %1914 = vmatpush1.bf16.msra.mxu0 %v2933_v63  ;;  %1792 = vmatprep.subr.bf16.mxu1 %v2938_v0 }
  0xa1   :  { %1915 = vmatprep.subr.bf16.mxu0 %v2941_v1 }
  0xa3   :  { %1793 = vmatpush1.bf16.msra.mxu1 %v2936_v2 }
  0xa4   :  { %1916 = vmatpush1.bf16.msra.mxu0 %v2939_v4  ;;  %1794 = vmatprep.subr.bf16.mxu1 %v2944_v5 }
  0xa5   :  { %1917 = vmatprep.subr.bf16.mxu0 %v2947_v6 }
  0xa7   :  { %1795 = vmatpush1.bf16.msra.mxu1 %v2942_v7 }
  0xa8   :  { %1918 = vmatpush1.bf16.msra.mxu0 %v2945_v8  ;;  %1796 = vmatprep.subr.bf16.mxu1 %v2950_v9 }
  0xa9   :  { %1919 = vmatprep.subr.bf16.mxu0 %v2953_v10 }
  0xab   :  { %1797 = vmatpush1.bf16.msra.mxu1 %v2948_v11 }
  0xac   :  { %1920 = vmatpush1.bf16.msra.mxu0 %v2951_v12  ;;  %1798 = vmatprep.subr.bf16.mxu1 %v2956_v13 }
  0xad   :  { %1921 = vmatprep.subr.bf16.mxu0 %v2959_v15 }
  0xaf   :  { %1799 = vmatpush1.bf16.msra.mxu1 %v2954_v16 }
  0xb0   :  { %1922 = vmatpush1.bf16.msra.mxu0 %v2957_v17  ;;  %1800 = vmatprep.subr.bf16.mxu1 %v2962_v18 }
  0xb1   :  { %1923 = vmatprep.subr.bf16.mxu0 %v2965_v20 }
  0xb3   :  { %1801 = vmatpush1.bf16.msra.mxu1 %v2960_v21 }
  0xb4   :  { %1924 = vmatpush1.bf16.msra.mxu0 %v2963_v22  ;;  %1802 = vmatprep.subr.bf16.mxu1 %v2968_v23 }
  0xb5   :  { %1925 = vmatprep.subr.bf16.mxu0 %v2971_v24 }
  0xb7   :  { %1803 = vmatpush1.bf16.msra.mxu1 %v2966_v25 }
  0xb8   :  { %1926 = vmatpush1.bf16.msra.mxu0 %v2969_v26  ;;  %1804 = vmatprep.subr.bf16.mxu1 %v2974_v27 }
  0xb9   :  { %1927 = vmatprep.subr.bf16.mxu0 %v2977_v28 }
  0xba   :  { %12 = vsyncpa [#allocation3], 0  ;;  %v2978_v34 = vld [vmem:[%s4110_s1 + $0x2f0] ss:$8 sps:$4 sm:$0xff]   ;;  %v365_v36 = vcombine.high %v3796_v19, %v3796_v19  ;;  %v2986_v37 = vld [vmem:[%s4110_s1 + $0x604] ss:$8 sps:$4 sm:$0xff]   ;;  %v394_v38 = vcombine.high %v3607_v31, %v3607_v31  ;;  %v3914_v9 = vrot.slane %v3796_v19, %v3314_v51 }
  0xbb   :  { %1805 = vmatpush1.bf16.msra.mxu1 %v2972_v30  ;;  %v2981_v35 = vld [vmem:[%s4110_s1 + $0x5f0] ss:$8 sps:$4 sm:$0xff]   ;;  %v2984_v39 = vld [vmem:[%s4110_s1 + $0x600] ss:$8 sps:$4 sm:$0xff]   ;;  %v2989_v41 = vld [vmem:[%s4110_s1 + $0x614] ss:$8 sps:$4 sm:$0xff]  }
  0xbc   :  { %1928 = vmatpush1.bf16.msra.mxu0 %v2975_v32  ;;  %1806 = vmatprep.subr.bf16.mxu1 %v2980_v33  ;;  %v3815_v40 = vrot.slane %v365_v36, %v3314_v51  ;;  %v2987_v31 = vld [vmem:[%s4110_s1 + $0x610] ss:$8 sps:$4 sm:$0xff]   ;;  %v2992_v42 = vld [vmem:[%s4110_s1 + $0x624] ss:$8 sps:$4 sm:$0xff]   ;;  %v2990_v3 = vld [vmem:[%s4110_s1 + $0x620] ss:$8 sps:$4 sm:$0xff]  }
  0xbd   :  { %1929 = vmatprep.subr.bf16.mxu0 %v2983_v46  ;;  %v2993_v43 = vld [vmem:[%s4110_s1 + $0x630] ss:$8 sps:$4 sm:$0xff]   ;;  %v2998_v44 = vld [vmem:[%s4110_s1 + $0x644] ss:$8 sps:$4 sm:$0xff]   ;;  %v2996_v47 = vld [vmem:[%s4110_s1 + $0x640] ss:$8 sps:$4 sm:$0xff]  }
  0xbe   :  { %v3001_v48 = vld [vmem:[%s4110_s1 + $0x654] ss:$8 sps:$4 sm:$0xff]   ;;  %v2999_v49 = vld [vmem:[%s4110_s1 + $0x650] ss:$8 sps:$4 sm:$0xff]   ;;  %v3004_v50 = vld [vmem:[%s4110_s1 + $0x664] ss:$8 sps:$4 sm:$0xff]   ;;  %v397_v11 = vcombine.high %v3815_v40, %v3815_v40 }
  0xbf   :  { %1807 = vmatpush1.bf16.msra.mxu1 %v2978_v34  ;;  %v3002_v52 = vld [vmem:[%s4110_s1 + $0x660] ss:$8 sps:$4 sm:$0xff]   ;;  %v3007_v53 = vld [vmem:[%s4110_s1 + $0x674] ss:$8 sps:$4 sm:$0xff]   ;;  %v3005_v54 = vld [vmem:[%s4110_s1 + $0x670] ss:$8 sps:$4 sm:$0xff]  }
  0xc0   :  { %1930 = vmatpush1.bf16.msra.mxu0 %v2981_v35  ;;  %v3010_v55 = vld [vmem:[%s4110_s1 + $0x684] ss:$8 sps:$4 sm:$0xff]   ;;  %v3008_v56 = vld [vmem:[%s4110_s1 + $0x680] ss:$8 sps:$4 sm:$0xff]   ;;  %v3013_v57 = vld [vmem:[%s4110_s1 + $0x694] ss:$8 sps:$4 sm:$0xff]  }
  0xc1   :  { %1940 = vmatprep.subr.bf16.mxu0 %v2986_v37  ;;  %v3011_v58 = vld [vmem:[%s4110_s1 + $0x690] ss:$8 sps:$4 sm:$0xff]   ;;  %v3016_v59 = vld [vmem:[%s4110_s1 + $0x6a4] ss:$8 sps:$4 sm:$0xff]   ;;  %v3014_v60 = vld [vmem:[%s4110_s1 + $0x6a0] ss:$8 sps:$4 sm:$0xff]  }
  0xc2   :  { %1809 = vmatmul.mubr.bf16.vlgmr.msra.gmra.mrb[0].mxu1 %v3379_v14  ;;  %v2995_v14 = vld [vmem:[%s4110_s1 + $0x634] ss:$8 sps:$4 sm:$0xff]   ;;  %v3017_v62 = vld [vmem:[%s4110_s1 + $0x6b0] ss:$8 sps:$4 sm:$0xff]   ;;  %v3022_v63 = vld [vmem:[%s4110_s1 + $0x6c4] ss:$8 sps:$4 sm:$0xff]  }
  0xc3   :  { %1932 = vmatmul.mubr.bf16.vlgmr.msra.gmra.mrb[0].mxu0 %v394_v38  ;;  %v3019_v61 = vld [vmem:[%s4110_s1 + $0x6b4] ss:$8 sps:$4 sm:$0xff]   ;;  %v3020_v0 = vld [vmem:[%s4110_s1 + $0x6c0] ss:$8 sps:$4 sm:$0xff]   ;;  %v3023_v2 = vld [vmem:[%s4110_s1 + $0x6d0] ss:$8 sps:$4 sm:$0xff]  }
  0xc4   :  { %1941 = vmatpush1.bf16.msra.mxu0 %v2984_v39  ;;  %1972 = vmatprep.mubr.bf16.mxu0 %v3815_v40  ;;  %v3025_v1 = vld [vmem:[%s4110_s1 + $0x6d4] ss:$8 sps:$4 sm:$0xff]   ;;  %v3028_v4 = vld [vmem:[%s4110_s1 + $0x6e4] ss:$8 sps:$4 sm:$0xff]   ;;  %v3026_v5 = vld [vmem:[%s4110_s1 + $0x6e0] ss:$8 sps:$4 sm:$0xff]  }
  0xc5   :  { %1942 = vmatprep.subr.bf16.mxu0 %v2989_v41  ;;  %v3031_v6 = vld [vmem:[%s4110_s1 + $0x6f4] ss:$8 sps:$4 sm:$0xff]   ;;  %v3029_v7 = vld [vmem:[%s4110_s1 + $0x6f0] ss:$8 sps:$4 sm:$0xff]   ;;  %v3035_v8 = vld [vmem:[%s4110_s1 + $0x704] ss:$8 sps:$4 sm:$0xff]  }
  0xc6   :  { %v3033_v10 = vld [vmem:[%s4110_s1 + $0x700] ss:$8 sps:$4 sm:$0xff]   ;;  %v3038_v12 = vld [vmem:[%s4110_s1 + $0x714] ss:$8 sps:$4 sm:$0xff]   ;;  %v3036_v51 = vld [vmem:[%s4110_s1 + $0x710] ss:$8 sps:$4 sm:$0xff]  }
  0xc7   :  { %v3041_v13 = vld [vmem:[%s4110_s1 + $0x724] ss:$8 sps:$4 sm:$0xff]   ;;  %v3039_v15 = vld [vmem:[%s4110_s1 + $0x720] ss:$8 sps:$4 sm:$0xff]   ;;  %v3044_v16 = vld [vmem:[%s4110_s1 + $0x734] ss:$8 sps:$4 sm:$0xff]  }
  0xc8   :  { %1943 = vmatpush1.bf16.msra.mxu0 %v2987_v31  ;;  %v3042_v17 = vld [vmem:[%s4110_s1 + $0x730] ss:$8 sps:$4 sm:$0xff]   ;;  %v3047_v18 = vld [vmem:[%s4110_s1 + $0x744] ss:$8 sps:$4 sm:$0xff]   ;;  %v3045_v20 = vld [vmem:[%s4110_s1 + $0x740] ss:$8 sps:$4 sm:$0xff]  }
  0xc9   :  { %1944 = vmatprep.subr.bf16.mxu0 %v2992_v42  ;;  %v3050_v21 = vld [vmem:[%s4110_s1 + $0x754] ss:$8 sps:$4 sm:$0xff]   ;;  %v3048_v22 = vld [vmem:[%s4110_s1 + $0x750] ss:$8 sps:$4 sm:$0xff]   ;;  %v3053_v23 = vld [vmem:[%s4110_s1 + $0x764] ss:$8 sps:$4 sm:$0xff]  }
  0xca   :  { %v3051_v24 = vld [vmem:[%s4110_s1 + $0x760] ss:$8 sps:$4 sm:$0xff]   ;;  %v3056_v25 = vld [vmem:[%s4110_s1 + $0x774] ss:$8 sps:$4 sm:$0xff]   ;;  %v3054_v29 = vld [vmem:[%s4110_s1 + $0x770] ss:$8 sps:$4 sm:$0xff]  }
  0xcb   :  { %v3081_v26 = vld [vmem:[%s4112_s3 + $0x40] sm:$0xff]   ;;  %v3083_v28 = vld [vmem:[%s4112_s3 + $0x48] sm:$0xff]   ;;  %v3085_v33 = vld [vmem:[%s4112_s3 + $0x50] sm:$0xff]   ;;  %vm3131_vm0 = vmmov 0   ;;  %vm2314_vm1 = vcmask 74752  }
  0xcc   :  { %1945 = vmatpush1.bf16.msra.mxu0 %v2990_v3  ;;  %v3082_v27 = vld [vmem:[%s4112_s3] sm:$0xff]   ;;  %2612 = vmatprep.subr.bf16.mxu1 %v3081_v26  ;;  %v3084_v30 = vld [vmem:[%s4112_s3 + $0x8] sm:$0xff]   ;;  %v3086_v19 = vld [vmem:[%s4112_s3 + $0x10] sm:$0xff]  }
  0xcd   :  { %1946 = vmatprep.subr.bf16.mxu0 %v2995_v14  ;;  %2613 = vmatpush3.bf16.msra.mxu1 %v3082_v27  ;;  %v3059_v32 = vld [vmem:[%s4110_s1 + $0x784] ss:$8 sps:$4 sm:$0xff]   ;;  %v3057_v46 = vld [vmem:[%s4110_s1 + $0x780] ss:$8 sps:$4 sm:$0xff]   ;;  %v3062_v34 = vld [vmem:[%s4110_s1 + $0x794] ss:$8 sps:$4 sm:$0xff]  }
  0xce   :  { %2614 = vmatprep.subr.bf16.mxu1 %v3083_v28  ;;  %v3087_v35 = vld [vmem:[%s4112_s3 + $0x58] sm:$0xff]   ;;  %v3065_v38 = vld [vmem:[%s4110_s1 + $0x7a4] ss:$8 sps:$4 sm:$0xff]   ;;  %v3063_v40 = vld [vmem:[%s4110_s1 + $0x7a0] ss:$8 sps:$4 sm:$0xff]  }
  0xcf   :  { %v3060_v36 = vld [vmem:[%s4110_s1 + $0x790] ss:$8 sps:$4 sm:$0xff]   ;;  %v3089_v39 = vld [vmem:[%s4112_s3 + $0x60] sm:$0xff]   ;;  %v3068_v31 = vld [vmem:[%s4110_s1 + $0x7b4] ss:$8 sps:$4 sm:$0xff]  }
  0xd0   :  { %1947 = vmatpush1.bf16.msra.mxu0 %v2993_v43  ;;  %v3088_v37 = vld [vmem:[%s4112_s3 + $0x18] sm:$0xff]   ;;  %v3090_v41 = vld [vmem:[%s4112_s3 + $0x20] sm:$0xff]   ;;  %v3091_v42 = vld [vmem:[%s4112_s3 + $0x68] sm:$0xff]  }
  0xd1   :  { %1948 = vmatprep.subr.bf16.mxu0 %v2998_v44  ;;  %2615 = vmatpush3.bf16.msra.mxu1 %v3084_v30  ;;  %v3066_v3 = vld [vmem:[%s4110_s1 + $0x7b0] ss:$8 sps:$4 sm:$0xff]   ;;  %v3092_v14 = vld [vmem:[%s4112_s3 + $0x28] sm:$0xff]   ;;  %v2586_v27 = vld [vmem:[%s4113_s4] ss:$0 sm:$0xff] }
  0xd2   :  { %2616 = vmatprep.subr.bf16.mxu1 %v3085_v33  ;;  %v3071_v43 = vld [vmem:[%s4110_s1 + $0x7c4] ss:$8 sps:$4 sm:$0xff]   ;;  %v3069_v44 = vld [vmem:[%s4110_s1 + $0x7c0] ss:$8 sps:$4 sm:$0xff]  }
  0xd4   :  { %1949 = vmatpush1.bf16.msra.mxu0 %v2996_v47  ;;  %v3074_v47 = vld [vmem:[%s4110_s1 + $0x7d4] ss:$8 sps:$4 sm:$0xff]  }
  0xd5   :  { %1950 = vmatprep.subr.bf16.mxu0 %v3001_v48  ;;  %2617 = vmatpush3.bf16.msra.mxu1 %v3086_v19  ;;  %v3072_v48 = vld [vmem:[%s4110_s1 + $0x7d0] ss:$8 sps:$4 sm:$0xff]  }
  0xd6   :  { %2618 = vmatprep.subr.bf16.mxu1 %v3087_v35 }
  0xd8   :  { %1951 = vmatpush1.bf16.msra.mxu0 %v2999_v49  ;;  %v3077_v49 = vld [vmem:[%s4110_s1 + $0x7e4] ss:$8 sps:$4 sm:$0xff]  }
  0xd9   :  { %1952 = vmatprep.subr.bf16.mxu0 %v3004_v50  ;;  %2619 = vmatpush3.bf16.msra.mxu1 %v3088_v37  ;;  %v3075_v50 = vld [vmem:[%s4110_s1 + $0x7e0] ss:$8 sps:$4 sm:$0xff]  }
  0xda   :  { %2620 = vmatprep.subr.bf16.mxu1 %v3089_v39 }
  0xdc   :  { %1953 = vmatpush1.bf16.msra.mxu0 %v3002_v52  ;;  %v3080_v52 = vld [vmem:[%s4110_s1 + $0x7f4] ss:$8 sps:$4 sm:$0xff]  }
  0xdd   :  { %1954 = vmatprep.subr.bf16.mxu0 %v3007_v53  ;;  %2621 = vmatpush3.bf16.msra.mxu1 %v3090_v41  ;;  %v3078_v53 = vld [vmem:[%s4110_s1 + $0x7f0] ss:$8 sps:$4 sm:$0xff]  }
  0xde   :  { %2622 = vmatprep.subr.bf16.mxu1 %v3091_v42 }
  0xe0   :  { %1955 = vmatpush1.bf16.msra.mxu0 %v3005_v54  ;;  %v395_v54 = vcombine.high %v3914_v9, %v3914_v9 }
  0xe1   :  { %1956 = vmatprep.subr.bf16.mxu0 %v3010_v55  ;;  %2623 = vmatpush3.bf16.msra.mxu1 %v3092_v14  ;;  %v3093_v55 = vld [vmem:[%s4112_s3 + $0x70] sm:$0xff]  }
  0xe2   :  { %2624 = vmatprep.subr.bf16.mxu1 %v3093_v55 }
  0xe4   :  { %1957 = vmatpush1.bf16.msra.mxu0 %v3008_v56 }
  0xe5   :  { %1958 = vmatprep.subr.bf16.mxu0 %v3013_v57  ;;  %v3094_v57 = vld [vmem:[%s4112_s3 + $0x30] sm:$0xff]  }
  0xe6   :  { %2625 = vmatpush3.bf16.msra.mxu1 %v3094_v57 }
  0xe8   :  { %1959 = vmatpush1.bf16.msra.mxu0 %v3011_v58 }
  0xe9   :  { %1960 = vmatprep.subr.bf16.mxu0 %v3016_v59 }
  0xec   :  { %1961 = vmatpush1.bf16.msra.mxu0 %v3014_v60 }
  0xed   :  { %1962 = vmatprep.subr.bf16.mxu0 %v3019_v61  ;;  %v3095_v61 = vld [vmem:[%s4112_s3 + $0x78] sm:$0xff]  }
  0xee   :  { %2626 = vmatprep.subr.bf16.mxu1 %v3095_v61 }
  0xf0   :  { %1963 = vmatpush1.bf16.msra.mxu0 %v3017_v62  ;;  %v3096_v62 = vld [vmem:[%s4112_s3 + $0x38] sm:$0xff]  }
  0xf1   :  { %1964 = vmatprep.subr.bf16.mxu0 %v3022_v63  ;;  %2627 = vmatpush3.bf16.msra.mxu1 %v3096_v62  ;;  %v3130_v63 = vmov 0.0  }
  0xf2   :  { %2643 = vmatprep.subr.bf16.mxu1 %v3130_v63 }
  0xf4   :  { %1965 = vmatpush1.bf16.msra.mxu0 %v3020_v0  ;;  %v290_v0 = vsub.s32 0, %v3299_v45 }
  0xf5   :  { %1966 = vmatprep.subr.bf16.mxu0 %v3025_v1  ;;  %v286_v1 = vld [vmem:[%s4111_s2] sm:$0x3] }
  0xf8   :  { %1967 = vmatpush1.bf16.msra.mxu0 %v3023_v2  ;;  %v294_v2 = vsub.s32 1, %v3299_v45  ;;  %v3098_v45 = vld [vmem:[%s4114_s5 + $0x8] sm:$0xff]  }
  0xf9   :  { %1968 = vmatprep.subr.bf16.mxu0 %v3028_v4  ;;  %v291_v4 = vrot.slane %v286_v1, %v290_v0 }
  0xfc   :  { %1969 = vmatpush1.bf16.msra.mxu0 %v3026_v5  ;;  %v295_v5 = vrot.slane %v286_v1, %v294_v2 }
  0xfd   :  { %1970 = vmatprep.subr.bf16.mxu0 %v3031_v6 }
 0x100   :  { %1971 = vmatpush1.bf16.msra.mxu0 %v3029_v7 }
 0x101   :  { %1981 = vmatprep.subr.bf16.mxu0 %v3035_v8 }
 0x103   :  { %1973 = vmatmul.mubr.bf16.vlgmr.msra.gmra.mrb[0].mxu0 %v3914_v9 }
 0x104   :  { %1982 = vmatpush1.bf16.msra.mxu0 %v3033_v10  ;;  %2013 = vmatprep.mubr.bf16.mxu0 %v397_v11 }
 0x105   :  { %1983 = vmatprep.subr.bf16.mxu0 %v3038_v12 }
 0x108   :  { %1984 = vmatpush1.bf16.msra.mxu0 %v3036_v51 }
 0x109   :  { %1985 = vmatprep.subr.bf16.mxu0 %v3041_v13 }
 0x10c   :  { %1986 = vmatpush1.bf16.msra.mxu0 %v3039_v15 }
 0x10d   :  { %1987 = vmatprep.subr.bf16.mxu0 %v3044_v16 }
 0x110   :  { %1988 = vmatpush1.bf16.msra.mxu0 %v3042_v17  ;;  %v3097_v17 = vld [vmem:[%s4114_s5] sm:$0xff]  }
 0x111   :  { %1989 = vmatprep.subr.bf16.mxu0 %v3047_v18 }
 0x114   :  { %1990 = vmatpush1.bf16.msra.mxu0 %v3045_v20  ;;  %v3099_v20 = vld [vmem:[%s4114_s5 + $0x10] sm:$0xff]  }
 0x115   :  { %1991 = vmatprep.subr.bf16.mxu0 %v3050_v21  ;;  %v3100_v21 = vld [vmem:[%s4114_s5 + $0x18] sm:$0xff]  }
 0x118   :  { %1992 = vmatpush1.bf16.msra.mxu0 %v3048_v22  ;;  %v3101_v22 = vld [vmem:[%s4114_s5 + $0x20] sm:$0xff]  }
 0x119   :  { %1993 = vmatprep.subr.bf16.mxu0 %v3053_v23  ;;  %v3102_v23 = vld [vmem:[%s4114_s5 + $0x28] sm:$0xff]  }
 0x11c   :  { %1994 = vmatpush1.bf16.msra.mxu0 %v3051_v24  ;;  %v3103_v24 = vld [vmem:[%s4114_s5 + $0x30] sm:$0xff]  }
 0x11d   :  { %1995 = vmatprep.subr.bf16.mxu0 %v3056_v25  ;;  %v3104_v25 = vld [vmem:[%s4114_s5 + $0x38] sm:$0xff]   ;;  %s3132_s5 = smov [#allocation2]  }
 0x11e   :  { %s2322_s23 = sshll.u32 %s3132_s5, 4  ;;  %s2323_s23 = int_to_ptr.vmem [resolvable:$true] %s2322_s23 }
 0x11f   :  { %s3105_s4 = scalar_lea.vmem %s2323_s23, 32  ;;  %p3110_p1 = scmp.lt.s32.totalorder %s2323_s23, %s2323_s23 }
 0x120   :  { %1996 = vmatpush1.bf16.msra.mxu0 %v3054_v29  ;;  %p3106_p0 = scmp.ne.s32.totalorder %s2323_s23, %s3105_s4  ;;  %p3111_p2 = scmp.lt.s32.totalorder %s3105_s4, %s3105_s4 }
 0x121   :  { %1997 = vmatprep.subr.bf16.mxu0 %v3059_v32 }
 0x122   :  { %p3112_p3 = por %p3111_p2, %p3110_p1 }
 0x124   :  { %1998 = vmatpush1.bf16.msra.mxu0 %v3057_v46  ;;  %p3113_p4 = pnand %p3112_p3, %p3106_p0 }
 0x125   :  { %1999 = vmatprep.subr.bf16.mxu0 %v3062_v34  ;;  %v2603_v34 = vld [vmem:[%s4115_s6] ss:$0 sm:$0xff] }
 0x128   :  { %2000 = vmatpush1.bf16.msra.mxu0 %v3060_v36 }
 0x129   :  { %2001 = vmatprep.subr.bf16.mxu0 %v3065_v38 }
 0x12c   :  { %2002 = vmatpush1.bf16.msra.mxu0 %v3063_v40 }
 0x12d   :  { %2003 = vmatprep.subr.bf16.mxu0 %v3068_v31 }
 0x130   :  { %2004 = vmatpush1.bf16.msra.mxu0 %v3066_v3 }
 0x131   :  { %2005 = vmatprep.subr.bf16.mxu0 %v3071_v43 }
 0x134   :  { %2006 = vmatpush1.bf16.msra.mxu0 %v3069_v44 }
 0x135   :  { %2007 = vmatprep.subr.bf16.mxu0 %v3074_v47 }
 0x138   :  { %2008 = vmatpush1.bf16.msra.mxu0 %v3072_v48 }
 0x139   :  { %2009 = vmatprep.subr.bf16.mxu0 %v3077_v49 }
 0x13c   :  { %2010 = vmatpush1.bf16.msra.mxu0 %v3075_v50 }
 0x13d   :  { %2011 = vmatprep.subr.bf16.mxu0 %v3080_v52 }
 0x140   :  { %2012 = vmatpush1.bf16.msra.mxu0 %v3078_v53 }
 0x143   :  { %2014 = vmatmul.mubr.bf16.vlgmr.msra.gmra.mrb[0].mxu0 %v395_v54 }
 0x195   :  { %v1810_v56 = vpop.f32.mrb[0].mxu1 }
 0x196   :  { %v1812_v58 = vpop.f32.mrb[1].mxu1  ;;  %v2663_v6 = vadd.f32 %v1810_v56, %v291_v4 }
 0x197   :  { %v1814_v59 = vpop.f32.mrb[2].mxu1  ;;  %v2665_v7 = vadd.f32 %v1812_v58, %v295_v5 }
 0x198   :  { %v1815_v60 = vpop.f32.mrb[3].mxu1 }
 0x216   :  { %v2015_v8 = vpop.f32.mrb[0].mxu0 }
 0x217   :  { %v2664_v9 = vadd.f32 %v2663_v6, %v2015_v8  ;;  %v2017_v10 = vpop.f32.mrb[1].mxu0 }
 0x218   :  { %v2666_v11 = vadd.f32 %v2665_v7, %v2017_v10  ;;  %v2019_v12 = vpop.f32.mrb[2].mxu0 }
 0x219   :  { %v2022_v51 = vmax.f32 %v2664_v9, 0.0  ;;  %v2020_v13 = vpop.f32.mrb[3].mxu0 }
 0x21a   :  { %v2023_v15 = vmax.f32 %v2666_v11, 0.0 }
 0x21b   :  { %v2024_v18 = vpack.c.bf16 %v2022_v51, %v2022_v51 }
 0x21c   :  { %v2025_v16 = vpack.c.bf16 %v2023_v15, %v2023_v15 }
 0x21e   :  { %2193 = vmatprep.mubr.bf16.mxu1 %v2025_v16 }
 0x21f   :  { %2194 = vmatmul.mubr.bf16.vlgmr.msra.gmra.mrb[4].mxu1 %v2024_v18 }
 0x220   :  { %2644 = vmatpush3.bf16.msra.mxu1 %v3097_v17  ;;  %2659 = vmatprep.mubr.msk.bf16.mxu1 %vm3131_vm0, %v3130_v63 }
 0x221   :  { %2645 = vmatprep.subr.bf16.mxu1 %v3130_v63 }
 0x224   :  { %2646 = vmatpush3.bf16.msra.mxu1 %v3098_v45 }
 0x225   :  { %2647 = vmatprep.subr.bf16.mxu1 %v3130_v63 }
 0x228   :  { %2648 = vmatpush3.bf16.msra.mxu1 %v3099_v20 }
 0x229   :  { %2649 = vmatprep.subr.bf16.mxu1 %v3130_v63 }
 0x22c   :  { %2650 = vmatpush3.bf16.msra.mxu1 %v3100_v21 }
 0x22d   :  { %2651 = vmatprep.subr.bf16.mxu1 %v3130_v63 }
 0x230   :  { %2652 = vmatpush3.bf16.msra.mxu1 %v3101_v22 }
 0x231   :  { %2653 = vmatprep.subr.bf16.mxu1 %v3130_v63 }
 0x234   :  { %2654 = vmatpush3.bf16.msra.mxu1 %v3102_v23 }
 0x235   :  { %2655 = vmatprep.subr.bf16.mxu1 %v3130_v63 }
 0x238   :  { %2656 = vmatpush3.bf16.msra.mxu1 %v3103_v24 }
 0x239   :  { %2657 = vmatprep.subr.bf16.mxu1 %v3130_v63 }
 0x23c   :  { %2658 = vmatpush3.bf16.msra.mxu1 %v3104_v25 }
 0x2f2   :  { %v2628_v26 = vpop.f32.mrb[4].mxu1 }
 0x2f3   :  { %v2629_v28 = vpop.f32.mrb[5].mxu1 }
 0x2f4   :  { %v2630_v29 = vadd.f32 %v2629_v28, %v2628_v26  ;;  %v2631_v30 = vpop.f32.mrb[6].mxu1 }
 0x2f5   :  { %v2632_v32 = vpop.f32.mrb[7].mxu1 }
 0x2f6   :  { %v2196_v33 = vadd.f32 %v2630_v29, %v2586_v27 }
 0x2f8   :  { %v2201_v46 = vmax.f32 %v2196_v33, 0.0 }
 0x2fa   :  { %v2202_v19 = vpack.c.bf16 %v2201_v46, %v2201_v46 }
 0x2fc   :  { %2660 = vmatmul.mubr.bf16.vlgmr.msra.gmra.mrb[8].mxu1 %v2202_v19 }
 0x3cf   :  { %v2308_v35 = vpop.f32.mrb[8].mxu1 }
 0x3d0   :  { %v2309_v36 = vadd.f32 %v2603_v34, %v2308_v35  ;;  %v2661_v37 = vpop.f32.mrb[9].mxu1 }
 0x3d1   :  { %v2311_v38 = vpop.f32.mrb[10].mxu1 }
 0x3d2   :  { %v2662_v39 = vpop.f32.mrb[11].mxu1  ;;  %2315 = vst.msk [vmem:[#allocation2] sm:$0x3] %vm2314_vm1, %v2309_v36 }
 0x3d3   :  { %3116 = shalt.err (!%p3113_p4)
}
 0x3d4   :  { %s3117_s6 = scalar_lea.hbm %s4116_s7, 32 }
 0x3d5   :  { %p3118_p5 = scmp.ne.s32.totalorder %s4116_s7, %s3117_s6  ;;  %p3121_p6 = scmp.lt.u32.totalorder %s3117_s6, %s4116_s7 }
 0x3d7   :  { %p3123_p7 = pnand %p3121_p6, %p3118_p5 }
 0x3d9   :  { %3126 = shalt.err (!%p3123_p7)
}
 0x3da   :  { %2325 = dma.vmem_to_hbm [thread:$0]  %s2323_s23, 32, %s4116_s7, [#allocation3]  }
 0x3db   :  { %3127 = dma.done.wait [#allocation3], 32  }
 0x3dc   :  { %3128 = vsyncadd [#allocation3], 4294967264 }
 0x3dd   :  { %2329 = vsyncpa [#allocation3], 1 }

</bundles_post_ra>
